<compile_context>
chip_gen: v7x
topology: tpu7x:2x2x1
jax: 0.10.0
libtpu: 0.0.40
codegen_flags: <defaults>
</compile_context>

<pallas_src>
import jax
import jax.numpy as jnp
from jax.experimental import pallas as pl
from jax.experimental.pallas import tpu as pltpu

BN_EPS = 1e-5
LANE = 128
VMEM_LIMIT = 48 * 1024 * 1024


def _round_up(x, m):
    return ((x + m - 1) // m) * m


# ----------------------------- in-kernel helpers -----------------------------
def _zero_halo(pad_ref, hh, wh):
    """Zero only the 1-pixel halo strips of a (hh+2, wh+2, C) scratch."""
    c = pad_ref.shape[-1]
    dt = pad_ref.dtype
    pad_ref[0:1, :, :] = jnp.zeros((1, wh + 2, c), dt)
    pad_ref[hh + 1:hh + 2, :, :] = jnp.zeros((1, wh + 2, c), dt)
    pad_ref[:, 0:1, :] = jnp.zeros((hh + 2, 1, c), dt)
    pad_ref[:, wh + 1:wh + 2, :] = jnp.zeros((hh + 2, 1, c), dt)


def _im2col_matmul(pad_ref, col_ref, w_ref, hh, wh):
    """Build the (Hh*Wh, 9*C) im2col tile in VMEM and do one K=9*C matmul."""
    c = pad_ref.shape[-1]
    for t in range(9):
        dy, dx = t // 3, t % 3
        col_ref[:, t * c:(t + 1) * c] = (
            pad_ref[dy:dy + hh, dx:dx + wh, :].reshape(hh * wh, c))
    return jnp.dot(col_ref[...], w_ref[...],
                   preferred_element_type=jnp.float32)


# ------------- kernel 1: fused 2x2 max-pool + conv3x3 (+ BN stats) -------------
def _pool_conv_kernel(x_ref, w_ref, y_ref, stat_ref, xpad_ref, col_ref):
    # x_ref   : (1, H, W, Cin)     f32 NHWC input image
    # w_ref   : (9*Cin, Cp)        bf16 conv1 weights (tap-major, channel-minor)
    # y_ref   : (1, Hh, Wh, Cp)    bf16 pre-BN conv1 output
    # stat_ref: (1, 2, Cp)         f32 per-image [sum ; sum of squares]
    # xpad_ref: (Hh+2, Wh+2, Cin)  bf16 scratch: zero-halo pooled image
    # col_ref : (Hh*Wh, 9*Cin)     bf16 scratch: im2col tile
    _, h, w, cin = x_ref.shape
    hh, wh = h // 2, w // 2
    cp = y_ref.shape[-1]

    # fused 2x2 max-pool: horizontal pair-max, then vertical pair-max
    x = x_ref[0]                                              # (H, W, Cin)
    xh = x.reshape(h * wh, 2, cin)
    xh = jnp.maximum(xh[:, 0, :], xh[:, 1, :]).reshape(h, wh, cin)
    xv = xh.reshape(hh, 2, wh, cin)
    pooled = jnp.maximum(xv[:, 0], xv[:, 1])                  # (Hh, Wh, Cin)

    # zero only the halo strips; interior is fully overwritten every step
    _zero_halo(xpad_ref, hh, wh)
    xpad_ref[1:hh + 1, 1:wh + 1, :] = pooled.astype(xpad_ref.dtype)

    acc = _im2col_matmul(xpad_ref, col_ref, w_ref, hh, wh)    # (Hh*Wh, Cp) f32
    y_ref[0] = acc.reshape(hh, wh, cp).astype(y_ref.dtype)
    # per-image partial BN statistics (reduced over the batch in the wrapper)
    stat_ref[0, 0:1, :] = jnp.sum(acc, axis=0, keepdims=True)
    stat_ref[0, 1:2, :] = jnp.sum(acc * acc, axis=0, keepdims=True)


# -------- kernel 2: fused BN1(affine) + ReLU + conv3x3 (+ BN stats) --------
def _bn_relu_conv_kernel(y1_ref, scale_ref, shift_ref, w_ref, y2_ref, stat_ref,
                         apad_ref, col_ref):
    # y1_ref     : (1, Hh, Wh, Cp1)   bf16 pre-BN conv1 output
    # scale/shift: (1, Cp1)           f32 folded BN1 scale / shift
    # w_ref      : (9*Cp1, Cp2)       bf16 conv2 weights
    # y2_ref     : (1, Hh, Wh, Cp2)   bf16 pre-BN conv2 output
    # stat_ref   : (1, 2, Cp2)        f32 per-image [sum ; sum of squares]
    # apad_ref   : (Hh+2, Wh+2, Cp1)  bf16 scratch: zero-halo ReLU(BN1(y1))
    # col_ref    : (Hh*Wh, 9*Cp1)     bf16 scratch: im2col tile
    _, hh, wh, cp1 = y1_ref.shape
    cp2 = y2_ref.shape[-1]

    a = jnp.maximum(
        y1_ref[0].astype(jnp.float32) * scale_ref[...] + shift_ref[...], 0.0)

    _zero_halo(apad_ref, hh, wh)
    apad_ref[1:hh + 1, 1:wh + 1, :] = a.astype(apad_ref.dtype)

    acc = _im2col_matmul(apad_ref, col_ref, w_ref, hh, wh)    # (Hh*Wh, Cp2) f32
    y2_ref[0] = acc.reshape(hh, wh, cp2).astype(y2_ref.dtype)
    stat_ref[0, 0:1, :] = jnp.sum(acc, axis=0, keepdims=True)
    stat_ref[0, 1:2, :] = jnp.sum(acc * acc, axis=0, keepdims=True)


# ------------- kernel 3: BN2(affine) + ReLU + channel-padding crop -------------
def _bn_relu_crop_kernel(y_ref, scale_ref, shift_ref, o_ref):
    # y_ref: (1, Hh, Wh, Cp2) bf16; scale/shift: (1, Cout) f32; o_ref: (1, Hh, Wh, Cout) f32
    cout = o_ref.shape[-1]
    y = y_ref[0][:, :, :cout].astype(jnp.float32)
    o_ref[0] = jnp.maximum(y * scale_ref[...] + shift_ref[...],
                           0.0).astype(o_ref.dtype)


# ------------------------------ pallas_call wrappers -----------------------------
def _pool_conv(x, w_flat):
    N, H, W, Cin = x.shape
    Hh, Wh = H // 2, W // 2
    Cp = w_flat.shape[-1]
    return pl.pallas_call(
        _pool_conv_kernel,
        out_shape=(jax.ShapeDtypeStruct((N, Hh, Wh, Cp), jnp.bfloat16),
                   jax.ShapeDtypeStruct((N, 2, Cp), jnp.float32)),
        grid=(N,),
        in_specs=[
            pl.BlockSpec((1, H, W, Cin), lambda i: (i, 0, 0, 0)),
            pl.BlockSpec((9 * Cin, Cp), lambda i: (0, 0)),
        ],
        out_specs=(
            pl.BlockSpec((1, Hh, Wh, Cp), lambda i: (i, 0, 0, 0)),
            pl.BlockSpec((1, 2, Cp), lambda i: (i, 0, 0)),
        ),
        scratch_shapes=[
            pltpu.VMEM((Hh + 2, Wh + 2, Cin), jnp.bfloat16),
            pltpu.VMEM((Hh * Wh, 9 * Cin), jnp.bfloat16),
        ],
        compiler_params=pltpu.CompilerParams(
            dimension_semantics=("parallel",),
            vmem_limit_bytes=VMEM_LIMIT),
    )(x, w_flat)


def _bn_relu_conv(y1, scale, shift, w_flat):
    N, Hh, Wh, Cp1 = y1.shape
    Cp2 = w_flat.shape[-1]
    return pl.pallas_call(
        _bn_relu_conv_kernel,
        out_shape=(jax.ShapeDtypeStruct((N, Hh, Wh, Cp2), jnp.bfloat16),
                   jax.ShapeDtypeStruct((N, 2, Cp2), jnp.float32)),
        grid=(N,),
        in_specs=[
            pl.BlockSpec((1, Hh, Wh, Cp1), lambda i: (i, 0, 0, 0)),
            pl.BlockSpec((1, Cp1), lambda i: (0, 0)),
            pl.BlockSpec((1, Cp1), lambda i: (0, 0)),
            pl.BlockSpec((9 * Cp1, Cp2), lambda i: (0, 0)),
        ],
        out_specs=(
            pl.BlockSpec((1, Hh, Wh, Cp2), lambda i: (i, 0, 0, 0)),
            pl.BlockSpec((1, 2, Cp2), lambda i: (i, 0, 0)),
        ),
        scratch_shapes=[
            pltpu.VMEM((Hh + 2, Wh + 2, Cp1), jnp.bfloat16),
            pltpu.VMEM((Hh * Wh, 9 * Cp1), jnp.bfloat16),
        ],
        compiler_params=pltpu.CompilerParams(
            dimension_semantics=("parallel",),
            vmem_limit_bytes=VMEM_LIMIT),
    )(y1, scale, shift, w_flat)


def _bn_relu_crop(y, scale, shift, cout):
    N, Hh, Wh, Cp = y.shape
    return pl.pallas_call(
        _bn_relu_crop_kernel,
        out_shape=jax.ShapeDtypeStruct((N, Hh, Wh, cout), jnp.float32),
        grid=(N,),
        in_specs=[
            pl.BlockSpec((1, Hh, Wh, Cp), lambda i: (i, 0, 0, 0)),
            pl.BlockSpec((1, cout), lambda i: (0, 0)),
            pl.BlockSpec((1, cout), lambda i: (0, 0)),
        ],
        out_specs=pl.BlockSpec((1, Hh, Wh, cout), lambda i: (i, 0, 0, 0)),
        compiler_params=pltpu.CompilerParams(
            dimension_semantics=("parallel",)),
    )(y, scale, shift)


# --------------------------------- glue helpers ---------------------------------
def _flat_taps(w, cin_pad, cout_pad):
    # w: (3, 3, Cin, Cout) -> (9*cin_pad, cout_pad) bf16, zero-padded,
    # K flattened tap-major / channel-minor to match the im2col tile.
    _, _, cin, cout = w.shape
    wp = jnp.pad(w, ((0, 0), (0, 0), (0, cin_pad - cin), (0, cout_pad - cout)))
    return wp.reshape(9 * cin_pad, cout_pad).astype(jnp.bfloat16)


def _pad_vec(v, cpad):
    return jnp.pad(v, (0, cpad - v.shape[0]))


def _bn_fold(stats, gamma, beta, count):
    # stats: (N, 2, C) per-image [sum ; sumsq] -> folded scale/shift (1, C)
    tot = jnp.sum(stats, axis=0)                             # (2, C)
    mean = tot[0] / count
    var = jnp.maximum(tot[1] / count - mean * mean, 0.0)     # biased variance
    inv = jax.lax.rsqrt(var + BN_EPS)
    scale = gamma * inv
    shift = beta - mean * scale
    return scale[None, :], shift[None, :]


# --------------------------------- Down module ---------------------------------
def init_down_params(key, in_channels, out_channels):
    mid_channels = out_channels
    k1, k2 = jax.random.split(key)
    # deterministic synthetic init (conv weights ~ N(0, 0.1); BN: gamma=1, beta=0)
    w1 = 0.1 * jax.random.normal(k1, (3, 3, in_channels, mid_channels), jnp.float32)
    w2 = 0.1 * jax.random.normal(k2, (3, 3, mid_channels, out_channels), jnp.float32)
    return {
        "w1": w1, "g1": jnp.ones((mid_channels,), jnp.float32),
        "b1": jnp.zeros((mid_channels,), jnp.float32),
        "w2": w2, "g2": jnp.ones((out_channels,), jnp.float32),
        "b2": jnp.zeros((out_channels,), jnp.float32),
    }


def down_forward(x_nchw, params):
    """Forward of `Down` (PyTorch train-mode BatchNorm: batch statistics)."""
    N, Cin, H, W = x_nchw.shape
    Cmid = params["w1"].shape[-1]
    Cout = params["w2"].shape[-1]
    Hh, Wh = H // 2, W // 2
    Cpm = _round_up(Cmid, LANE)
    Cpo = _round_up(Cout, LANE)

    # NCHW -> NHWC (channels on the lane dim); crop odd edges like MaxPool2d(2).
    x = jnp.transpose(x_nchw, (0, 2, 3, 1))[:, :2 * Hh, :2 * Wh, :]

    w1f = _flat_taps(params["w1"], Cin, Cpm)                 # (9*Cin, Cpm)  bf16
    w2f = _flat_taps(params["w2"], Cpm, Cpo)                 # (9*Cpm, Cpo)  bf16
    g1p, b1p = _pad_vec(params["g1"], Cpm), _pad_vec(params["b1"], Cpm)
    count = float(N * Hh * Wh)

    y1, st1 = _pool_conv(x, w1f)                  # maxpool + conv1 (pre-BN) + stats
    sc1, sh1 = _bn_fold(st1, g1p, b1p, count)                # (1, Cpm)
    y2, st2 = _bn_relu_conv(y1, sc1, sh1, w2f)    # BN1 + ReLU + conv2 (pre-BN) + stats
    sc2, sh2 = _bn_fold(st2[:, :, :Cout], params["g2"], params["b2"], count)
    out = _bn_relu_crop(y2, sc2, sh2, Cout)       # BN2 + ReLU -> (N, Hh, Wh, Cout)

    # back to NCHW to match the PyTorch module
    return jnp.transpose(out, (0, 3, 1, 2))


if __name__ == "__main__":
    key = jax.random.PRNGKey(0)
    kp, kx = jax.random.split(key)

    in_channels, out_channels = 4, 8
    params = init_down_params(kp, in_channels, out_channels)

    x = jax.random.normal(kx, (2, in_channels, 16, 16), jnp.float32)  # NCHW

    out = jax.jit(down_forward)(x, params)
    out = jax.block_until_ready(out)

    assert out.shape == (2, out_channels, 8, 8), out.shape
    assert bool(jnp.all(jnp.isfinite(out)))
    assert bool(jnp.all(out >= 0.0))  # ReLU output
    print("KERNEL_OK")
</pallas_src>

<mosaic_0001>
module attributes {stable_mosaic.version = 11 : i64} {
  func.func @_pool_conv_kernel(%arg0: i32, %arg1: memref<1x16x16x4xf32, #tpu.memory_space<vmem>>, %arg2: memref<36x128xbf16, #tpu.memory_space<vmem>>, %arg3: memref<1x8x8x128xbf16, #tpu.memory_space<vmem>>, %arg4: memref<1x2x128xf32, #tpu.memory_space<vmem>>, %arg5: memref<10x10x4xbf16, #tpu.memory_space<vmem>>, %arg6: memref<64x36xbf16, #tpu.memory_space<vmem>>) attributes {dimension_semantics = [#tpu.dimension_semantics<parallel>], iteration_bounds = array<i64: 2>, scalar_prefetch = 0 : i64, scratch_operands = 2 : i64, tpu.core_type = #tpu.core_type<tc>, window_params = [{transform_indices = @transform_0, window_bounds = array<i64: 1, 16, 16, 4>}, {pipeline_mode = #tpu.pipeline_mode<synchronous>, transform_indices = @transform_1, window_bounds = array<i64: 36, 128>}, {transform_indices = @transform_2, window_bounds = array<i64: 1, 8, 8, 128>}, {transform_indices = @transform_3, window_bounds = array<i64: 1, 2, 128>}]} {
    %c0 = arith.constant 0 : index
    %c0_0 = arith.constant 0 : index
    %c0_1 = arith.constant 0 : index
    %c0_2 = arith.constant 0 : index
    %0 = vector.load %arg1[%c0, %c0_0, %c0_1, %c0_2] : memref<1x16x16x4xf32, #tpu.memory_space<vmem>>, vector<1x16x16x4xf32>
    %1 = vector.shape_cast %0 : vector<1x16x16x4xf32> to vector<16x16x4xf32>
    %2 = vector.shape_cast %1 : vector<16x16x4xf32> to vector<128x2x4xf32>
    %3 = vector.extract_strided_slice %2 {offsets = [0, 0, 0], sizes = [128, 1, 4], strides = [1, 1, 1]} : vector<128x2x4xf32> to vector<128x1x4xf32>
    %4 = vector.shape_cast %3 : vector<128x1x4xf32> to vector<128x4xf32>
    %5 = vector.extract_strided_slice %2 {offsets = [0, 1, 0], sizes = [128, 1, 4], strides = [1, 1, 1]} : vector<128x2x4xf32> to vector<128x1x4xf32>
    %6 = vector.shape_cast %5 : vector<128x1x4xf32> to vector<128x4xf32>
    %7 = arith.maximumf %4, %6 : vector<128x4xf32>
    %8 = vector.shape_cast %7 : vector<128x4xf32> to vector<16x8x4xf32>
    %9 = vector.shape_cast %8 : vector<16x8x4xf32> to vector<8x2x8x4xf32>
    %10 = vector.extract_strided_slice %9 {offsets = [0, 0, 0, 0], sizes = [8, 1, 8, 4], strides = [1, 1, 1, 1]} : vector<8x2x8x4xf32> to vector<8x1x8x4xf32>
    %11 = vector.shape_cast %10 : vector<8x1x8x4xf32> to vector<8x8x4xf32>
    %12 = vector.extract_strided_slice %9 {offsets = [0, 1, 0, 0], sizes = [8, 1, 8, 4], strides = [1, 1, 1, 1]} : vector<8x2x8x4xf32> to vector<8x1x8x4xf32>
    %13 = vector.shape_cast %12 : vector<8x1x8x4xf32> to vector<8x8x4xf32>
    %14 = arith.maximumf %11, %13 : vector<8x8x4xf32>
    %cst = arith.constant 0.000000e+00 : bf16
    %15 = vector.broadcast %cst : bf16 to vector<1x10x4xbf16>
    %c0_3 = arith.constant 0 : index
    %c0_4 = arith.constant 0 : index
    %c0_5 = arith.constant 0 : index
    %16 = vector.load %arg5[%c0_3, %c0_4, %c0_5] : memref<10x10x4xbf16, #tpu.memory_space<vmem>>, vector<1x10x4xbf16>
    tpu.vector_store %arg5[%c0_3, %c0_4, %c0_5], %15 {strides = array<i32>} : memref<10x10x4xbf16, #tpu.memory_space<vmem>>, vector<1x10x4xbf16>,
    %cst_6 = arith.constant 0.000000e+00 : bf16
    %17 = vector.broadcast %cst_6 : bf16 to vector<1x10x4xbf16>
    %c9 = arith.constant 9 : index
    %c0_7 = arith.constant 0 : index
    %c0_8 = arith.constant 0 : index
    %18 = vector.load %arg5[%c9, %c0_7, %c0_8] : memref<10x10x4xbf16, #tpu.memory_space<vmem>>, vector<1x10x4xbf16>
    tpu.vector_store %arg5[%c9, %c0_7, %c0_8], %17 {strides = array<i32>} : memref<10x10x4xbf16, #tpu.memory_space<vmem>>, vector<1x10x4xbf16>,
    %cst_9 = arith.constant 0.000000e+00 : bf16
    %19 = vector.broadcast %cst_9 : bf16 to vector<10x1x4xbf16>
    %c0_10 = arith.constant 0 : index
    %c0_11 = arith.constant 0 : index
    %c0_12 = arith.constant 0 : index
    %20 = vector.load %arg5[%c0_10, %c0_11, %c0_12] : memref<10x10x4xbf16, #tpu.memory_space<vmem>>, vector<10x1x4xbf16>
    tpu.vector_store %arg5[%c0_10, %c0_11, %c0_12], %19 {strides = array<i32>} : memref<10x10x4xbf16, #tpu.memory_space<vmem>>, vector<10x1x4xbf16>,
    %cst_13 = arith.constant 0.000000e+00 : bf16
    %21 = vector.broadcast %cst_13 : bf16 to vector<10x1x4xbf16>
    %c0_14 = arith.constant 0 : index
    %c9_15 = arith.constant 9 : index
    %c0_16 = arith.constant 0 : index
    %22 = vector.load %arg5[%c0_14, %c9_15, %c0_16] : memref<10x10x4xbf16, #tpu.memory_space<vmem>>, vector<10x1x4xbf16>
    tpu.vector_store %arg5[%c0_14, %c9_15, %c0_16], %21 {strides = array<i32>} : memref<10x10x4xbf16, #tpu.memory_space<vmem>>, vector<10x1x4xbf16>,
    %23 = arith.truncf %14 : vector<8x8x4xf32> to vector<8x8x4xbf16>
    %c1 = arith.constant 1 : index
    %c1_17 = arith.constant 1 : index
    %c0_18 = arith.constant 0 : index
    %24 = vector.load %arg5[%c1, %c1_17, %c0_18] : memref<10x10x4xbf16, #tpu.memory_space<vmem>>, vector<8x8x4xbf16>
    tpu.vector_store %arg5[%c1, %c1_17, %c0_18], %23 {strides = array<i32>} : memref<10x10x4xbf16, #tpu.memory_space<vmem>>, vector<8x8x4xbf16>,
    %c0_19 = arith.constant 0 : index
    %c0_20 = arith.constant 0 : index
    %c0_21 = arith.constant 0 : index
    %25 = vector.load %arg5[%c0_19, %c0_20, %c0_21] : memref<10x10x4xbf16, #tpu.memory_space<vmem>>, vector<8x8x4xbf16>
    %26 = vector.shape_cast %25 : vector<8x8x4xbf16> to vector<64x4xbf16>
    %c0_22 = arith.constant 0 : index
    %c0_23 = arith.constant 0 : index
    %27 = vector.load %arg6[%c0_22, %c0_23] : memref<64x36xbf16, #tpu.memory_space<vmem>>, vector<64x4xbf16>
    tpu.vector_store %arg6[%c0_22, %c0_23], %26 {strides = array<i32>} : memref<64x36xbf16, #tpu.memory_space<vmem>>, vector<64x4xbf16>,
    %c0_24 = arith.constant 0 : index
    %c1_25 = arith.constant 1 : index
    %c0_26 = arith.constant 0 : index
    %28 = vector.load %arg5[%c0_24, %c1_25, %c0_26] : memref<10x10x4xbf16, #tpu.memory_space<vmem>>, vector<8x8x4xbf16>
    %29 = vector.shape_cast %28 : vector<8x8x4xbf16> to vector<64x4xbf16>
    %c0_27 = arith.constant 0 : index
    %c4 = arith.constant 4 : index
    %30 = vector.load %arg6[%c0_27, %c4] : memref<64x36xbf16, #tpu.memory_space<vmem>>, vector<64x4xbf16>
    tpu.vector_store %arg6[%c0_27, %c4], %29 {strides = array<i32>} : memref<64x36xbf16, #tpu.memory_space<vmem>>, vector<64x4xbf16>,
    %c0_28 = arith.constant 0 : index
    %c2 = arith.constant 2 : index
    %c0_29 = arith.constant 0 : index
    %31 = vector.load %arg5[%c0_28, %c2, %c0_29] : memref<10x10x4xbf16, #tpu.memory_space<vmem>>, vector<8x8x4xbf16>
    %32 = vector.shape_cast %31 : vector<8x8x4xbf16> to vector<64x4xbf16>
    %c0_30 = arith.constant 0 : index
    %c8 = arith.constant 8 : index
    %33 = vector.load %arg6[%c0_30, %c8] : memref<64x36xbf16, #tpu.memory_space<vmem>>, vector<64x4xbf16>
    tpu.vector_store %arg6[%c0_30, %c8], %32 {strides = array<i32>} : memref<64x36xbf16, #tpu.memory_space<vmem>>, vector<64x4xbf16>,
    %c1_31 = arith.constant 1 : index
    %c0_32 = arith.constant 0 : index
    %c0_33 = arith.constant 0 : index
    %34 = vector.load %arg5[%c1_31, %c0_32, %c0_33] : memref<10x10x4xbf16, #tpu.memory_space<vmem>>, vector<8x8x4xbf16>
    %35 = vector.shape_cast %34 : vector<8x8x4xbf16> to vector<64x4xbf16>
    %c0_34 = arith.constant 0 : index
    %c12 = arith.constant 12 : index
    %36 = vector.load %arg6[%c0_34, %c12] : memref<64x36xbf16, #tpu.memory_space<vmem>>, vector<64x4xbf16>
    tpu.vector_store %arg6[%c0_34, %c12], %35 {strides = array<i32>} : memref<64x36xbf16, #tpu.memory_space<vmem>>, vector<64x4xbf16>,
    %c1_35 = arith.constant 1 : index
    %c1_36 = arith.constant 1 : index
    %c0_37 = arith.constant 0 : index
    %37 = vector.load %arg5[%c1_35, %c1_36, %c0_37] : memref<10x10x4xbf16, #tpu.memory_space<vmem>>, vector<8x8x4xbf16>
    %38 = vector.shape_cast %37 : vector<8x8x4xbf16> to vector<64x4xbf16>
    %c0_38 = arith.constant 0 : index
    %c16 = arith.constant 16 : index
    %39 = vector.load %arg6[%c0_38, %c16] : memref<64x36xbf16, #tpu.memory_space<vmem>>, vector<64x4xbf16>
    tpu.vector_store %arg6[%c0_38, %c16], %38 {strides = array<i32>} : memref<64x36xbf16, #tpu.memory_space<vmem>>, vector<64x4xbf16>,
    %c1_39 = arith.constant 1 : index
    %c2_40 = arith.constant 2 : index
    %c0_41 = arith.constant 0 : index
    %40 = vector.load %arg5[%c1_39, %c2_40, %c0_41] : memref<10x10x4xbf16, #tpu.memory_space<vmem>>, vector<8x8x4xbf16>
    %41 = vector.shape_cast %40 : vector<8x8x4xbf16> to vector<64x4xbf16>
    %c0_42 = arith.constant 0 : index
    %c20 = arith.constant 20 : index
    %42 = vector.load %arg6[%c0_42, %c20] : memref<64x36xbf16, #tpu.memory_space<vmem>>, vector<64x4xbf16>
    tpu.vector_store %arg6[%c0_42, %c20], %41 {strides = array<i32>} : memref<64x36xbf16, #tpu.memory_space<vmem>>, vector<64x4xbf16>,
    %c2_43 = arith.constant 2 : index
    %c0_44 = arith.constant 0 : index
    %c0_45 = arith.constant 0 : index
    %43 = vector.load %arg5[%c2_43, %c0_44, %c0_45] : memref<10x10x4xbf16, #tpu.memory_space<vmem>>, vector<8x8x4xbf16>
    %44 = vector.shape_cast %43 : vector<8x8x4xbf16> to vector<64x4xbf16>
    %c0_46 = arith.constant 0 : index
    %c24 = arith.constant 24 : index
    %45 = vector.load %arg6[%c0_46, %c24] : memref<64x36xbf16, #tpu.memory_space<vmem>>, vector<64x4xbf16>
    tpu.vector_store %arg6[%c0_46, %c24], %44 {strides = array<i32>} : memref<64x36xbf16, #tpu.memory_space<vmem>>, vector<64x4xbf16>,
    %c2_47 = arith.constant 2 : index
    %c1_48 = arith.constant 1 : index
    %c0_49 = arith.constant 0 : index
    %46 = vector.load %arg5[%c2_47, %c1_48, %c0_49] : memref<10x10x4xbf16, #tpu.memory_space<vmem>>, vector<8x8x4xbf16>
    %47 = vector.shape_cast %46 : vector<8x8x4xbf16> to vector<64x4xbf16>
    %c0_50 = arith.constant 0 : index
    %c28 = arith.constant 28 : index
    %48 = vector.load %arg6[%c0_50, %c28] : memref<64x36xbf16, #tpu.memory_space<vmem>>, vector<64x4xbf16>
    tpu.vector_store %arg6[%c0_50, %c28], %47 {strides = array<i32>} : memref<64x36xbf16, #tpu.memory_space<vmem>>, vector<64x4xbf16>,
    %c2_51 = arith.constant 2 : index
    %c2_52 = arith.constant 2 : index
    %c0_53 = arith.constant 0 : index
    %49 = vector.load %arg5[%c2_51, %c2_52, %c0_53] : memref<10x10x4xbf16, #tpu.memory_space<vmem>>, vector<8x8x4xbf16>
    %50 = vector.shape_cast %49 : vector<8x8x4xbf16> to vector<64x4xbf16>
    %c0_54 = arith.constant 0 : index
    %c32 = arith.constant 32 : index
    %51 = vector.load %arg6[%c0_54, %c32] : memref<64x36xbf16, #tpu.memory_space<vmem>>, vector<64x4xbf16>
    tpu.vector_store %arg6[%c0_54, %c32], %50 {strides = array<i32>} : memref<64x36xbf16, #tpu.memory_space<vmem>>, vector<64x4xbf16>,
    %c0_55 = arith.constant 0 : index
    %c0_56 = arith.constant 0 : index
    %52 = vector.load %arg6[%c0_55, %c0_56] : memref<64x36xbf16, #tpu.memory_space<vmem>>, vector<64x36xbf16>
    %c0_57 = arith.constant 0 : index
    %c0_58 = arith.constant 0 : index
    %53 = vector.load %arg2[%c0_57, %c0_58] : memref<36x128xbf16, #tpu.memory_space<vmem>>, vector<36x128xbf16>
    %cst_59 = arith.constant dense<0.000000e+00> : vector<64x128xf32>
    %54 = tpu.matmul %52, %53, %cst_59 {dimension_numbers = #tpu.dot_dimension_numbers<[1], [0], [0], [1], [0, 0, 1, 1], [], []>} : vector<64x36xbf16>, vector<36x128xbf16>, vector<64x128xf32> -> vector<64x128xf32>
    %55 = vector.shape_cast %54 : vector<64x128xf32> to vector<8x8x128xf32>
    %56 = arith.truncf %55 : vector<8x8x128xf32> to vector<8x8x128xbf16>
    %c0_60 = arith.constant 0 : index
    %c0_61 = arith.constant 0 : index
    %c0_62 = arith.constant 0 : index
    %c0_63 = arith.constant 0 : index
    %57 = vector.load %arg3[%c0_60, %c0_61, %c0_62, %c0_63] : memref<1x8x8x128xbf16, #tpu.memory_space<vmem>>, vector<1x8x8x128xbf16>
    %58 = vector.shape_cast %57 : vector<1x8x8x128xbf16> to vector<8x8x128xbf16>
    %59 = vector.shape_cast %56 : vector<8x8x128xbf16> to vector<1x8x8x128xbf16>
    tpu.vector_store %arg3[%c0_60, %c0_61, %c0_62, %c0_63], %59 {strides = array<i32>} : memref<1x8x8x128xbf16, #tpu.memory_space<vmem>>, vector<1x8x8x128xbf16>,
    %cst_64 = arith.constant dense<0.000000e+00> : vector<128xf32>
    %60 = vector.multi_reduction <add>, %54, %cst_64 [0] : vector<64x128xf32> to vector<128xf32>
    %61 = vector.shape_cast %60 : vector<128xf32> to vector<1x128xf32>
    %c0_65 = arith.constant 0 : index
    %c0_66 = arith.constant 0 : index
    %c0_67 = arith.constant 0 : index
    %62 = vector.load %arg4[%c0_65, %c0_66, %c0_67] : memref<1x2x128xf32, #tpu.memory_space<vmem>>, vector<1x1x128xf32>
    %63 = vector.shape_cast %62 : vector<1x1x128xf32> to vector<1x128xf32>
    %64 = vector.shape_cast %61 : vector<1x128xf32> to vector<1x1x128xf32>
    tpu.vector_store %arg4[%c0_65, %c0_66, %c0_67], %64 {strides = array<i32>} : memref<1x2x128xf32, #tpu.memory_space<vmem>>, vector<1x1x128xf32>,
    %65 = arith.mulf %54, %54 : vector<64x128xf32>
    %cst_68 = arith.constant dense<0.000000e+00> : vector<128xf32>
    %66 = vector.multi_reduction <add>, %65, %cst_68 [0] : vector<64x128xf32> to vector<128xf32>
    %67 = vector.shape_cast %66 : vector<128xf32> to vector<1x128xf32>
    %c0_69 = arith.constant 0 : index
    %c1_70 = arith.constant 1 : index
    %c0_71 = arith.constant 0 : index
    %68 = vector.load %arg4[%c0_69, %c1_70, %c0_71] : memref<1x2x128xf32, #tpu.memory_space<vmem>>, vector<1x1x128xf32>
    %69 = vector.shape_cast %68 : vector<1x1x128xf32> to vector<1x128xf32>
    %70 = vector.shape_cast %67 : vector<1x128xf32> to vector<1x1x128xf32>
    tpu.vector_store %arg4[%c0_69, %c1_70, %c0_71], %70 {strides = array<i32>} : memref<1x2x128xf32, #tpu.memory_space<vmem>>, vector<1x1x128xf32>,
    return
  }
  func.func @transform_0(%arg0: i32) -> (i32, i32, i32, i32) {
    %c0_i32 = arith.constant 0 : i32
    %c0_i32_0 = arith.constant 0 : i32
    %c0_i32_1 = arith.constant 0 : i32
    %c0_i32_2 = arith.constant 0 : i32
    return %arg0, %c0_i32, %c0_i32_0, %c0_i32_1 : i32, i32, i32, i32
  }
  func.func @transform_1(%arg0: i32) -> (i32, i32) {
    %c0_i32 = arith.constant 0 : i32
    %c0_i32_0 = arith.constant 0 : i32
    %c0_i32_1 = arith.constant 0 : i32
    return %c0_i32, %c0_i32_0 : i32, i32
  }
  func.func @transform_2(%arg0: i32) -> (i32, i32, i32, i32) {
    %c0_i32 = arith.constant 0 : i32
    %c0_i32_0 = arith.constant 0 : i32
    %c0_i32_1 = arith.constant 0 : i32
    %c0_i32_2 = arith.constant 0 : i32
    return %arg0, %c0_i32, %c0_i32_0, %c0_i32_1 : i32, i32, i32, i32
  }
  func.func @transform_3(%arg0: i32) -> (i32, i32, i32) {
    %c0_i32 = arith.constant 0 : i32
    %c0_i32_0 = arith.constant 0 : i32
    %c0_i32_1 = arith.constant 0 : i32
    return %arg0, %c0_i32, %c0_i32_0 : i32, i32, i32
  }
}

module attributes {stable_mosaic.version = 11 : i64} {
  func.func @_bn_relu_conv_kernel(%arg0: i32, %arg1: memref<1x8x8x128xbf16, #tpu.memory_space<vmem>>, %arg2: memref<1x128xf32, #tpu.memory_space<vmem>>, %arg3: memref<1x128xf32, #tpu.memory_space<vmem>>, %arg4: memref<1152x128xbf16, #tpu.memory_space<vmem>>, %arg5: memref<1x8x8x128xbf16, #tpu.memory_space<vmem>>, %arg6: memref<1x2x128xf32, #tpu.memory_space<vmem>>, %arg7: memref<10x10x128xbf16, #tpu.memory_space<vmem>>, %arg8: memref<64x1152xbf16, #tpu.memory_space<vmem>>) attributes {dimension_semantics = [#tpu.dimension_semantics<parallel>], iteration_bounds = array<i64: 2>, scalar_prefetch = 0 : i64, scratch_operands = 2 : i64, tpu.core_type = #tpu.core_type<tc>, window_params = [{transform_indices = @transform_0, window_bounds = array<i64: 1, 8, 8, 128>}, {pipeline_mode = #tpu.pipeline_mode<synchronous>, transform_indices = @transform_1, window_bounds = array<i64: 1, 128>}, {pipeline_mode = #tpu.pipeline_mode<synchronous>, transform_indices = @transform_2, window_bounds = array<i64: 1, 128>}, {pipeline_mode = #tpu.pipeline_mode<synchronous>, transform_indices = @transform_3, window_bounds = array<i64: 1152, 128>}, {transform_indices = @transform_4, window_bounds = array<i64: 1, 8, 8, 128>}, {transform_indices = @transform_5, window_bounds = array<i64: 1, 2, 128>}]} {
    %c0 = arith.constant 0 : index
    %c0_0 = arith.constant 0 : index
    %c0_1 = arith.constant 0 : index
    %c0_2 = arith.constant 0 : index
    %0 = vector.load %arg1[%c0, %c0_0, %c0_1, %c0_2] : memref<1x8x8x128xbf16, #tpu.memory_space<vmem>>, vector<1x8x8x128xbf16>
    %1 = vector.shape_cast %0 : vector<1x8x8x128xbf16> to vector<8x8x128xbf16>
    %2 = arith.extf %1 : vector<8x8x128xbf16> to vector<8x8x128xf32>
    %c0_3 = arith.constant 0 : index
    %c0_4 = arith.constant 0 : index
    %3 = vector.load %arg2[%c0_3, %c0_4] : memref<1x128xf32, #tpu.memory_space<vmem>>, vector<1x128xf32>
    %4 = vector.shape_cast %3 : vector<1x128xf32> to vector<1x1x128xf32>
    %5 = vector.broadcast %4 : vector<1x1x128xf32> to vector<8x8x128xf32>
    %6 = arith.mulf %2, %5 : vector<8x8x128xf32>
    %c0_5 = arith.constant 0 : index
    %c0_6 = arith.constant 0 : index
    %7 = vector.load %arg3[%c0_5, %c0_6] : memref<1x128xf32, #tpu.memory_space<vmem>>, vector<1x128xf32>
    %8 = vector.shape_cast %7 : vector<1x128xf32> to vector<1x1x128xf32>
    %9 = vector.broadcast %8 : vector<1x1x128xf32> to vector<8x8x128xf32>
    %10 = arith.addf %6, %9 : vector<8x8x128xf32>
    %cst = arith.constant 0.000000e+00 : f32
    %11 = vector.broadcast %cst : f32 to vector<8x8x128xf32>
    %12 = arith.maximumf %10, %11 : vector<8x8x128xf32>
    %cst_7 = arith.constant 0.000000e+00 : bf16
    %13 = vector.broadcast %cst_7 : bf16 to vector<1x10x128xbf16>
    %c0_8 = arith.constant 0 : index
    %c0_9 = arith.constant 0 : index
    %c0_10 = arith.constant 0 : index
    %14 = vector.load %arg7[%c0_8, %c0_9, %c0_10] : memref<10x10x128xbf16, #tpu.memory_space<vmem>>, vector<1x10x128xbf16>
    tpu.vector_store %arg7[%c0_8, %c0_9, %c0_10], %13 {strides = array<i32>} : memref<10x10x128xbf16, #tpu.memory_space<vmem>>, vector<1x10x128xbf16>,
    %cst_11 = arith.constant 0.000000e+00 : bf16
    %15 = vector.broadcast %cst_11 : bf16 to vector<1x10x128xbf16>
    %c9 = arith.constant 9 : index
    %c0_12 = arith.constant 0 : index
    %c0_13 = arith.constant 0 : index
    %16 = vector.load %arg7[%c9, %c0_12, %c0_13] : memref<10x10x128xbf16, #tpu.memory_space<vmem>>, vector<1x10x128xbf16>
    tpu.vector_store %arg7[%c9, %c0_12, %c0_13], %15 {strides = array<i32>} : memref<10x10x128xbf16, #tpu.memory_space<vmem>>, vector<1x10x128xbf16>,
    %cst_14 = arith.constant 0.000000e+00 : bf16
    %17 = vector.broadcast %cst_14 : bf16 to vector<10x1x128xbf16>
    %c0_15 = arith.constant 0 : index
    %c0_16 = arith.constant 0 : index
    %c0_17 = arith.constant 0 : index
    %18 = vector.load %arg7[%c0_15, %c0_16, %c0_17] : memref<10x10x128xbf16, #tpu.memory_space<vmem>>, vector<10x1x128xbf16>
    tpu.vector_store %arg7[%c0_15, %c0_16, %c0_17], %17 {strides = array<i32>} : memref<10x10x128xbf16, #tpu.memory_space<vmem>>, vector<10x1x128xbf16>,
    %cst_18 = arith.constant 0.000000e+00 : bf16
    %19 = vector.broadcast %cst_18 : bf16 to vector<10x1x128xbf16>
    %c0_19 = arith.constant 0 : index
    %c9_20 = arith.constant 9 : index
    %c0_21 = arith.constant 0 : index
    %20 = vector.load %arg7[%c0_19, %c9_20, %c0_21] : memref<10x10x128xbf16, #tpu.memory_space<vmem>>, vector<10x1x128xbf16>
    tpu.vector_store %arg7[%c0_19, %c9_20, %c0_21], %19 {strides = array<i32>} : memref<10x10x128xbf16, #tpu.memory_space<vmem>>, vector<10x1x128xbf16>,
    %21 = arith.truncf %12 : vector<8x8x128xf32> to vector<8x8x128xbf16>
    %c1 = arith.constant 1 : index
    %c1_22 = arith.constant 1 : index
    %c0_23 = arith.constant 0 : index
    %22 = vector.load %arg7[%c1, %c1_22, %c0_23] : memref<10x10x128xbf16, #tpu.memory_space<vmem>>, vector<8x8x128xbf16>
    tpu.vector_store %arg7[%c1, %c1_22, %c0_23], %21 {strides = array<i32>} : memref<10x10x128xbf16, #tpu.memory_space<vmem>>, vector<8x8x128xbf16>,
    %c0_24 = arith.constant 0 : index
    %c0_25 = arith.constant 0 : index
    %c0_26 = arith.constant 0 : index
    %23 = vector.load %arg7[%c0_24, %c0_25, %c0_26] : memref<10x10x128xbf16, #tpu.memory_space<vmem>>, vector<8x8x128xbf16>
    %24 = vector.shape_cast %23 : vector<8x8x128xbf16> to vector<64x128xbf16>
    %c0_27 = arith.constant 0 : index
    %c0_28 = arith.constant 0 : index
    %25 = vector.load %arg8[%c0_27, %c0_28] : memref<64x1152xbf16, #tpu.memory_space<vmem>>, vector<64x128xbf16>
    tpu.vector_store %arg8[%c0_27, %c0_28], %24 {strides = array<i32>} : memref<64x1152xbf16, #tpu.memory_space<vmem>>, vector<64x128xbf16>,
    %c0_29 = arith.constant 0 : index
    %c1_30 = arith.constant 1 : index
    %c0_31 = arith.constant 0 : index
    %26 = vector.load %arg7[%c0_29, %c1_30, %c0_31] : memref<10x10x128xbf16, #tpu.memory_space<vmem>>, vector<8x8x128xbf16>
    %27 = vector.shape_cast %26 : vector<8x8x128xbf16> to vector<64x128xbf16>
    %c0_32 = arith.constant 0 : index
    %c128 = arith.constant 128 : index
    %28 = vector.load %arg8[%c0_32, %c128] : memref<64x1152xbf16, #tpu.memory_space<vmem>>, vector<64x128xbf16>
    tpu.vector_store %arg8[%c0_32, %c128], %27 {strides = array<i32>} : memref<64x1152xbf16, #tpu.memory_space<vmem>>, vector<64x128xbf16>,
    %c0_33 = arith.constant 0 : index
    %c2 = arith.constant 2 : index
    %c0_34 = arith.constant 0 : index
    %29 = vector.load %arg7[%c0_33, %c2, %c0_34] : memref<10x10x128xbf16, #tpu.memory_space<vmem>>, vector<8x8x128xbf16>
    %30 = vector.shape_cast %29 : vector<8x8x128xbf16> to vector<64x128xbf16>
    %c0_35 = arith.constant 0 : index
    %c256 = arith.constant 256 : index
    %31 = vector.load %arg8[%c0_35, %c256] : memref<64x1152xbf16, #tpu.memory_space<vmem>>, vector<64x128xbf16>
    tpu.vector_store %arg8[%c0_35, %c256], %30 {strides = array<i32>} : memref<64x1152xbf16, #tpu.memory_space<vmem>>, vector<64x128xbf16>,
    %c1_36 = arith.constant 1 : index
    %c0_37 = arith.constant 0 : index
    %c0_38 = arith.constant 0 : index
    %32 = vector.load %arg7[%c1_36, %c0_37, %c0_38] : memref<10x10x128xbf16, #tpu.memory_space<vmem>>, vector<8x8x128xbf16>
    %33 = vector.shape_cast %32 : vector<8x8x128xbf16> to vector<64x128xbf16>
    %c0_39 = arith.constant 0 : index
    %c384 = arith.constant 384 : index
    %34 = vector.load %arg8[%c0_39, %c384] : memref<64x1152xbf16, #tpu.memory_space<vmem>>, vector<64x128xbf16>
    tpu.vector_store %arg8[%c0_39, %c384], %33 {strides = array<i32>} : memref<64x1152xbf16, #tpu.memory_space<vmem>>, vector<64x128xbf16>,
    %c1_40 = arith.constant 1 : index
    %c1_41 = arith.constant 1 : index
    %c0_42 = arith.constant 0 : index
    %35 = vector.load %arg7[%c1_40, %c1_41, %c0_42] : memref<10x10x128xbf16, #tpu.memory_space<vmem>>, vector<8x8x128xbf16>
    %36 = vector.shape_cast %35 : vector<8x8x128xbf16> to vector<64x128xbf16>
    %c0_43 = arith.constant 0 : index
    %c512 = arith.constant 512 : index
    %37 = vector.load %arg8[%c0_43, %c512] : memref<64x1152xbf16, #tpu.memory_space<vmem>>, vector<64x128xbf16>
    tpu.vector_store %arg8[%c0_43, %c512], %36 {strides = array<i32>} : memref<64x1152xbf16, #tpu.memory_space<vmem>>, vector<64x128xbf16>,
    %c1_44 = arith.constant 1 : index
    %c2_45 = arith.constant 2 : index
    %c0_46 = arith.constant 0 : index
    %38 = vector.load %arg7[%c1_44, %c2_45, %c0_46] : memref<10x10x128xbf16, #tpu.memory_space<vmem>>, vector<8x8x128xbf16>
    %39 = vector.shape_cast %38 : vector<8x8x128xbf16> to vector<64x128xbf16>
    %c0_47 = arith.constant 0 : index
    %c640 = arith.constant 640 : index
    %40 = vector.load %arg8[%c0_47, %c640] : memref<64x1152xbf16, #tpu.memory_space<vmem>>, vector<64x128xbf16>
    tpu.vector_store %arg8[%c0_47, %c640], %39 {strides = array<i32>} : memref<64x1152xbf16, #tpu.memory_space<vmem>>, vector<64x128xbf16>,
    %c2_48 = arith.constant 2 : index
    %c0_49 = arith.constant 0 : index
    %c0_50 = arith.constant 0 : index
    %41 = vector.load %arg7[%c2_48, %c0_49, %c0_50] : memref<10x10x128xbf16, #tpu.memory_space<vmem>>, vector<8x8x128xbf16>
    %42 = vector.shape_cast %41 : vector<8x8x128xbf16> to vector<64x128xbf16>
    %c0_51 = arith.constant 0 : index
    %c768 = arith.constant 768 : index
    %43 = vector.load %arg8[%c0_51, %c768] : memref<64x1152xbf16, #tpu.memory_space<vmem>>, vector<64x128xbf16>
    tpu.vector_store %arg8[%c0_51, %c768], %42 {strides = array<i32>} : memref<64x1152xbf16, #tpu.memory_space<vmem>>, vector<64x128xbf16>,
    %c2_52 = arith.constant 2 : index
    %c1_53 = arith.constant 1 : index
    %c0_54 = arith.constant 0 : index
    %44 = vector.load %arg7[%c2_52, %c1_53, %c0_54] : memref<10x10x128xbf16, #tpu.memory_space<vmem>>, vector<8x8x128xbf16>
    %45 = vector.shape_cast %44 : vector<8x8x128xbf16> to vector<64x128xbf16>
    %c0_55 = arith.constant 0 : index
    %c896 = arith.constant 896 : index
    %46 = vector.load %arg8[%c0_55, %c896] : memref<64x1152xbf16, #tpu.memory_space<vmem>>, vector<64x128xbf16>
    tpu.vector_store %arg8[%c0_55, %c896], %45 {strides = array<i32>} : memref<64x1152xbf16, #tpu.memory_space<vmem>>, vector<64x128xbf16>,
    %c2_56 = arith.constant 2 : index
    %c2_57 = arith.constant 2 : index
    %c0_58 = arith.constant 0 : index
    %47 = vector.load %arg7[%c2_56, %c2_57, %c0_58] : memref<10x10x128xbf16, #tpu.memory_space<vmem>>, vector<8x8x128xbf16>
    %48 = vector.shape_cast %47 : vector<8x8x128xbf16> to vector<64x128xbf16>
    %c0_59 = arith.constant 0 : index
    %c1024 = arith.constant 1024 : index
    %49 = vector.load %arg8[%c0_59, %c1024] : memref<64x1152xbf16, #tpu.memory_space<vmem>>, vector<64x128xbf16>
    tpu.vector_store %arg8[%c0_59, %c1024], %48 {strides = array<i32>} : memref<64x1152xbf16, #tpu.memory_space<vmem>>, vector<64x128xbf16>,
    %c0_60 = arith.constant 0 : index
    %c0_61 = arith.constant 0 : index
    %50 = vector.load %arg8[%c0_60, %c0_61] : memref<64x1152xbf16, #tpu.memory_space<vmem>>, vector<64x1152xbf16>
    %c0_62 = arith.constant 0 : index
    %c0_63 = arith.constant 0 : index
    %51 = vector.load %arg4[%c0_62, %c0_63] : memref<1152x128xbf16, #tpu.memory_space<vmem>>, vector<1152x128xbf16>
    %cst_64 = arith.constant dense<0.000000e+00> : vector<64x128xf32>
    %52 = tpu.matmul %50, %51, %cst_64 {dimension_numbers = #tpu.dot_dimension_numbers<[1], [0], [0], [1], [0, 0, 1, 1], [], []>} : vector<64x1152xbf16>, vector<1152x128xbf16>, vector<64x128xf32> -> vector<64x128xf32>
    %53 = vector.shape_cast %52 : vector<64x128xf32> to vector<8x8x128xf32>
    %54 = arith.truncf %53 : vector<8x8x128xf32> to vector<8x8x128xbf16>
    %c0_65 = arith.constant 0 : index
    %c0_66 = arith.constant 0 : index
    %c0_67 = arith.constant 0 : index
    %c0_68 = arith.constant 0 : index
    %55 = vector.load %arg5[%c0_65, %c0_66, %c0_67, %c0_68] : memref<1x8x8x128xbf16, #tpu.memory_space<vmem>>, vector<1x8x8x128xbf16>
    %56 = vector.shape_cast %55 : vector<1x8x8x128xbf16> to vector<8x8x128xbf16>
    %57 = vector.shape_cast %54 : vector<8x8x128xbf16> to vector<1x8x8x128xbf16>
    tpu.vector_store %arg5[%c0_65, %c0_66, %c0_67, %c0_68], %57 {strides = array<i32>} : memref<1x8x8x128xbf16, #tpu.memory_space<vmem>>, vector<1x8x8x128xbf16>,
    %cst_69 = arith.constant dense<0.000000e+00> : vector<128xf32>
    %58 = vector.multi_reduction <add>, %52, %cst_69 [0] : vector<64x128xf32> to vector<128xf32>
    %59 = vector.shape_cast %58 : vector<128xf32> to vector<1x128xf32>
    %c0_70 = arith.constant 0 : index
    %c0_71 = arith.constant 0 : index
    %c0_72 = arith.constant 0 : index
    %60 = vector.load %arg6[%c0_70, %c0_71, %c0_72] : memref<1x2x128xf32, #tpu.memory_space<vmem>>, vector<1x1x128xf32>
    %61 = vector.shape_cast %60 : vector<1x1x128xf32> to vector<1x128xf32>
    %62 = vector.shape_cast %59 : vector<1x128xf32> to vector<1x1x128xf32>
    tpu.vector_store %arg6[%c0_70, %c0_71, %c0_72], %62 {strides = array<i32>} : memref<1x2x128xf32, #tpu.memory_space<vmem>>, vector<1x1x128xf32>,
    %63 = arith.mulf %52, %52 : vector<64x128xf32>
    %cst_73 = arith.constant dense<0.000000e+00> : vector<128xf32>
    %64 = vector.multi_reduction <add>, %63, %cst_73 [0] : vector<64x128xf32> to vector<128xf32>
    %65 = vector.shape_cast %64 : vector<128xf32> to vector<1x128xf32>
    %c0_74 = arith.constant 0 : index
    %c1_75 = arith.constant 1 : index
    %c0_76 = arith.constant 0 : index
    %66 = vector.load %arg6[%c0_74, %c1_75, %c0_76] : memref<1x2x128xf32, #tpu.memory_space<vmem>>, vector<1x1x128xf32>
    %67 = vector.shape_cast %66 : vector<1x1x128xf32> to vector<1x128xf32>
    %68 = vector.shape_cast %65 : vector<1x128xf32> to vector<1x1x128xf32>
    tpu.vector_store %arg6[%c0_74, %c1_75, %c0_76], %68 {strides = array<i32>} : memref<1x2x128xf32, #tpu.memory_space<vmem>>, vector<1x1x128xf32>,
    return
  }
  func.func @transform_0(%arg0: i32) -> (i32, i32, i32, i32) {
    %c0_i32 = arith.constant 0 : i32
    %c0_i32_0 = arith.constant 0 : i32
    %c0_i32_1 = arith.constant 0 : i32
    %c0_i32_2 = arith.constant 0 : i32
    return %arg0, %c0_i32, %c0_i32_0, %c0_i32_1 : i32, i32, i32, i32
  }
  func.func @transform_1(%arg0: i32) -> (i32, i32) {
    %c0_i32 = arith.constant 0 : i32
    %c0_i32_0 = arith.constant 0 : i32
    %c0_i32_1 = arith.constant 0 : i32
    return %c0_i32, %c0_i32_0 : i32, i32
  }
  func.func @transform_2(%arg0: i32) -> (i32, i32) {
    %c0_i32 = arith.constant 0 : i32
    %c0_i32_0 = arith.constant 0 : i32
    %c0_i32_1 = arith.constant 0 : i32
    return %c0_i32, %c0_i32_0 : i32, i32
  }
  func.func @transform_3(%arg0: i32) -> (i32, i32) {
    %c0_i32 = arith.constant 0 : i32
    %c0_i32_0 = arith.constant 0 : i32
    %c0_i32_1 = arith.constant 0 : i32
    return %c0_i32, %c0_i32_0 : i32, i32
  }
  func.func @transform_4(%arg0: i32) -> (i32, i32, i32, i32) {
    %c0_i32 = arith.constant 0 : i32
    %c0_i32_0 = arith.constant 0 : i32
    %c0_i32_1 = arith.constant 0 : i32
    %c0_i32_2 = arith.constant 0 : i32
    return %arg0, %c0_i32, %c0_i32_0, %c0_i32_1 : i32, i32, i32, i32
  }
  func.func @transform_5(%arg0: i32) -> (i32, i32, i32) {
    %c0_i32 = arith.constant 0 : i32
    %c0_i32_0 = arith.constant 0 : i32
    %c0_i32_1 = arith.constant 0 : i32
    return %arg0, %c0_i32, %c0_i32_0 : i32, i32, i32
  }
}

module attributes {stable_mosaic.version = 11 : i64} {
  func.func @_bn_relu_crop_kernel(%arg0: i32, %arg1: memref<1x8x8x128xbf16, #tpu.memory_space<vmem>>, %arg2: memref<1x8xf32, #tpu.memory_space<vmem>>, %arg3: memref<1x8xf32, #tpu.memory_space<vmem>>, %arg4: memref<1x8x8x8xf32, #tpu.memory_space<vmem>>) attributes {dimension_semantics = [#tpu.dimension_semantics<parallel>], iteration_bounds = array<i64: 2>, scalar_prefetch = 0 : i64, scratch_operands = 0 : i64, tpu.core_type = #tpu.core_type<tc>, window_params = [{transform_indices = @transform_0, window_bounds = array<i64: 1, 8, 8, 128>}, {pipeline_mode = #tpu.pipeline_mode<synchronous>, transform_indices = @transform_1, window_bounds = array<i64: 1, 8>}, {pipeline_mode = #tpu.pipeline_mode<synchronous>, transform_indices = @transform_2, window_bounds = array<i64: 1, 8>}, {transform_indices = @transform_3, window_bounds = array<i64: 1, 8, 8, 8>}]} {
    %c0 = arith.constant 0 : index
    %c0_0 = arith.constant 0 : index
    %c0_1 = arith.constant 0 : index
    %c0_2 = arith.constant 0 : index
    %0 = vector.load %arg1[%c0, %c0_0, %c0_1, %c0_2] : memref<1x8x8x128xbf16, #tpu.memory_space<vmem>>, vector<1x8x8x128xbf16>
    %1 = vector.shape_cast %0 : vector<1x8x8x128xbf16> to vector<8x8x128xbf16>
    %2 = vector.extract_strided_slice %1 {offsets = [0, 0, 0], sizes = [8, 8, 8], strides = [1, 1, 1]} : vector<8x8x128xbf16> to vector<8x8x8xbf16>
    %3 = arith.extf %2 : vector<8x8x8xbf16> to vector<8x8x8xf32>
    %c0_3 = arith.constant 0 : index
    %c0_4 = arith.constant 0 : index
    %4 = vector.load %arg2[%c0_3, %c0_4] : memref<1x8xf32, #tpu.memory_space<vmem>>, vector<1x8xf32>
    %5 = vector.shape_cast %4 : vector<1x8xf32> to vector<1x1x8xf32>
    %6 = vector.broadcast %5 : vector<1x1x8xf32> to vector<8x8x8xf32>
    %7 = arith.mulf %3, %6 : vector<8x8x8xf32>
    %c0_5 = arith.constant 0 : index
    %c0_6 = arith.constant 0 : index
    %8 = vector.load %arg3[%c0_5, %c0_6] : memref<1x8xf32, #tpu.memory_space<vmem>>, vector<1x8xf32>
    %9 = vector.shape_cast %8 : vector<1x8xf32> to vector<1x1x8xf32>
    %10 = vector.broadcast %9 : vector<1x1x8xf32> to vector<8x8x8xf32>
    %11 = arith.addf %7, %10 : vector<8x8x8xf32>
    %cst = arith.constant 0.000000e+00 : f32
    %12 = vector.broadcast %cst : f32 to vector<8x8x8xf32>
    %13 = arith.maximumf %11, %12 : vector<8x8x8xf32>
    %c0_7 = arith.constant 0 : index
    %c0_8 = arith.constant 0 : index
    %c0_9 = arith.constant 0 : index
    %c0_10 = arith.constant 0 : index
    %14 = vector.load %arg4[%c0_7, %c0_8, %c0_9, %c0_10] : memref<1x8x8x8xf32, #tpu.memory_space<vmem>>, vector<1x8x8x8xf32>
    %15 = vector.shape_cast %14 : vector<1x8x8x8xf32> to vector<8x8x8xf32>
    %16 = vector.shape_cast %13 : vector<8x8x8xf32> to vector<1x8x8x8xf32>
    tpu.vector_store %arg4[%c0_7, %c0_8, %c0_9, %c0_10], %16 {strides = array<i32>} : memref<1x8x8x8xf32, #tpu.memory_space<vmem>>, vector<1x8x8x8xf32>,
    return
  }
  func.func @transform_0(%arg0: i32) -> (i32, i32, i32, i32) {
    %c0_i32 = arith.constant 0 : i32
    %c0_i32_0 = arith.constant 0 : i32
    %c0_i32_1 = arith.constant 0 : i32
    %c0_i32_2 = arith.constant 0 : i32
    return %arg0, %c0_i32, %c0_i32_0, %c0_i32_1 : i32, i32, i32, i32
  }
  func.func @transform_1(%arg0: i32) -> (i32, i32) {
    %c0_i32 = arith.constant 0 : i32
    %c0_i32_0 = arith.constant 0 : i32
    %c0_i32_1 = arith.constant 0 : i32
    return %c0_i32, %c0_i32_0 : i32, i32
  }
  func.func @transform_2(%arg0: i32) -> (i32, i32) {
    %c0_i32 = arith.constant 0 : i32
    %c0_i32_0 = arith.constant 0 : i32
    %c0_i32_1 = arith.constant 0 : i32
    return %c0_i32, %c0_i32_0 : i32, i32
  }
  func.func @transform_3(%arg0: i32) -> (i32, i32, i32, i32) {
    %c0_i32 = arith.constant 0 : i32
    %c0_i32_0 = arith.constant 0 : i32
    %c0_i32_1 = arith.constant 0 : i32
    %c0_i32_2 = arith.constant 0 : i32
    return %arg0, %c0_i32, %c0_i32_0, %c0_i32_1 : i32, i32, i32, i32
  }
}

</mosaic_0001>

<bundles_post_ra>
// kernel: down_forward.5
= control target key start
LH: loop header
LB: loop body
LE: loop exit
PB: predicated region body
PF: predicated region fallthrough
CT: control target
= control target key end

     0   :  { %s359_s12 = smov 0   ;;  %s394_s0 = inlined_call_operand.vmem [shape: bf16[2,8,8,128], index: 0, kind: input, shape index: {}]   ;;  %s395_s1 = inlined_call_operand.vmem [shape: f32[1,8], index: 1, kind: input, shape index: {}]   ;;  %s396_s2 = inlined_call_operand.vmem [shape: f32[1,8], index: 2, kind: input, shape index: {}]   ;;  %s397_s3 = inlined_call_operand.vmem [shape: f32[2,8,8,8], index: 3, kind: output, shape index: {}]  }
   0x1 LB: > { %s289_s13 = sadd.s32 4294967295, %s337_s12   ;;  %p293_p0 = scmp.ge.s32.totalorder %s337_s12, 1  ;;  %s337_s12 = sphi %s359_s12, %s13_s12  }
   0x2   : > { %p137_p1 = scmp.lt.s32.totalorder %s337_s12, 3 }
   0x4   : > { %p138_p2 = pnand %p293_p0, %p137_p1 }
   0x5   : > { %p161_p3 = scmp.lt.s32.totalorder (!%p138_p2), %s289_s13, 1  ;;  %v298_v0 = vld [vmem:[%s395_s1] ss:$0 sm:$0xff] (!%p138_p2)  ;;  %vm225_vm0 = vcmask (!%p138_p2), 64512  }
   0x6   : > { %141 = sbr.rel (%p138_p2) target bundleno = 29 (0x1d), region = 32  ;;  %v299_v9 = vld [vmem:[%s396_s2] ss:$0 sm:$0xff] (!%p138_p2) }
   0xd   : > { %s399_s13 = smov (!%p161_p3, %s289_s13), 1 }
   0xe   : > { %s302_s14 = sshll.u32 %s399_s13, 5  ;;  %s303_s22 = sshll.u32 %s399_s13, 6 }
   0xf   : > { %s165_s17 = scalar_lea.vmem %s394_s0, %s302_s14  ;;  %s170_s25 = scalar_lea.vmem %s397_s3, %s303_s22 }
  0x10   : > { %v305_v1 = vld [vmem:[%s165_s17] sm:$0xff]   ;;  %v320_v2 = vld [vmem:[%s165_s17 + $0x8] sm:$0xff]   ;;  %v321_v3 = vld [vmem:[%s165_s17 + $0x10] sm:$0xff]  }
  0x11   : > { %v306_v4 = vunpack.c.l.bf16 %v305_v1  ;;  %v307_v5 = vunpack.c.h.bf16 %v305_v1  ;;  %v310_v6 = vunpack.c.l.bf16 %v320_v2  ;;  %v311_v7 = vunpack.c.h.bf16 %v320_v2  ;;  %v322_v8 = vld [vmem:[%s165_s17 + $0x18] sm:$0xff]  }
  0x12   : > { %v314_v10 = vunpack.c.l.bf16 %v321_v3  ;;  %v315_v11 = vunpack.c.h.bf16 %v321_v3  ;;  %v318_v12 = vunpack.c.l.bf16 %v322_v8  ;;  %v319_v13 = vunpack.c.h.bf16 %v322_v8 }
  0x13   : > { %v194_v14 = vmul.f32 %v306_v4, %v298_v0  ;;  %v195_v15 = vmul.f32 %v307_v5, %v298_v0  ;;  %v196_v16 = vmul.f32 %v310_v6, %v298_v0  ;;  %v197_v17 = vmul.f32 %v311_v7, %v298_v0 }
  0x14   : > { %v198_v18 = vmul.f32 %v314_v10, %v298_v0  ;;  %v199_v19 = vmul.f32 %v315_v11, %v298_v0  ;;  %v200_v20 = vmul.f32 %v318_v12, %v298_v0  ;;  %v201_v21 = vmul.f32 %v319_v13, %v298_v0 }
  0x15   : > { %v209_v22 = vadd.f32 %v299_v9, %v194_v14  ;;  %v210_v23 = vadd.f32 %v299_v9, %v195_v15  ;;  %v211_v24 = vadd.f32 %v299_v9, %v196_v16  ;;  %v212_v25 = vadd.f32 %v299_v9, %v197_v17 }
  0x16   : > { %v213_v26 = vadd.f32 %v299_v9, %v198_v18  ;;  %v214_v27 = vadd.f32 %v299_v9, %v199_v19  ;;  %v215_v28 = vadd.f32 %v299_v9, %v200_v20  ;;  %v216_v29 = vadd.f32 %v299_v9, %v201_v21 }
  0x17   : > { %v217_v30 = vmax.f32 %v209_v22, 0.0  ;;  %v218_v31 = vmax.f32 %v210_v23, 0.0  ;;  %v219_v32 = vmax.f32 %v211_v24, 0.0  ;;  %v220_v33 = vmax.f32 %v212_v25, 0.0 }
  0x18   : > { %v221_v34 = vmax.f32 %v213_v26, 0.0  ;;  %v222_v35 = vmax.f32 %v214_v27, 0.0  ;;  %v223_v36 = vmax.f32 %v215_v28, 0.0  ;;  %v224_v37 = vmax.f32 %v216_v29, 0.0 }
  0x19   : > { %226 = vst.msk [vmem:[%s170_s25] sm:$0xff] %vm225_vm0, %v217_v30  ;;  %227 = vst.msk [vmem:[%s170_s25 + $0x8] sm:$0xff] %vm225_vm0, %v218_v31 }
  0x1a   : > { %228 = vst.msk [vmem:[%s170_s25 + $0x10] sm:$0xff] %vm225_vm0, %v219_v32  ;;  %229 = vst.msk [vmem:[%s170_s25 + $0x18] sm:$0xff] %vm225_vm0, %v220_v33 }
  0x1b   : > { %230 = vst.msk [vmem:[%s170_s25 + $0x20] sm:$0xff] %vm225_vm0, %v221_v34  ;;  %231 = vst.msk [vmem:[%s170_s25 + $0x28] sm:$0xff] %vm225_vm0, %v222_v35 }
  0x1c   : > { %232 = vst.msk [vmem:[%s170_s25 + $0x30] sm:$0xff] %vm225_vm0, %v223_v36  ;;  %233 = vst.msk [vmem:[%s170_s25 + $0x38] sm:$0xff] %vm225_vm0, %v224_v37 }
  0x1d PF: > { %s13_s12 = sadd.s32 1, %s337_s12  }
  0x1e   : > { %p10_p4 = scmp.ge.s32.totalorder %s13_s12, 4  }
  0x20   :  { %12 = sbr.rel (!%p10_p4) target bundleno = 1 (0x1), region = 62 }

// kernel: down_forward.3
= control target key start
LH: loop header
LB: loop body
LE: loop exit
PB: predicated region body
PF: predicated region fallthrough
CT: control target
= control target key end

     0   :  { %s3716_s12 = smov 0   ;;  %s4515_s0 = inlined_call_operand.vmem [shape: f32[2,16,16,4], index: 0, kind: input, shape index: {}]   ;;  %s4516_s1 = inlined_call_operand.vmem [shape: bf16[36,128], index: 1, kind: input, shape index: {}]   ;;  %s4517_s2 = inlined_call_operand.vmem [shape: bf16[2,8,8,128], index: 2, kind: output, shape index: {0}]   ;;  %s4518_s3 = inlined_call_operand.vmem [shape: f32[2,2,128], index: 3, kind: output, shape index: {1}]  }
   0x1 LB: > { %s3208_s13 = sadd.s32 4294967295, %s3684_s12   ;;  %p3212_p0 = scmp.ge.s32.totalorder %s3684_s12, 1  ;;  %s3684_s12 = sphi %s3716_s12, %s14_s12  }
   0x2   : > { %p140_p1 = scmp.lt.s32.totalorder %s3684_s12, 3 }
   0x4   : > { %p141_p2 = pnand %p3212_p0, %p140_p1 }
   0x6   : > { %144 = sbr.rel (%p141_p2) target bundleno = 656 (0x290), region = 28 }
   0xd   : > { %p168_p3 = scmp.lt.s32.totalorder %s3208_s13, 1  ;;  %v251_v0 = vlaneseq  ;;  %vm1497_vm0 = vcmask 24576   ;;  %v3686_v1 = vmov 1983009808   ;;  %vm1503_vm1 = vsmask.f32 256 }
   0xe   : > { %v249_v2 = vunpack.c.l.s4 %v3686_v1  ;;  %v1514_v3 = vld [vmem:[#allocation2 + $0x18] sm:$0x1]  ;;  %v1517_v4 = vld [vmem:[#allocation2 + $0x20] sm:$0x1]  ;;  %vm3727_vm2 = vmand %vm1497_vm0, %vm1503_vm1  ;;  %v4546_v6 = vmov 0  ;;  %vm1889_vm3 = vcmask 1042434  }
   0xf   : > { %s4596_s13 = smov (!%p168_p3, %s3208_s13), 1  ;;  %v252_v5 = vshrl.u32 %v251_v0, 7  ;;  %v4547_v6 = vsel %vm3727_vm2, 4294967295, %v4546_v6  ;;  %v1515_v8 = vsel %vm3727_vm2, 0, %v1514_v3  ;;  %v1518_v9 = vsel %vm3727_vm2, 0, %v1517_v4  ;;  %s3687_s18 = smov 12  }
  0x10   : > { %4548 = vst [vmem:[#allocation4_spill] sm:$0xff] %v4547_v6  ;;  %v250_v7 = vunpack.c.0.s8 %v249_v2  ;;  %v1508_v10 = vld [vmem:[#allocation2 + $0x8] sm:$0x1]  ;;  %s3487_s14 = sshll.u32 %s4596_s13, 8  ;;  %1516 = vst [vmem:[#allocation2 + $0x18] sm:$0x1] %v1515_v8 }
  0x11   : > { %1519 = vst [vmem:[#allocation2 + $0x20] sm:$0x1] %v1518_v9  ;;  %v1509_v11 = vsel %vm3727_vm2, 0, %v1508_v10  ;;  %s3741_s17 = scalar_lea.vmem %s4515_s0, %s3487_s14  ;;  %v1511_v13 = vld [vmem:[#allocation2 + $0x10] sm:$0x1]  ;;  %vm1892_vm4 = vcmask 1043459  }
  0x12   : > { %v3743_v12 = vsub.s32 %v250_v7, %v252_v5  ;;  %1510 = vst [vmem:[#allocation2 + $0x8] sm:$0x1] %v1509_v11  ;;  %v1520_v14 = vld [vmem:[#allocation2 + $0x28] sm:$0x1]  ;;  %v191_v15 = vld [vmem:[%s3741_s17 + $0x40] sm:$0xff]  ;;  %v193_v17 = vld [vmem:[%s3741_s17 + $0x50] sm:$0xff] }
  0x13   : > { %v192_v16 = vld [vmem:[%s3741_s17 + $0x48] sm:$0xff]  ;;  %v1512_v18 = vsel %vm3727_vm2, 0, %v1511_v13  ;;  %v1521_v19 = vsel %vm3727_vm2, 0, %v1520_v14  ;;  %v194_v20 = vld [vmem:[%s3741_s17 + $0x58] sm:$0xff]  ;;  %v383_v21 = vcombine.high %v191_v15, %v191_v15  ;;  %v195_v25 = vld [vmem:[%s3741_s17 + $0x60] sm:$0xff]  ;;  %v417_v27 = vcombine.high %v193_v17, %v193_v17  ;;  %s3688_s19 = smov 24  }
  0x14   : > { %4549 = vst [vmem:[#allocation5_spill] sm:$0xff] %v3743_v12  ;;  %v3754_v22 = vrot.slane %v191_v15, %v3743_v12  ;;  %v400_v23 = vcombine.high %v192_v16, %v192_v16  ;;  %v3757_v24 = vrot.slane %v192_v16, %v3743_v12  ;;  %1513 = vst [vmem:[#allocation2 + $0x10] sm:$0x1] %v1512_v18  ;;  %v196_v26 = vld [vmem:[%s3741_s17 + $0x68] sm:$0xff]  ;;  %v197_v31 = vld [vmem:[%s3741_s17 + $0x70] sm:$0xff]  ;;  %vm1895_vm5 = vcmask 1044484  }
  0x15   : > { %1522 = vst [vmem:[#allocation2 + $0x28] sm:$0x1] %v1521_v19  ;;  %v3762_v28 = vrot.slane %v193_v17, %v3743_v12  ;;  %v434_v29 = vcombine.high %v194_v20, %v194_v20  ;;  %v3765_v30 = vrot.slane %v194_v20, %v3743_v12  ;;  %v397_v32 = vrot.slane %v383_v21, %v3743_v12  ;;  %v198_v36 = vld [vmem:[%s3741_s17 + $0x78] sm:$0xff]  ;;  %s3690_s20 = smov 20   ;;  %s3691_s21 = smov 8  }
  0x16   : > { %v398_v33 = vcombine.high %v3754_v22, %v3754_v22  ;;  %v3772_v34 = vrot.slane %v400_v23, %v3743_v12  ;;  %v415_v35 = vcombine.high %v3757_v24, %v3757_v24  ;;  %v431_v37 = vrot.slane %v417_v27, %v3743_v12  ;;  %s3692_s22 = smov 32   ;;  %s3693_s23 = smov 4  }
  0x17   : > { %4550 = vst [vmem:[#allocation6_spill] sm:$0xff] %v3765_v30  ;;  %v432_v38 = vcombine.high %v3762_v28, %v3762_v28  ;;  %v3781_v39 = vrot.slane %v434_v29, %v3743_v12  ;;  %v449_v40 = vcombine.high %v3765_v30, %v3765_v30  ;;  %v399_v41 = vcombine.high %v397_v32, %v397_v32  ;;  %s3694_s24 = smov 16   ;;  %s3695_s27 = smov 28  }
  0x18   : > { %4551 = vst [vmem:[#allocation7_spill] sm:$0xff] %v3772_v34  ;;  %v451_v42 = vcombine.high %v195_v25, %v195_v25  ;;  %v458_v43 = vrot.slane %v195_v25, %v3743_v12  ;;  %v468_v44 = vcombine.high %v196_v26, %v196_v26  ;;  %v433_v45 = vcombine.high %v431_v37, %v431_v37  ;;  %s3488_s5 = sshll.u32 %s4596_s13, 5  ;;  %s3217_s9 = sshll.u32 %s4596_s13, 1 }
  0x19   : > { %4552 = vst [vmem:[#allocation8_spill] sm:$0xff] %v3781_v39  ;;  %v475_v46 = vrot.slane %v196_v26, %v3743_v12  ;;  %v485_v47 = vcombine.high %v197_v31, %v197_v31  ;;  %v492_v48 = vrot.slane %v197_v31, %v3743_v12  ;;  %v502_v52 = vcombine.high %v198_v36, %v198_v36  ;;  %s177_s8 = scalar_lea.vmem %s4517_s2, %s3488_s5  ;;  %s181_s14 = scalar_lea.vmem %s4518_s3, %s3217_s9 }
  0x1a   : > { %v465_v49 = vrot.slane %v451_v42, %v3743_v12  ;;  %v466_v50 = vcombine.high %v458_v43, %v458_v43  ;;  %v3790_v51 = vrot.slane %v468_v44, %v3743_v12  ;;  %v509_v56 = vrot.slane %v198_v36, %v3743_v12 }
  0x1b   : > { %v483_v53 = vcombine.high %v475_v46, %v475_v46  ;;  %v499_v54 = vrot.slane %v485_v47, %v3743_v12  ;;  %v500_v55 = vcombine.high %v492_v48, %v492_v48  ;;  %v3795_v58 = vrot.slane %v502_v52, %v3743_v12 }
  0x1c   : > { %4553 = vst [vmem:[#allocation9_spill] sm:$0xff] %v3790_v51  ;;  %v467_v57 = vcombine.high %v465_v49, %v465_v49  ;;  %v3250_v59 = vrot.slane %v3754_v22, 9  ;;  %v3251_v60 = vrot.slane %v398_v33, 9  ;;  %v517_v62 = vcombine.high %v509_v56, %v509_v56 }
  0x1d   : > { %4554 = vst [vmem:[#allocation10_spill] sm:$0xff] %v3795_v58  ;;  %v501_v61 = vcombine.high %v499_v54, %v499_v54  ;;  %v3252_v63 = vrot.slane %v397_v32, 9  ;;  %v3253_v0 = vrot.slane %v399_v41, 9  ;;  %v3254_v1 = vrot.slane %v3757_v24, 9 }
  0x1e   : > { %v3255_v2 = vrot.slane %v415_v35, 9  ;;  %v3256_v3 = vrot.slane %v3772_v34, 9  ;;  %v3258_v4 = vrot.slane %v3762_v28, 9  ;;  %v3259_v5 = vrot.slane %v432_v38, 9 }
  0x1f   : > { %v3260_v7 = vrot.slane %v431_v37, 9  ;;  %v3261_v8 = vrot.slane %v433_v45, 9  ;;  %v3262_v9 = vrot.slane %v3765_v30, 9  ;;  %v3263_v10 = vrot.slane %v449_v40, 9 }
  0x20   : > { %v3264_v11 = vrot.slane %v3781_v39, 9  ;;  %v3266_v13 = vrot.slane %v458_v43, 9  ;;  %v3267_v14 = vrot.slane %v466_v50, 9  ;;  %v3268_v15 = vrot.slane %v465_v49, 9 }
  0x21   : > { %v3269_v16 = vrot.slane %v467_v57, 9  ;;  %v3270_v17 = vrot.slane %v475_v46, 9  ;;  %v3271_v18 = vrot.slane %v483_v53, 9  ;;  %v3272_v19 = vrot.slane %v3790_v51, 9 }
  0x22   : > { %v3274_v20 = vrot.slane %v492_v48, 9  ;;  %v3275_v21 = vrot.slane %v500_v55, 9  ;;  %v3276_v23 = vrot.slane %v499_v54, 9  ;;  %v3277_v25 = vrot.slane %v501_v61, 9 }
  0x23   : > { %v3278_v26 = vrot.slane %v509_v56, 9  ;;  %v3279_v27 = vrot.slane %v517_v62, 9  ;;  %v3280_v29 = vrot.slane %v3795_v58, 9  ;;  %v1335_v31 = vmax.f32 %v3754_v22, %v3250_v59  ;;  %v4555_v58 = vld [vmem:[#allocation6_spill] sm:$0xff] }
  0x24   : > { %v1336_v36 = vmax.f32 %v398_v33, %v3251_v60  ;;  %v1337_v42 = vmax.f32 %v397_v32, %v3252_v63  ;;  %v1338_v44 = vmax.f32 %v399_v41, %v3253_v0  ;;  %v1339_v47 = vmax.f32 %v3757_v24, %v3254_v1  ;;  %v4556_v33 = vld [vmem:[#allocation8_spill] sm:$0xff] }
  0x25   : > { %v1340_v52 = vmax.f32 %v415_v35, %v3255_v2  ;;  %v1341_v6 = vmax.f32 %v3772_v34, %v3256_v3  ;;  %v1343_v12 = vmax.f32 %v3762_v28, %v3258_v4  ;;  %v1344_v51 = vmax.f32 %v432_v38, %v3259_v5  ;;  %v4557_v2 = vld [vmem:[#allocation9_spill] sm:$0xff] }
  0x26   : > { %v1345_v39 = vmax.f32 %v431_v37, %v3260_v7  ;;  %v1346_v30 = vmax.f32 %v433_v45, %v3261_v8  ;;  %v1347_v22 = vmax.f32 %v4555_v58, %v3262_v9  ;;  %v1348_v59 = vmax.f32 %v449_v40, %v3263_v10  ;;  %v4558_v45 = vld [vmem:[#allocation10_spill] sm:$0xff] }
  0x27   : > { %v1349_v60 = vmax.f32 %v4556_v33, %v3264_v11  ;;  %v1351_v32 = vmax.f32 %v458_v43, %v3266_v13  ;;  %v1352_v63 = vmax.f32 %v466_v50, %v3267_v14  ;;  %v1353_v0 = vmax.f32 %v465_v49, %v3268_v15 }
  0x28   : > { %v1354_v41 = vmax.f32 %v467_v57, %v3269_v16  ;;  %v1355_v1 = vmax.f32 %v475_v46, %v3270_v17  ;;  %v1356_v24 = vmax.f32 %v483_v53, %v3271_v18  ;;  %v1357_v35 = vmax.f32 %v4557_v2, %v3272_v19 }
  0x29   : > { %v1359_v3 = vmax.f32 %v492_v48, %v3274_v20  ;;  %v1360_v34 = vmax.f32 %v500_v55, %v3275_v21  ;;  %v1361_v4 = vmax.f32 %v499_v54, %v3276_v23  ;;  %v1362_v28 = vmax.f32 %v501_v61, %v3277_v25 }
  0x2a   : > { %v1363_v38 = vmax.f32 %v509_v56, %v3278_v26  ;;  %v1364_v37 = vmax.f32 %v517_v62, %v3279_v27  ;;  %v1365_v5 = vmax.f32 %v4558_v45, %v3280_v29  ;;  %v1447_v58 = vmax.f32 %v1335_v31, %v1343_v12 }
  0x2b   : > { %v1448_v40 = vmax.f32 %v1336_v36, %v1344_v51  ;;  %v1449_v7 = vmax.f32 %v1337_v42, %v1345_v39  ;;  %v1450_v8 = vmax.f32 %v1338_v44, %v1346_v30  ;;  %v1451_v43 = vmax.f32 %v1339_v47, %v1347_v22 }
  0x2c   : > { %v1452_v50 = vmax.f32 %v1340_v52, %v1348_v59  ;;  %v1453_v49 = vmax.f32 %v1341_v6, %v1349_v60  ;;  %v1455_v57 = vmax.f32 %v1351_v32, %v1359_v3  ;;  %v1456_v46 = vmax.f32 %v1352_v63, %v1360_v34 }
  0x2d   : > { %v1457_v53 = vmax.f32 %v1353_v0, %v1361_v4  ;;  %v1458_v9 = vmax.f32 %v1354_v41, %v1362_v28  ;;  %v1459_v48 = vmax.f32 %v1355_v1, %v1363_v38  ;;  %v1460_v54 = vmax.f32 %v1356_v24, %v1364_v37  ;;  %v183_v1 = vld [vmem:[%s3741_s17] sm:$0xff]  ;;  %v184_v28 = vld [vmem:[%s3741_s17 + $0x8] sm:$0xff] }
  0x2e   : > { %v1461_v55 = vmax.f32 %v1357_v35, %v1365_v5  ;;  %v3505_v56 = vpack.c.bf16 %v1447_v58, %v1447_v58  ;;  %v3506_v61 = vpack.c.bf16 %v1448_v40, %v1448_v40  ;;  %v3507_v62 = vpack.c.bf16 %v1449_v7, %v1449_v7 }
  0x2f   : > { %v3508_v12 = vpack.c.bf16 %v1450_v8, %v1450_v8  ;;  %v3509_v51 = vpack.c.bf16 %v1451_v43, %v1451_v43  ;;  %v3510_v39 = vpack.c.bf16 %v1452_v50, %v1452_v50  ;;  %vm1898_vm6 = vcmask 1045509   ;;  %v4559_v43 = vld [vmem:[#allocation5_spill] sm:$0xff] }
  0x30   : > { %v3511_v30 = vpack.c.bf16 %v1453_v49, %v1453_v49  ;;  %v3513_v10 = vpack.c.bf16 %v1455_v57, %v1455_v57  ;;  %v3514_v6 = vpack.c.bf16 %v1456_v46, %v1456_v46  ;;  %v3515_v11 = vpack.c.bf16 %v1457_v53, %v1457_v53  ;;  %v185_v46 = vld [vmem:[%s3741_s17 + $0x10] sm:$0xff] }
  0x31   : > { %vm1901_vm7 = vcmask 1046534   ;;  %vm1495_vm8 = vcmask 27648   ;;  %vm1535_vm9 = vsmask.f32 7938  ;;  %v3516_v34 = vpack.c.bf16 %v1458_v9, %v1458_v9 }
  0x32   : > { %v3517_v13 = vpack.c.bf16 %v1459_v48, %v1459_v48  ;;  %v3518_v14 = vpack.c.bf16 %v1460_v54, %v1460_v54  ;;  %v3519_v15 = vpack.c.bf16 %v1461_v55, %v1461_v55  ;;  %vm1904_vm10 = vcmask 1047559   ;;  %vm3834_vm11 = vmand %vm1495_vm8, %vm1535_vm9 }
  0x33   : > { %v1839_v16 = vunpack.c.l.b16 %v3505_v56  ;;  %v1840_v17 = vunpack.c.l.b16 %v3506_v61  ;;  %v1841_v18 = vunpack.c.l.b16 %v3507_v62  ;;  %v1842_v19 = vunpack.c.l.b16 %v3508_v12  ;;  %v2044_v56 = vld [vmem:[#allocation2 + $0x18] sm:$0xf]  ;;  %vm4150_vm12 = vmand %vm1497_vm0, %vm1535_vm9 }
  0x34   : > { %v1843_v20 = vunpack.c.l.b16 %v3509_v51  ;;  %v1844_v21 = vunpack.c.l.b16 %v3510_v39  ;;  %v1845_v23 = vunpack.c.l.b16 %v3511_v30  ;;  %v1847_v25 = vunpack.c.l.b16 %v3513_v10  ;;  %v186_v61 = vld [vmem:[%s3741_s17 + $0x18] sm:$0xff]  ;;  %v187_v30 = vld [vmem:[%s3741_s17 + $0x20] sm:$0xff] }
  0x35   : > { %v1848_v26 = vunpack.c.l.b16 %v3514_v6  ;;  %v1849_v27 = vunpack.c.l.b16 %v3515_v11  ;;  %v1850_v29 = vunpack.c.l.b16 %v3516_v34  ;;  %v1851_v31 = vunpack.c.l.b16 %v3517_v13  ;;  %v2050_v34 = vld [vmem:[#allocation2 + $0x20] sm:$0xf]  ;;  %v188_v13 = vld [vmem:[%s3741_s17 + $0x28] sm:$0xff] }
  0x36   : > { %v1852_v36 = vunpack.c.l.b16 %v3518_v14  ;;  %v1853_v42 = vunpack.c.l.b16 %v3519_v15  ;;  %v1919_v44 = vrot.slane %v1839_v16, 7  ;;  %v1920_v47 = vrot.slane %v1840_v17, 6 }
  0x37   : > { %v1922_v52 = vrot.slane %v1841_v18, 5  ;;  %v1924_v22 = vrot.slane %v1842_v19, 4  ;;  %v1926_v59 = vrot.slane %v1843_v20, 3  ;;  %v1928_v60 = vrot.slane %v1844_v21, 2  ;;  %v189_v21 = vld [vmem:[%s3741_s17 + $0x30] sm:$0xff] }
  0x38   : > { %v1921_v32 = vsel %vm1889_vm3, %v1920_v47, %v1919_v44  ;;  %v1930_v63 = vrot.slane %v1845_v23, 1  ;;  %v1932_v0 = vrot.slane %v1847_v25, 7  ;;  %v1933_v41 = vrot.slane %v1848_v26, 6  ;;  %v190_v23 = vld [vmem:[%s3741_s17 + $0x38] sm:$0xff] }
  0x39   : > { %v1923_v24 = vsel %vm1892_vm4, %v1922_v52, %v1921_v32  ;;  %v1935_v35 = vrot.slane %v1849_v27, 5  ;;  %v1937_v3 = vrot.slane %v1850_v29, 4  ;;  %v1939_v4 = vrot.slane %v1851_v31, 3 }
  0x3a   : > { %v1925_v38 = vsel %vm1895_vm5, %v1924_v22, %v1923_v24  ;;  %v1934_v37 = vsel %vm1889_vm3, %v1933_v41, %v1932_v0  ;;  %v1941_v5 = vrot.slane %v1852_v36, 2  ;;  %v1943_v58 = vrot.slane %v1853_v42, 1 }
  0x3b   : > { %v1927_v40 = vsel %vm1898_vm6, %v1926_v59, %v1925_v38  ;;  %v1936_v7 = vsel %vm1892_vm4, %v1935_v35, %v1934_v37  ;;  %v247_v8 = vcombine.high %v183_v1, %v183_v1  ;;  %v3822_v50 = vrot.slane %v183_v1, %v4559_v43 }
  0x3c   : > { %v1929_v49 = vsel %vm1901_vm7, %v1928_v60, %v1927_v40  ;;  %v1938_v57 = vsel %vm1895_vm5, %v1937_v3, %v1936_v7  ;;  %v264_v53 = vcombine.high %v184_v28, %v184_v28  ;;  %v3828_v9 = vrot.slane %v184_v28, %v4559_v43 }
  0x3d   : > { %v1931_v48 = vsel %vm1904_vm10, %v1930_v63, %v1929_v49  ;;  %v1940_v54 = vsel %vm1898_vm6, %v1939_v4, %v1938_v57  ;;  %v4560_v55 = vmov 0  ;;  %v3840_v62 = vrot.slane %v247_v8, %v4559_v43 }
  0x3e   : > { %v4561_v55 = vsel %vm3834_vm11, 4294967295, %v4560_v55  ;;  %v262_v12 = vcombine.high %v3822_v50, %v3822_v50  ;;  %v1942_v51 = vsel %vm1901_vm7, %v1941_v5, %v1940_v54  ;;  %v2001_v39 = vpack.c.b16 %v1931_v48, %v1931_v48 }
  0x3f   : > { %4562 = vst [vmem:[#allocation6_spill] sm:$0xff] %v4561_v55  ;;  %v3847_v10 = vrot.slane %v264_v53, %v4559_v43  ;;  %v3851_v6 = vcombine.high %v3828_v9, %v3828_v9  ;;  %v1944_v11 = vsel %vm1904_vm10, %v1943_v58, %v1942_v51  ;;  %v3857_v14 = vcombine.high %v3840_v62, %v3840_v62 }
  0x40   : > { %v281_v15 = vcombine.high %v185_v46, %v185_v46  ;;  %v3860_v16 = vrot.slane %v185_v46, %v4559_v43  ;;  %v2003_v17 = vpack.c.b16 %v1944_v11, %v1944_v11  ;;  %v2045_v18 = vsel %vm3834_vm11, %v2001_v39, %v2044_v56 }
  0x41   : > { %4563 = vst [vmem:[#allocation11_spill] sm:$0xff] %v3847_v10  ;;  %v298_v19 = vcombine.high %v186_v61, %v186_v61  ;;  %v3865_v20 = vrot.slane %v186_v61, %v4559_v43  ;;  %2046 = vst [vmem:[#allocation2 + $0x18] sm:$0xf] %v2045_v18  ;;  %v315_v27 = vcombine.high %v187_v30, %v187_v30  ;;  %v3218_v35 = vrot.slane %v3822_v50, 9 }
  0x42   : > { %v3870_v25 = vrot.slane %v281_v15, %v4559_v43  ;;  %v3874_v26 = vcombine.high %v3860_v16, %v3860_v16  ;;  %v3877_v29 = vrot.slane %v187_v30, %v4559_v43  ;;  %v2051_v31 = vsel %vm3834_vm11, %v2003_v17, %v2050_v34 }
  0x43   : > { %v3882_v36 = vrot.slane %v298_v19, %v4559_v43  ;;  %v313_v42 = vcombine.high %v3865_v20, %v3865_v20  ;;  %v332_v44 = vcombine.high %v188_v13, %v188_v13  ;;  %2052 = vst [vmem:[#allocation2 + $0x20] sm:$0xf] %v2051_v31  ;;  %v329_v52 = vrot.slane %v315_v27, %v4559_v43 }
  0x44   : > { %v297_v47 = vcombine.high %v3870_v25, %v3870_v25  ;;  %v330_v22 = vcombine.high %v3877_v29, %v3877_v29  ;;  %v339_v59 = vrot.slane %v188_v13, %v4559_v43  ;;  %v349_v32 = vcombine.high %v189_v21, %v189_v21 }
  0x45   : > { %4564 = vst [vmem:[#allocation12_spill] sm:$0xff] %v3882_v36  ;;  %v3893_v60 = vrot.slane %v332_v44, %v4559_v43  ;;  %v356_v63 = vrot.slane %v189_v21, %v4559_v43  ;;  %v366_v0 = vcombine.high %v190_v23, %v190_v23  ;;  %v331_v41 = vcombine.high %v329_v52, %v329_v52 }
  0x46   : > { %v347_v1 = vcombine.high %v339_v59, %v339_v59  ;;  %v373_v24 = vrot.slane %v190_v23, %v4559_v43  ;;  %v363_v3 = vrot.slane %v349_v32, %v4559_v43  ;;  %v3219_v38 = vrot.slane %v262_v12, 9 }
  0x47   : > { %4565 = vst [vmem:[#allocation13_spill] sm:$0xff] %v3893_v60  ;;  %v364_v4 = vcombine.high %v356_v63, %v356_v63  ;;  %v3900_v28 = vrot.slane %v366_v0, %v4559_v43  ;;  %v3220_v5 = vrot.slane %v3840_v62, 9  ;;  %v3221_v58 = vrot.slane %v3857_v14, 9 }
  0x48   : > { %v381_v37 = vcombine.high %v373_v24, %v373_v24  ;;  %v3222_v40 = vrot.slane %v3828_v9, 9  ;;  %v365_v7 = vcombine.high %v363_v3, %v363_v3  ;;  %v3223_v8 = vrot.slane %v3851_v6, 9 }
  0x49   : > { %4566 = vst [vmem:[#allocation14_spill] sm:$0xff] %v3900_v28  ;;  %v3224_v49 = vrot.slane %v3847_v10, 9  ;;  %v3226_v57 = vrot.slane %v3860_v16, 9  ;;  %v3227_v46 = vrot.slane %v3874_v26, 9  ;;  %v3228_v53 = vrot.slane %v3870_v25, 9 }
  0x4a   : > { %v3229_v48 = vrot.slane %v297_v47, 9  ;;  %v3230_v54 = vrot.slane %v3865_v20, 9  ;;  %v3639_v56 = vld [vmem:[#allocation2 + $0x18] ss:$8 sps:$4 sm:$0xff]   ;;  %v3231_v61 = vrot.slane %v313_v42, 9  ;;  %v3232_v51 = vrot.slane %v3882_v36, 9 }
  0x4b   : > { %v1303_v39 = vmax.f32 %v3822_v50, %v3218_v35  ;;  %v1304_v30 = vmax.f32 %v262_v12, %v3219_v38  ;;  %v3234_v11 = vrot.slane %v3877_v29, 9  ;;  %v3235_v34 = vrot.slane %v330_v22, 9  ;;  %2403 = vrot.lane.b32.xlu1 %v3639_v56, %s3687_s18 }
  0x4c   : > { %v3236_v13 = vrot.slane %v329_v52, 9  ;;  %v3237_v15 = vrot.slane %v331_v41, 9  ;;  %v3238_v17 = vrot.slane %v339_v59, 9  ;;  %v3239_v18 = vrot.slane %v347_v1, 9 }
  0x4d   : > { %v3240_v19 = vrot.slane %v3893_v60, 9  ;;  %v3242_v21 = vrot.slane %v356_v63, 9  ;;  %v3243_v23 = vrot.slane %v364_v4, 9  ;;  %v3244_v27 = vrot.slane %v363_v3, 9 }
  0x4e   : > { %v3245_v31 = vrot.slane %v365_v7, 9  ;;  %v3246_v44 = vrot.slane %v373_v24, 9  ;;  %v3247_v32 = vrot.slane %v381_v37, 9  ;;  %v3248_v50 = vrot.slane %v3900_v28, 9 }
  0x4f   : > { %v1305_v12 = vmax.f32 %v3840_v62, %v3220_v5  ;;  %v1306_v0 = vmax.f32 %v3857_v14, %v3221_v58  ;;  %v1307_v35 = vmax.f32 %v3828_v9, %v3222_v40  ;;  %v1308_v38 = vmax.f32 %v3851_v6, %v3223_v8 }
  0x50   : > { %v1309_v56 = vmax.f32 %v3847_v10, %v3224_v49  ;;  %v1311_v45 = vmax.f32 %v3860_v16, %v3226_v57  ;;  %v1312_v2 = vmax.f32 %v3874_v26, %v3227_v46  ;;  %v1313_v33 = vmax.f32 %v3870_v25, %v3228_v53  ;;  %v4567_v46 = vld [vmem:[#allocation14_spill] sm:$0xff] }
  0x51   : > { %v1314_v55 = vmax.f32 %v297_v47, %v3229_v48  ;;  %v1315_v43 = vmax.f32 %v3865_v20, %v3230_v54  ;;  %v1316_v28 = vmax.f32 %v313_v42, %v3231_v61  ;;  %v1317_v62 = vmax.f32 %v3882_v36, %v3232_v51 }
  0x52   : > { %v1319_v14 = vmax.f32 %v3877_v29, %v3234_v11  ;;  %v1320_v5 = vmax.f32 %v330_v22, %v3235_v34  ;;  %v1321_v9 = vmax.f32 %v329_v52, %v3236_v13  ;;  %v1322_v58 = vmax.f32 %v331_v41, %v3237_v15 }
  0x53   : > { %v1323_v6 = vmax.f32 %v339_v59, %v3238_v17  ;;  %v1324_v40 = vmax.f32 %v347_v1, %v3239_v18  ;;  %v1325_v8 = vmax.f32 %v3893_v60, %v3240_v19  ;;  %v1327_v16 = vmax.f32 %v356_v63, %v3242_v21 }
  0x54   : > { %v1328_v49 = vmax.f32 %v364_v4, %v3243_v23  ;;  %v1329_v26 = vmax.f32 %v363_v3, %v3244_v27  ;;  %v1330_v57 = vmax.f32 %v365_v7, %v3245_v31  ;;  %v1331_v25 = vmax.f32 %v373_v24, %v3246_v44 }
  0x55   : > { %v1332_v47 = vmax.f32 %v381_v37, %v3247_v32  ;;  %v1333_v20 = vmax.f32 %v4567_v46, %v3248_v50  ;;  %v1431_v42 = vmax.f32 %v1303_v39, %v1311_v45  ;;  %v1432_v53 = vmax.f32 %v1304_v30, %v1312_v2 }
  0x56   : > { %v1433_v48 = vmax.f32 %v1305_v12, %v1313_v33  ;;  %v1434_v54 = vmax.f32 %v1306_v0, %v1314_v55  ;;  %v1435_v29 = vmax.f32 %v1307_v35, %v1315_v43  ;;  %v1436_v22 = vmax.f32 %v1308_v38, %v1316_v28 }
  0x57   : > { %v1437_v52 = vmax.f32 %v1309_v56, %v1317_v62  ;;  %v1439_v41 = vmax.f32 %v1319_v14, %v1327_v16  ;;  %v1440_v59 = vmax.f32 %v1320_v5, %v1328_v49  ;;  %v1441_v1 = vmax.f32 %v1321_v9, %v1329_v26 }
  0x58   : > { %v1442_v61 = vmax.f32 %v1322_v58, %v1330_v57  ;;  %v1443_v51 = vmax.f32 %v1323_v6, %v1331_v25  ;;  %v1444_v63 = vmax.f32 %v1324_v40, %v1332_v47  ;;  %v1445_v4 = vmax.f32 %v1325_v8, %v1333_v20  ;;  %v199_v8 = vld [vmem:[%s3741_s17 + $0x80] sm:$0xff]  ;;  %v200_v25 = vld [vmem:[%s3741_s17 + $0x88] sm:$0xff] }
  0x59   : > { %v3489_v3 = vpack.c.bf16 %v1431_v42, %v1431_v42  ;;  %v3490_v7 = vpack.c.bf16 %v1432_v53, %v1432_v53  ;;  %v3491_v24 = vpack.c.bf16 %v1433_v48, %v1433_v48  ;;  %v3492_v37 = vpack.c.bf16 %v1434_v54, %v1434_v54 }
  0x5a   : > { %v3493_v11 = vpack.c.bf16 %v1435_v29, %v1435_v29  ;;  %v3494_v34 = vpack.c.bf16 %v1436_v22, %v1436_v22  ;;  %v3495_v45 = vpack.c.bf16 %v1437_v52, %v1437_v52  ;;  %v3497_v2 = vpack.c.bf16 %v1439_v41, %v1439_v41  ;;  %v4568_v22 = vld [vmem:[#allocation5_spill] sm:$0xff] }
  0x5b   : > { %v3498_v33 = vpack.c.bf16 %v1440_v59, %v1440_v59  ;;  %v3499_v55 = vpack.c.bf16 %v1441_v1, %v1441_v1  ;;  %v3500_v43 = vpack.c.bf16 %v1442_v61, %v1442_v61  ;;  %v3501_v28 = vpack.c.bf16 %v1443_v51, %v1443_v51  ;;  %v201_v1 = vld [vmem:[%s3741_s17 + $0x90] sm:$0xff] }
  0x5c   : > { %v3502_v39 = vpack.c.bf16 %v1444_v63, %v1444_v63  ;;  %v3503_v30 = vpack.c.bf16 %v1445_v4, %v1445_v4  ;;  %v1823_v13 = vunpack.c.l.b16 %v3489_v3  ;;  %v1824_v15 = vunpack.c.l.b16 %v3490_v7  ;;  %v2032_v3 = vld [vmem:[#allocation2 + $0x8] sm:$0xf]  ;;  %v202_v7 = vld [vmem:[%s3741_s17 + $0x98] sm:$0xff] }
  0x5d   : > { %v1825_v17 = vunpack.c.l.b16 %v3491_v24  ;;  %v1826_v18 = vunpack.c.l.b16 %v3492_v37  ;;  %v1827_v19 = vunpack.c.l.b16 %v3493_v11  ;;  %v1828_v21 = vunpack.c.l.b16 %v3494_v34 }
  0x5e   : > { %v1829_v23 = vunpack.c.l.b16 %v3495_v45  ;;  %v1831_v27 = vunpack.c.l.b16 %v3497_v2  ;;  %v1832_v31 = vunpack.c.l.b16 %v3498_v33  ;;  %v1833_v44 = vunpack.c.l.b16 %v3499_v55  ;;  %v2038_v55 = vld [vmem:[#allocation2 + $0x10] sm:$0xf] }
  0x5f   : > { %v1834_v32 = vunpack.c.l.b16 %v3500_v43  ;;  %v1835_v50 = vunpack.c.l.b16 %v3501_v28  ;;  %v1836_v12 = vunpack.c.l.b16 %v3502_v39  ;;  %v1837_v0 = vunpack.c.l.b16 %v3503_v30 }
  0x60   : > { %v1887_v35 = vrot.slane %v1823_v13, 7  ;;  %v1888_v38 = vrot.slane %v1824_v15, 6  ;;  %v1891_v56 = vrot.slane %v1825_v17, 5  ;;  %v1894_v62 = vrot.slane %v1826_v18, 4 }
  0x61   : > { %v1897_v14 = vrot.slane %v1827_v19, 3  ;;  %v1900_v5 = vrot.slane %v1828_v21, 2  ;;  %v1903_v58 = vrot.slane %v1829_v23, 1  ;;  %v1906_v6 = vrot.slane %v1831_v27, 7 }
  0x62   : > { %v1890_v9 = vsel %vm1889_vm3, %v1888_v38, %v1887_v35  ;;  %v1907_v40 = vrot.slane %v1832_v31, 6  ;;  %v1909_v49 = vrot.slane %v1833_v44, 5  ;;  %v1911_v26 = vrot.slane %v1834_v32, 4 }
  0x63   : > { %v1893_v16 = vsel %vm1892_vm4, %v1891_v56, %v1890_v9  ;;  %v1913_v57 = vrot.slane %v1835_v50, 3  ;;  %v1915_v42 = vrot.slane %v1836_v12, 2  ;;  %v1917_v53 = vrot.slane %v1837_v0, 1 }
  0x64   : > { %v1896_v47 = vsel %vm1895_vm5, %v1894_v62, %v1893_v16  ;;  %v1908_v20 = vsel %vm1889_vm3, %v1907_v40, %v1906_v6  ;;  %v519_v29 = vcombine.high %v199_v8, %v199_v8  ;;  %v526_v52 = vrot.slane %v199_v8, %v4568_v22 }
  0x65   : > { %v1899_v48 = vsel %vm1898_vm6, %v1897_v14, %v1896_v47  ;;  %v1910_v54 = vsel %vm1892_vm4, %v1909_v49, %v1908_v20  ;;  %v536_v61 = vcombine.high %v200_v25, %v200_v25  ;;  %v543_v51 = vrot.slane %v200_v25, %v4568_v22 }
  0x66   : > { %v1902_v41 = vsel %vm1901_vm7, %v1900_v5, %v1899_v48  ;;  %v1912_v59 = vsel %vm1895_vm5, %v1911_v26, %v1910_v54  ;;  %v533_v24 = vrot.slane %v519_v29, %v4568_v22  ;;  %v534_v37 = vcombine.high %v526_v52, %v526_v52 }
  0x67   : > { %v1905_v63 = vsel %vm1904_vm10, %v1903_v58, %v1902_v41  ;;  %v1914_v4 = vsel %vm1898_vm6, %v1913_v57, %v1912_v59  ;;  %v3949_v45 = vrot.slane %v536_v61, %v4568_v22  ;;  %v551_v2 = vcombine.high %v543_v51, %v543_v51  ;;  %v207_v57 = vld [vmem:[%s3741_s17 + $0xc0] sm:$0xff] }
  0x68   : > { %v1916_v11 = vsel %vm1901_vm7, %v1915_v42, %v1914_v4  ;;  %v1997_v34 = vpack.c.b16 %v1905_v63, %v1905_v63  ;;  %v535_v43 = vcombine.high %v533_v24, %v533_v24  ;;  %v553_v28 = vcombine.high %v201_v1, %v201_v1 }
  0x69   : > { %4569 = vst [vmem:[#allocation15_spill] sm:$0xff] %v3949_v45  ;;  %v1918_v33 = vsel %vm1904_vm10, %v1917_v53, %v1916_v11  ;;  %v560_v39 = vrot.slane %v201_v1, %v4568_v22  ;;  %v570_v17 = vcombine.high %v202_v7, %v202_v7  ;;  %v577_v18 = vrot.slane %v202_v7, %v4568_v22 }
  0x6a   : > { %v1999_v30 = vpack.c.b16 %v1918_v33, %v1918_v33  ;;  %v2033_v15 = vsel %vm3834_vm11, %v1997_v34, %v2032_v3  ;;  %v567_v19 = vrot.slane %v553_v28, %v4568_v22  ;;  %v3282_v23 = vrot.slane %v526_v52, 9 }
  0x6b   : > { %2034 = vst [vmem:[#allocation2 + $0x8] sm:$0xf] %v2033_v15  ;;  %v568_v21 = vcombine.high %v560_v39, %v560_v39  ;;  %v3283_v27 = vrot.slane %v534_v37, 9  ;;  %v3960_v44 = vrot.slane %v570_v17, %v4568_v22  ;;  %v585_v32 = vcombine.high %v577_v18, %v577_v18 }
  0x6c   : > { %v2039_v31 = vsel %vm3834_vm11, %v1999_v30, %v2038_v55  ;;  %v3284_v50 = vrot.slane %v533_v24, 9  ;;  %v569_v12 = vcombine.high %v567_v19, %v567_v19  ;;  %v3285_v0 = vrot.slane %v535_v43, 9 }
  0x6d   : > { %4571 = vst [vmem:[#allocation16_spill] sm:$0xff] %v3960_v44  ;;  %2040 = vst [vmem:[#allocation2 + $0x10] sm:$0xf] %v2039_v31  ;;  %v3286_v35 = vrot.slane %v543_v51, 9  ;;  %v3287_v38 = vrot.slane %v551_v2, 9  ;;  %v3288_v56 = vrot.slane %v3949_v45, 9  ;;  %v1367_v8 = vmax.f32 %v526_v52, %v3282_v23 }
  0x6e   : > { %v3290_v62 = vrot.slane %v560_v39, 9  ;;  %v3291_v14 = vrot.slane %v568_v21, 9  ;;  %v3292_v5 = vrot.slane %v567_v19, 9  ;;  %v3293_v9 = vrot.slane %v569_v12, 9  ;;  %v208_v23 = vld [vmem:[%s3741_s17 + $0xc8] sm:$0xff] }
  0x6f   : > { %v3294_v58 = vrot.slane %v577_v18, 9  ;;  %v3295_v6 = vrot.slane %v585_v32, 9  ;;  %v3296_v40 = vrot.slane %v3960_v44, 9  ;;  %v1368_v16 = vmax.f32 %v534_v37, %v3283_v27 }
  0x70   : > { %v1369_v49 = vmax.f32 %v533_v24, %v3284_v50  ;;  %v1370_v26 = vmax.f32 %v535_v43, %v3285_v0  ;;  %v1371_v25 = vmax.f32 %v543_v51, %v3286_v35  ;;  %v1372_v47 = vmax.f32 %v551_v2, %v3287_v38  ;;  %v209_v50 = vld [vmem:[%s3741_s17 + $0xd0] sm:$0xff] }
  0x71   : > { %v1373_v20 = vmax.f32 %v3949_v45, %v3288_v56  ;;  %v1375_v42 = vmax.f32 %v560_v39, %v3290_v62  ;;  %v1376_v53 = vmax.f32 %v568_v21, %v3291_v14  ;;  %v1377_v48 = vmax.f32 %v567_v19, %v3292_v5  ;;  %v210_v62 = vld [vmem:[%s3741_s17 + $0xd8] sm:$0xff] }
  0x72   : > { %v1378_v54 = vmax.f32 %v569_v12, %v3293_v9  ;;  %v1379_v29 = vmax.f32 %v577_v18, %v3294_v58  ;;  %v1380_v41 = vmax.f32 %v585_v32, %v3295_v6  ;;  %v1381_v59 = vmax.f32 %v3960_v44, %v3296_v40  ;;  %v211_v40 = vld [vmem:[%s3741_s17 + $0xe0] sm:$0xff] }
  0x73   : > { %v1463_v1 = vmax.f32 %v1367_v8, %v1375_v42  ;;  %v655_v61 = vcombine.high %v207_v57, %v207_v57  ;;  %v1464_v52 = vmax.f32 %v1368_v16, %v1376_v53  ;;  %v1465_v4 = vmax.f32 %v1369_v49, %v1377_v48  ;;  %v213_v53 = vld [vmem:[%s3741_s17 + $0xf0] sm:$0xff] }
  0x74   : > { %v3648_v63 = vld [vmem:[#allocation2 + $0x8] ss:$8 sps:$4 sm:$0xff]   ;;  %v1466_v3 = vmax.f32 %v1370_v26, %v1378_v54  ;;  %v1467_v7 = vmax.f32 %v1371_v25, %v1379_v29  ;;  %v1468_v24 = vmax.f32 %v1372_v47, %v1380_v41  ;;  %v1469_v51 = vmax.f32 %v1373_v20, %v1381_v59 }
  0x75   : > { %v3521_v37 = vpack.c.bf16 %v1463_v1, %v1463_v1  ;;  %v3968_v11 = vrot.slane %v207_v57, %v4568_v22  ;;  %2401 = vrot.lane.b32.xlu0 %v3648_v63, %s3687_s18  ;;  %v3522_v34 = vpack.c.bf16 %v1464_v52, %v1464_v52  ;;  %v3523_v2 = vpack.c.bf16 %v1465_v4, %v1465_v4  ;;  %v3654_v43 = vld [vmem:[#allocation2 + $0x10] ss:$8 sps:$4 sm:$0xff]   ;;  %v212_v57 = vld [vmem:[%s3741_s17 + $0xe8] sm:$0xff] }
  0x76   : > { %v3524_v33 = vpack.c.bf16 %v1466_v3, %v1466_v3  ;;  %v3525_v55 = vpack.c.bf16 %v1467_v7, %v1467_v7  ;;  %v3526_v28 = vpack.c.bf16 %v1468_v24, %v1468_v24  ;;  %v3527_v39 = vpack.c.bf16 %v1469_v51, %v1469_v51  ;;  %v214_v52 = vld [vmem:[%s3741_s17 + $0xf8] sm:$0xff]  ;;  %v2056_v51 = vld [vmem:[#allocation2 + $0x28] sm:$0xf] }
  0x77   : > { %v1855_v30 = vunpack.c.l.b16 %v3521_v37  ;;  %v3972_v15 = vrot.slane %v655_v61, %v4568_v22  ;;  %v1856_v17 = vunpack.c.l.b16 %v3522_v34  ;;  %v1857_v18 = vunpack.c.l.b16 %v3523_v2 }
  0x78   : > { %v1858_v19 = vunpack.c.l.b16 %v3524_v33  ;;  %v1859_v21 = vunpack.c.l.b16 %v3525_v55  ;;  %v1860_v27 = vunpack.c.l.b16 %v3526_v28  ;;  %v1861_v31 = vunpack.c.l.b16 %v3527_v39 }
  0x79   : > { %v1945_v32 = vrot.slane %v1855_v30, 7  ;;  %v3978_v12 = vcombine.high %v3968_v11, %v3968_v11  ;;  %v1946_v0 = vrot.slane %v1856_v17, 6  ;;  %v1948_v35 = vrot.slane %v1857_v18, 5  ;;  %2697 = vrot.lane.b32.xlu0 %v3654_v43, %s3688_s19 }
  0x7a   : > { %v1950_v38 = vrot.slane %v1858_v19, 4  ;;  %v1952_v56 = vrot.slane %v1859_v21, 3  ;;  %v1954_v14 = vrot.slane %v1860_v27, 2  ;;  %v1956_v5 = vrot.slane %v1861_v31, 1 }
  0x7b   : > { %v3984_v9 = vcombine.high %v3972_v15, %v3972_v15  ;;  %v672_v58 = vcombine.high %v208_v23, %v208_v23  ;;  %v1947_v6 = vsel %vm1889_vm3, %v1946_v0, %v1945_v32  ;;  %v3989_v8 = vrot.slane %v208_v23, %v4568_v22 }
  0x7c   : > { %v689_v16 = vcombine.high %v209_v50, %v209_v50  ;;  %v3992_v49 = vrot.slane %v209_v50, %v4568_v22  ;;  %v1949_v26 = vsel %vm1892_vm4, %v1948_v35, %v1947_v6  ;;  %v706_v47 = vcombine.high %v210_v62, %v210_v62 }
  0x7d   : > { %v3997_v25 = vrot.slane %v672_v58, %v4568_v22  ;;  %v4000_v20 = vrot.slane %v210_v62, %v4568_v22  ;;  %v1951_v42 = vsel %vm1895_vm5, %v1950_v38, %v1949_v26  ;;  %v4006_v48 = vcombine.high %v3989_v8, %v3989_v8 }
  0x7e   : > { %v4009_v54 = vrot.slane %v689_v16, %v4568_v22  ;;  %v4013_v29 = vcombine.high %v3992_v49, %v3992_v49  ;;  %v1953_v41 = vsel %vm1898_vm6, %v1952_v56, %v1951_v42  ;;  %v4017_v59 = vrot.slane %v706_v47, %v4568_v22 }
  0x7f   : > { %v4021_v1 = vcombine.high %v4000_v20, %v4000_v20  ;;  %v723_v61 = vcombine.high %v211_v40, %v211_v40  ;;  %v1955_v63 = vsel %vm1901_vm7, %v1954_v14, %v1953_v41  ;;  %v4030_v3 = vrot.slane %v211_v40, %v4568_v22 }
  0x80   : > { %v4027_v4 = vcombine.high %v4009_v54, %v4009_v54  ;;  %v740_v7 = vcombine.high %v212_v57, %v212_v57  ;;  %v1957_v24 = vsel %vm1904_vm10, %v1956_v5, %v1955_v63  ;;  %v4037_v34 = vrot.slane %v212_v57, %v4568_v22 }
  0x81   : > { %v4034_v37 = vrot.slane %v723_v61, %v4568_v22  ;;  %v757_v2 = vcombine.high %v213_v53, %v213_v53  ;;  %v2005_v33 = vpack.c.b16 %v1957_v24, %v1957_v24  ;;  %v738_v55 = vcombine.high %v4030_v3, %v4030_v3 }
  0x82   : > { %v4042_v43 = vrot.slane %v740_v7, %v4568_v22  ;;  %v4045_v28 = vrot.slane %v213_v53, %v4568_v22  ;;  %v755_v30 = vcombine.high %v4037_v34, %v4037_v34  ;;  %v774_v18 = vcombine.high %v214_v52, %v214_v52 }
  0x83   : > { %v739_v39 = vcombine.high %v4034_v37, %v4034_v37  ;;  %v771_v17 = vrot.slane %v757_v2, %v4568_v22  ;;  %v2057_v19 = vsel %vm3834_vm11, %v2005_v33, %v2056_v51  ;;  %v781_v23 = vrot.slane %v214_v52, %v4568_v22 }
  0x84   : > { %4572 = vst [vmem:[#allocation17_spill] sm:$0xff] %v4045_v28  ;;  %v772_v21 = vcombine.high %v4045_v28, %v4045_v28  ;;  %v3314_v27 = vrot.slane %v3968_v11, 9  ;;  %2058 = vst [vmem:[#allocation2 + $0x28] sm:$0xf] %v2057_v19  ;;  %v4059_v32 = vrot.slane %v774_v18, %v4568_v22  ;;  %v3315_v50 = vrot.slane %v3978_v12, 9 }
  0x85   : > { %v773_v31 = vcombine.high %v771_v17, %v771_v17  ;;  %v3316_v0 = vrot.slane %v3972_v15, 9  ;;  %v789_v35 = vcombine.high %v781_v23, %v781_v23  ;;  %v3317_v38 = vrot.slane %v3984_v9, 9 }
  0x86   : > { %4573 = vst [vmem:[#allocation18_spill] sm:$0xff] %v4059_v32  ;;  %v3318_v56 = vrot.slane %v3989_v8, 9  ;;  %v3319_v62 = vrot.slane %v4006_v48, 9  ;;  %v3320_v14 = vrot.slane %v3997_v25, 9  ;;  %v3322_v5 = vrot.slane %v3992_v49, 9 }
  0x87   : > { %v3323_v58 = vrot.slane %v4013_v29, 9  ;;  %v3324_v6 = vrot.slane %v4009_v54, 9  ;;  %v3325_v40 = vrot.slane %v4027_v4, 9  ;;  %v3326_v16 = vrot.slane %v4000_v20, 9 }
  0x88   : > { %v3327_v26 = vrot.slane %v4021_v1, 9  ;;  %v3328_v57 = vrot.slane %v4017_v59, 9  ;;  %v3330_v47 = vrot.slane %v4030_v3, 9  ;;  %v3331_v42 = vrot.slane %v738_v55, 9 }
  0x89   : > { %v3332_v53 = vrot.slane %v4034_v37, 9  ;;  %v3333_v41 = vrot.slane %v739_v39, 9  ;;  %v3334_v61 = vrot.slane %v4037_v34, 9  ;;  %v3335_v63 = vrot.slane %v755_v30, 9 }
  0x8a   : > { %v3336_v52 = vrot.slane %v4042_v43, 9  ;;  %v3338_v7 = vrot.slane %v4045_v28, 9  ;;  %v3339_v24 = vrot.slane %v772_v21, 9  ;;  %v3340_v51 = vrot.slane %v771_v17, 9 }
  0x8b   : > { %v3341_v2 = vrot.slane %v773_v31, 9  ;;  %v3342_v33 = vrot.slane %v781_v23, 9  ;;  %v3653_v18 = vld [vmem:[#allocation2 + $0x20] ss:$8 sps:$4 sm:$0xff]   ;;  %v3343_v19 = vrot.slane %v789_v35, 9  ;;  %v3344_v44 = vrot.slane %v4059_v32, 9 }
  0x8c   : > { %v1399_v45 = vmax.f32 %v3968_v11, %v3314_v27  ;;  %v1400_v46 = vmax.f32 %v3978_v12, %v3315_v50  ;;  %v1401_v60 = vmax.f32 %v3972_v15, %v3316_v0  ;;  %v1402_v36 = vmax.f32 %v3984_v9, %v3317_v38  ;;  %2699 = vrot.lane.b32.xlu1 %v3653_v18, %s3688_s19 }
  0x8d   : > { %v1403_v10 = vmax.f32 %v3989_v8, %v3318_v56  ;;  %v1404_v13 = vmax.f32 %v4006_v48, %v3319_v62  ;;  %v1405_v22 = vmax.f32 %v3997_v25, %v3320_v14  ;;  %v1407_v28 = vmax.f32 %v3992_v49, %v3322_v5  ;;  %v4575_v5 = vld [vmem:[#allocation18_spill] sm:$0xff] }
  0x8e   : > { %v1408_v32 = vmax.f32 %v4013_v29, %v3323_v58  ;;  %v1409_v11 = vmax.f32 %v4009_v54, %v3324_v6  ;;  %v1410_v12 = vmax.f32 %v4027_v4, %v3325_v40  ;;  %v1411_v15 = vmax.f32 %v4000_v20, %v3326_v16  ;;  %v4574_v54 = vld [vmem:[#allocation17_spill] sm:$0xff] }
  0x8f   : > { %v1412_v9 = vmax.f32 %v4021_v1, %v3327_v26  ;;  %v1413_v8 = vmax.f32 %v4017_v59, %v3328_v57  ;;  %v1415_v48 = vmax.f32 %v4030_v3, %v3330_v47  ;;  %v1416_v27 = vmax.f32 %v738_v55, %v3331_v42  ;;  %v1526_v16 = vld [vmem:[#allocation2 + $0x38] sm:$0x1] }
  0x90   : > { %v1417_v50 = vmax.f32 %v4034_v37, %v3332_v53  ;;  %v1418_v0 = vmax.f32 %v739_v39, %v3333_v41  ;;  %v1419_v49 = vmax.f32 %v4037_v34, %v3334_v61  ;;  %v1420_v38 = vmax.f32 %v755_v30, %v3335_v63  ;;  %v1529_v34 = vld [vmem:[#allocation2 + $0x40] sm:$0x1] }
  0x91   : > { %v1421_v29 = vmax.f32 %v4042_v43, %v3336_v52  ;;  %v1423_v56 = vmax.f32 %v4574_v54, %v3338_v7  ;;  %v1424_v4 = vmax.f32 %v772_v21, %v3339_v24  ;;  %v1425_v62 = vmax.f32 %v771_v17, %v3340_v51 }
  0x92   : > { %v1426_v20 = vmax.f32 %v773_v31, %v3341_v2  ;;  %v1427_v14 = vmax.f32 %v781_v23, %v3342_v33  ;;  %v1428_v1 = vmax.f32 %v789_v35, %v3343_v19  ;;  %v1429_v58 = vmax.f32 %v4575_v5, %v3344_v44 }
  0x93   : > { %v1479_v6 = vmax.f32 %v1399_v45, %v1407_v28  ;;  %v1480_v3 = vmax.f32 %v1400_v46, %v1408_v32  ;;  %v1481_v55 = vmax.f32 %v1401_v60, %v1409_v11  ;;  %v1482_v40 = vmax.f32 %v1402_v36, %v1410_v12 }
  0x94   : > { %v1483_v37 = vmax.f32 %v1403_v10, %v1411_v15  ;;  %v1484_v39 = vmax.f32 %v1404_v13, %v1412_v9  ;;  %v1485_v30 = vmax.f32 %v1405_v22, %v1413_v8  ;;  %v1487_v26 = vmax.f32 %v1415_v48, %v1423_v56 }
  0x95   : > { %v1488_v57 = vmax.f32 %v1416_v27, %v1424_v4  ;;  %v1489_v47 = vmax.f32 %v1417_v50, %v1425_v62  ;;  %v1490_v42 = vmax.f32 %v1418_v0, %v1426_v20  ;;  %v1491_v21 = vmax.f32 %v1419_v49, %v1427_v14  ;;  %v203_v14 = vld [vmem:[%s3741_s17 + $0xa0] sm:$0xff] }
  0x96   : > { %v1492_v17 = vmax.f32 %v1420_v38, %v1428_v1  ;;  %v1493_v31 = vmax.f32 %v1421_v29, %v1429_v58  ;;  %v1527_v35 = vsel %vm3727_vm2, 0, %v1526_v16  ;;  %v1530_v46 = vsel %vm3727_vm2, 0, %v1529_v34 }
  0x97   : > { %v3537_v60 = vpack.c.bf16 %v1479_v6, %v1479_v6  ;;  %v3538_v36 = vpack.c.bf16 %v1480_v3, %v1480_v3  ;;  %1528 = vst [vmem:[#allocation2 + $0x38] sm:$0x1] %v1527_v35  ;;  %1531 = vst [vmem:[#allocation2 + $0x40] sm:$0x1] %v1530_v46  ;;  %v3539_v10 = vpack.c.bf16 %v1481_v55, %v1481_v55  ;;  %v204_v55 = vld [vmem:[%s3741_s17 + $0xa8] sm:$0xff]  ;;  %vm2309_vm13 = vcmask 1042432  }
  0x98   : > { %v3540_v45 = vpack.c.bf16 %v1482_v40, %v1482_v40  ;;  %v3541_v22 = vpack.c.bf16 %v1483_v37, %v1483_v37  ;;  %v3542_v13 = vpack.c.bf16 %v1484_v39, %v1484_v39  ;;  %v3543_v44 = vpack.c.bf16 %v1485_v30, %v1485_v30 }
  0x99   : > { %v3545_v28 = vpack.c.bf16 %v1487_v26, %v1487_v26  ;;  %v3546_v32 = vpack.c.bf16 %v1488_v57, %v1488_v57  ;;  %v3547_v53 = vpack.c.bf16 %v1489_v47, %v1489_v47  ;;  %v3548_v41 = vpack.c.bf16 %v1490_v42, %v1490_v42  ;;  %v4577_v57 = vld [vmem:[#allocation5_spill] sm:$0xff] }
  0x9a   : > { %v3549_v61 = vpack.c.bf16 %v1491_v21, %v1491_v21  ;;  %v3550_v63 = vpack.c.bf16 %v1492_v17, %v1492_v17  ;;  %v3551_v52 = vpack.c.bf16 %v1493_v31, %v1493_v31  ;;  %v1871_v7 = vunpack.c.l.b16 %v3537_v60  ;;  %v205_v17 = vld [vmem:[%s3741_s17 + $0xb0] sm:$0xff] }
  0x9b   : > { %v1872_v24 = vunpack.c.l.b16 %v3538_v36  ;;  %v1873_v51 = vunpack.c.l.b16 %v3539_v10  ;;  %v1874_v2 = vunpack.c.l.b16 %v3540_v45  ;;  %v1875_v33 = vunpack.c.l.b16 %v3541_v22  ;;  %v206_v10 = vld [vmem:[%s3741_s17 + $0xb8] sm:$0xff] }
  0x9c   : > { %v1876_v18 = vunpack.c.l.b16 %v3542_v13  ;;  %v1877_v19 = vunpack.c.l.b16 %v3543_v44  ;;  %v1879_v11 = vunpack.c.l.b16 %v3545_v28  ;;  %v1880_v12 = vunpack.c.l.b16 %v3546_v32 }
  0x9d   : > { %v1881_v15 = vunpack.c.l.b16 %v3547_v53  ;;  %v1882_v9 = vunpack.c.l.b16 %v3548_v41  ;;  %v1883_v8 = vunpack.c.l.b16 %v3549_v61  ;;  %v1884_v48 = vunpack.c.l.b16 %v3550_v63 }
  0x9e   : > { %v1885_v27 = vunpack.c.l.b16 %v3551_v52  ;;  %v1971_v50 = vrot.slane %v1871_v7, 7  ;;  %v1972_v0 = vrot.slane %v1872_v24, 6  ;;  %v1974_v49 = vrot.slane %v1873_v51, 5  ;;  %v2068_v36 = vld [vmem:[#allocation2 + $0x38] sm:$0xf] }
  0x9f   : > { %v1976_v38 = vrot.slane %v1874_v2, 4  ;;  %v1978_v29 = vrot.slane %v1875_v33, 3  ;;  %v1980_v54 = vrot.slane %v1876_v18, 2  ;;  %v1982_v4 = vrot.slane %v1877_v19, 1  ;;  %v2074_v41 = vld [vmem:[#allocation2 + $0x40] sm:$0xf] }
  0xa0   : > { %v1973_v56 = vsel %vm1889_vm3, %v1972_v0, %v1971_v50  ;;  %v1984_v62 = vrot.slane %v1879_v11, 7  ;;  %v1985_v20 = vrot.slane %v1880_v12, 6  ;;  %v1987_v58 = vrot.slane %v1881_v15, 5 }
  0xa1   : > { %v1975_v1 = vsel %vm1892_vm4, %v1974_v49, %v1973_v56  ;;  %v1989_v6 = vrot.slane %v1882_v9, 4  ;;  %v1991_v3 = vrot.slane %v1883_v8, 3  ;;  %v1993_v39 = vrot.slane %v1884_v48, 2 }
  0xa2   : > { %v1977_v40 = vsel %vm1895_vm5, %v1976_v38, %v1975_v1  ;;  %v1986_v37 = vsel %vm1889_vm3, %v1985_v20, %v1984_v62  ;;  %v1995_v16 = vrot.slane %v1885_v27, 1  ;;  %v587_v26 = vcombine.high %v203_v14, %v203_v14 }
  0xa3   : > { %v1979_v34 = vsel %vm1898_vm6, %v1978_v29, %v1977_v40  ;;  %v1988_v30 = vsel %vm1892_vm4, %v1987_v58, %v1986_v37  ;;  %v594_v47 = vrot.slane %v203_v14, %v4577_v57  ;;  %v604_v31 = vcombine.high %v204_v55, %v204_v55 }
  0xa4   : > { %v1981_v42 = vsel %vm1901_vm7, %v1980_v54, %v1979_v34  ;;  %v1990_v21 = vsel %vm1895_vm5, %v1989_v6, %v1988_v30  ;;  %v611_v35 = vrot.slane %v204_v55, %v4577_v57  ;;  %v601_v45 = vrot.slane %v587_v26, %v4577_v57  ;;  %v1523_v55 = vld [vmem:[#allocation2 + $0x30] sm:$0x1] }
  0xa5   : > { %v1983_v46 = vsel %vm1904_vm10, %v1982_v4, %v1981_v42  ;;  %v1992_v60 = vsel %vm1898_vm6, %v1991_v3, %v1990_v21  ;;  %v602_v22 = vcombine.high %v594_v47, %v594_v47  ;;  %v4124_v28 = vrot.slane %v604_v31, %v4577_v57 }
  0xa6   : > { %v1994_v13 = vsel %vm1901_vm7, %v1993_v39, %v1992_v60  ;;  %v2009_v44 = vpack.c.b16 %v1983_v46, %v1983_v46  ;;  %v619_v32 = vcombine.high %v611_v35, %v611_v35  ;;  %v603_v61 = vcombine.high %v601_v45, %v601_v45 }
  0xa7   : > { %v1996_v53 = vsel %vm1904_vm10, %v1995_v16, %v1994_v13  ;;  %v621_v63 = vcombine.high %v205_v17, %v205_v17  ;;  %v628_v52 = vrot.slane %v205_v17, %v4577_v57  ;;  %v638_v2 = vcombine.high %v206_v10, %v206_v10  ;;  %v4579_v13 = vld [vmem:[#allocation11_spill] sm:$0xff] }
  0xa8   : > { %v2011_v7 = vpack.c.b16 %v1996_v53, %v1996_v53  ;;  %v2069_v51 = vsel %vm3834_vm11, %v2009_v44, %v2068_v36  ;;  %v645_v33 = vrot.slane %v206_v10, %v4577_v57  ;;  %v3298_v11 = vrot.slane %v594_v47, 9 }
  0xa9   : > { %2070 = vst [vmem:[#allocation2 + $0x38] sm:$0xf] %v2069_v51  ;;  %v635_v18 = vrot.slane %v621_v63, %v4577_v57  ;;  %v636_v19 = vcombine.high %v628_v52, %v628_v52  ;;  %v3299_v12 = vrot.slane %v602_v22, 9  ;;  %v4135_v9 = vrot.slane %v638_v2, %v4577_v57  ;;  %v4580_v51 = vld [vmem:[#allocation12_spill] sm:$0xff] }
  0xaa   : > { %v2075_v15 = vsel %vm3834_vm11, %v2011_v7, %v2074_v41  ;;  %v653_v8 = vcombine.high %v645_v33, %v645_v33  ;;  %v3300_v48 = vrot.slane %v601_v45, 9  ;;  %v3301_v50 = vrot.slane %v603_v61, 9 }
  0xab   : > { %2076 = vst [vmem:[#allocation2 + $0x40] sm:$0xf] %v2075_v15  ;;  %v637_v27 = vcombine.high %v635_v18, %v635_v18  ;;  %v3302_v0 = vrot.slane %v611_v35, 9  ;;  %v3303_v49 = vrot.slane %v619_v32, 9  ;;  %v3304_v38 = vrot.slane %v4124_v28, 9 }
  0xac   : > { %v3306_v29 = vrot.slane %v628_v52, 9  ;;  %v3307_v54 = vrot.slane %v636_v19, 9  ;;  %v3308_v56 = vrot.slane %v635_v18, 9  ;;  %v3310_v62 = vrot.slane %v645_v33, 9 }
  0xad   : > { %v3309_v4 = vrot.slane %v637_v27, 9  ;;  %v3311_v20 = vrot.slane %v653_v8, 9  ;;  %v3312_v14 = vrot.slane %v4135_v9, 9  ;;  %v1383_v1 = vmax.f32 %v594_v47, %v3298_v11 }
  0xae   : > { %v1384_v58 = vmax.f32 %v602_v22, %v3299_v12  ;;  %v1385_v6 = vmax.f32 %v601_v45, %v3300_v48  ;;  %v1386_v3 = vmax.f32 %v603_v61, %v3301_v50  ;;  %v1387_v40 = vmax.f32 %v611_v35, %v3302_v0  ;;  %v1540_v0 = vld [vmem:[#allocation2 + $0xc] sm:$0x1] }
  0xaf   : > { %v1388_v37 = vmax.f32 %v619_v32, %v3303_v49  ;;  %v1389_v39 = vmax.f32 %v4124_v28, %v3304_v38  ;;  %v1391_v16 = vmax.f32 %v628_v52, %v3306_v29  ;;  %v1392_v34 = vmax.f32 %v636_v19, %v3307_v54 }
  0xb0   : > { %v1393_v30 = vmax.f32 %v635_v18, %v3308_v56  ;;  %v1394_v26 = vmax.f32 %v637_v27, %v3309_v4  ;;  %v1395_v57 = vmax.f32 %v645_v33, %v3310_v62  ;;  %v1396_v42 = vmax.f32 %v653_v8, %v3311_v20  ;;  %v4583_v27 = vld [vmem:[#allocation13_spill] sm:$0xff]  ;;  %v1543_v56 = vld [vmem:[#allocation2 + $0x14] sm:$0x1]  ;;  %v4584_v20 = vld [vmem:[#allocation14_spill] sm:$0xff] }
  0xb1   : > { %v1397_v21 = vmax.f32 %v4135_v9, %v3312_v14  ;;  %v1471_v17 = vmax.f32 %v1383_v1, %v1391_v16  ;;  %v1524_v47 = vsel %vm3727_vm2, 0, %v1523_v55  ;;  %v1472_v46 = vmax.f32 %v1384_v58, %v1392_v34 }
  0xb2   : > { %v3663_v31 = vld [vmem:[#allocation2 + $0x38] ss:$8 sps:$4 sm:$0xff]   ;;  %v1473_v60 = vmax.f32 %v1385_v6, %v1393_v30  ;;  %v1474_v36 = vmax.f32 %v1386_v3, %v1394_v26  ;;  %v1475_v35 = vmax.f32 %v1387_v40, %v1395_v57  ;;  %1525 = vst [vmem:[#allocation2 + $0x30] sm:$0x1] %v1524_v47  ;;  %v1476_v10 = vmax.f32 %v1388_v37, %v1396_v42 }
  0xb3   : > { %v1477_v45 = vmax.f32 %v1389_v39, %v1397_v21  ;;  %v3529_v22 = vpack.c.bf16 %v1471_v17, %v1471_v17  ;;  %v280_v44 = vcombine.high %v4579_v13, %v4579_v13  ;;  %2407 = vrot.lane.b32.xlu1 %v3663_v31, %s3687_s18  ;;  %v3530_v32 = vpack.c.bf16 %v1472_v46, %v1472_v46  ;;  %v1546_v21 = vld [vmem:[#allocation2 + $0x1c] sm:$0x1] }
  0xb4   : > { %v3531_v53 = vpack.c.bf16 %v1473_v60, %v1473_v60  ;;  %v3532_v41 = vpack.c.bf16 %v1474_v36, %v1474_v36  ;;  %v3533_v61 = vpack.c.bf16 %v1475_v35, %v1475_v35  ;;  %v3534_v63 = vpack.c.bf16 %v1476_v10, %v1476_v10  ;;  %v4168_v36 = vld [vmem:[#allocation2 + $0x8] sm:$0xe] }
  0xb5   : > { %v3535_v52 = vpack.c.bf16 %v1477_v45, %v1477_v45  ;;  %v1863_v7 = vunpack.c.l.b16 %v3529_v22  ;;  %v314_v2 = vcombine.high %v4580_v51, %v4580_v51  ;;  %v1864_v33 = vunpack.c.l.b16 %v3530_v32  ;;  %v4585_v10 = vld [vmem:[#allocation7_spill] sm:$0xff] }
  0xb6   : > { %v1865_v18 = vunpack.c.l.b16 %v3531_v53  ;;  %v1866_v19 = vunpack.c.l.b16 %v3532_v41  ;;  %v1867_v11 = vunpack.c.l.b16 %v3533_v61  ;;  %v1868_v15 = vunpack.c.l.b16 %v3534_v63  ;;  %v1549_v63 = vld [vmem:[#allocation2 + $0x24] sm:$0x1] }
  0xb7   : > { %v1869_v8 = vunpack.c.l.b16 %v3535_v52  ;;  %v1958_v48 = vrot.slane %v1863_v7, 7  ;;  %v348_v50 = vcombine.high %v4583_v27, %v4583_v27  ;;  %v1959_v49 = vrot.slane %v1864_v33, 6  ;;  %v1552_v52 = vld [vmem:[#allocation2 + $0x2c] sm:$0x1]  ;;  %v4588_v27 = vld [vmem:[#allocation10_spill] sm:$0xff] }
  0xb8   : > { %v1961_v38 = vrot.slane %v1865_v18, 5  ;;  %v1963_v29 = vrot.slane %v1866_v19, 4  ;;  %v1965_v54 = vrot.slane %v1867_v11, 3  ;;  %v1967_v4 = vrot.slane %v1868_v15, 2  ;;  %v4185_v11 = vld [vmem:[#allocation2 + $0x10] sm:$0xe] }
  0xb9   : > { %v1969_v62 = vrot.slane %v1869_v8, 1  ;;  %v382_v14 = vcombine.high %v4584_v20, %v4584_v20  ;;  %v3225_v1 = vrot.slane %v280_v44, 9  ;;  %v1960_v58 = vsel %vm1889_vm3, %v1959_v49, %v1958_v48  ;;  %v2062_v46 = vld [vmem:[#allocation2 + $0x30] sm:$0xf]  ;;  %v4587_v8 = vld [vmem:[#allocation9_spill] sm:$0xff] }
  0xba   : > { %v3233_v6 = vrot.slane %v314_v2, 9  ;;  %v3241_v3 = vrot.slane %v348_v50, 9  ;;  %v1541_v55 = vsel %vm4150_vm12, 0, %v1540_v0  ;;  %v1962_v40 = vsel %vm1892_vm4, %v1961_v38, %v1960_v58  ;;  %v4193_v0 = vld [vmem:[#allocation2 + $0x8] sm:$0xe] }
  0xbb   : > { %v3249_v37 = vrot.slane %v382_v14, 9  ;;  %v1310_v39 = vmax.f32 %v280_v44, %v3225_v1  ;;  %1542 = vst [vmem:[#allocation2 + $0xc] sm:$0x1] %v1541_v55  ;;  %v1544_v16 = vsel %vm4150_vm12, 0, %v1543_v56  ;;  %v1964_v34 = vsel %vm1895_vm5, %v1963_v29, %v1962_v40  ;;  %v4586_v44 = vld [vmem:[#allocation8_spill] sm:$0xff]  ;;  %v4589_v56 = vld [vmem:[#allocation15_spill] sm:$0xff] }
  0xbc   : > { %v1318_v30 = vmax.f32 %v314_v2, %v3233_v6  ;;  %v1326_v26 = vmax.f32 %v348_v50, %v3241_v3  ;;  %1545 = vst [vmem:[#allocation2 + $0x14] sm:$0x1] %v1544_v16  ;;  %v1966_v57 = vsel %vm1898_vm6, %v1965_v54, %v1964_v34  ;;  %v3689_v35 = vmov 0   ;;  %v4195_v38 = vld [vmem:[#allocation2 + $0x10] sm:$0xe] }
  0xbd   : > { %v1334_v42 = vmax.f32 %v382_v14, %v3249_v37  ;;  %v1968_v17 = vsel %vm1901_vm7, %v1967_v4, %v1966_v57  ;;  %1496 = vst.msk [vmem:[#allocation2] sm:$0xf] %vm1495_vm8, %v3689_v35  ;;  %1500 = vst.msk [vmem:[#allocation2 + $0x48] sm:$0xf] %vm1495_vm8, %v3689_v35  ;;  %v416_v45 = vcombine.high %v4585_v10, %v4585_v10  ;;  %v1547_v53 = vsel %vm4150_vm12, 0, %v1546_v21 }
  0xbe   : > { %v1438_v47 = vmax.f32 %v1310_v39, %v1318_v30  ;;  %v1970_v31 = vsel %vm1904_vm10, %v1969_v62, %v1968_v17  ;;  %1498 = vst.msk [vmem:[#allocation2 + $0x4] sm:$0x1] %vm1497_vm0, %v3689_v35  ;;  %1501 = vst.msk [vmem:[#allocation2 + $0x4c] sm:$0x1] %vm1497_vm0, %v3689_v35  ;;  %v450_v32 = vcombine.high %v4586_v44, %v4586_v44  ;;  %vm2310_vm14 = vcmask 1046532   ;;  %v4590_v62 = vld [vmem:[#allocation16_spill] sm:$0xff] }
  0xbf   : > { %v1446_v60 = vmax.f32 %v1326_v26, %v1334_v42  ;;  %v2007_v22 = vpack.c.b16 %v1970_v31, %v1970_v31  ;;  %v3257_v61 = vrot.slane %v416_v45, 9  ;;  %1548 = vst [vmem:[#allocation2 + $0x1c] sm:$0x1] %v1547_v53  ;;  %v3446_v2 = vrot.slane %v4168_v36, 9  ;;  %v4197_v29 = vld [vmem:[#allocation2 + $0x18] sm:$0xe]  ;;  %vm4237_vm15 = vmor %vm2309_vm13, %vm2310_vm14 }
  0xc0   : > { %v3553_v13 = vpack.c.bf16 %v1438_v47, %v1438_v47  ;;  %v3265_v33 = vrot.slane %v450_v32, 9  ;;  %v484_v48 = vcombine.high %v4587_v8, %v4587_v8  ;;  %v518_v24 = vcombine.high %v4588_v27, %v4588_v27  ;;  %v4199_v54 = vld [vmem:[#allocation2 + $0x18] sm:$0xe]  ;;  %v4205_v14 = vld [vmem:[#allocation2 + $0x10] sm:$0xe] }
  0xc1   : > { %v3554_v41 = vpack.c.bf16 %v1446_v60, %v1446_v60  ;;  %v2063_v7 = vsel %vm3834_vm11, %v2007_v22, %v2062_v46  ;;  %v1342_v15 = vmax.f32 %v416_v45, %v3257_v61  ;;  %v552_v4 = vcombine.high %v4589_v56, %v4589_v56  ;;  %v4211_v55 = vld [vmem:[#allocation2 + $0x20] sm:$0xe]  ;;  %v4219_v17 = vld [vmem:[#allocation2 + $0x18] sm:$0xe]  ;;  %v4222_v10 = vld [vmem:[#allocation2 + $0x28] sm:$0xe] }
  0xc2   : > { %v2035_v51 = vld [vmem:[#allocation2 + $0xc] sm:$0x1]  ;;  %2064 = vst [vmem:[#allocation2 + $0x30] sm:$0xf] %v2063_v7  ;;  %v1350_v49 = vmax.f32 %v450_v32, %v3265_v33  ;;  %v586_v20 = vcombine.high %v4590_v62, %v4590_v62  ;;  %v3273_v1 = vrot.slane %v484_v48, 9  ;;  %v3281_v58 = vrot.slane %v518_v24, 9 }
  0xc3   : > { %v2036_v18 = vsel %vm3727_vm2, %v3553_v13, %v2035_v51  ;;  %v2041_v19 = vld [vmem:[#allocation2 + $0x14] sm:$0x1]  ;;  %v1550_v6 = vsel %vm4150_vm12, 0, %v1549_v63  ;;  %v1553_v3 = vsel %vm4150_vm12, 0, %v1552_v52  ;;  %v3447_v40 = vrot.slane %v4185_v11, 9 }
  0xc4   : > { %2037 = vst [vmem:[#allocation2 + $0xc] sm:$0x1] %v2036_v18  ;;  %v2042_v50 = vsel %vm3727_vm2, %v3554_v41, %v2041_v19  ;;  %v1454_v39 = vmax.f32 %v1342_v15, %v1350_v49  ;;  %v3289_v16 = vrot.slane %v552_v4, 9  ;;  %v3297_v34 = vrot.slane %v586_v20, 9  ;;  %1551 = vst [vmem:[#allocation2 + $0x24] sm:$0x1] %v1550_v6 }
  0xc5   : > { %2043 = vst [vmem:[#allocation2 + $0x14] sm:$0x1] %v2042_v50  ;;  %v1537_v37 = vld [vmem:[#allocation2 + $0x4] sm:$0x1]  ;;  %1554 = vst [vmem:[#allocation2 + $0x2c] sm:$0x1] %v1553_v3  ;;  %v1358_v42 = vmax.f32 %v484_v48, %v3273_v1  ;;  %v1366_v21 = vmax.f32 %v518_v24, %v3281_v58  ;;  %v620_v8 = vcombine.high %v4124_v28, %v4124_v28 }
  0xc6   : > { %v1538_v30 = vsel %vm4150_vm12, 0, %v1537_v37  ;;  %v4216_v26 = vld [vmem:[#allocation2] sm:$0xe]  ;;  %v3427_v57 = vrot.slane %v4193_v0, 9  ;;  %v3555_v47 = vpack.c.bf16 %v1454_v39, %v1454_v39  ;;  %v2047_v31 = vld [vmem:[#allocation2 + $0x1c] sm:$0x1]  ;;  %v1374_v60 = vmax.f32 %v552_v4, %v3289_v16 }
  0xc7   : > { %1539 = vst [vmem:[#allocation2 + $0x4] sm:$0x1] %v1538_v30  ;;  %v3466_v46 = vrot.slane %v4195_v38, 9  ;;  %v1382_v35 = vmax.f32 %v586_v20, %v3297_v34  ;;  %v3467_v45 = vrot.slane %v4197_v29, 9  ;;  %v3428_v22 = vrot.slane %v4205_v14, 9 }
  0xc8   : > { %v3429_v13 = vrot.slane %v4199_v54, 9  ;;  %v1462_v44 = vmax.f32 %v1358_v42, %v1366_v21  ;;  %v4227_v32 = vld [vmem:[#allocation2 + $0x20] sm:$0xe]  ;;  %v3426_v41 = vrot.slane %v4216_v26, 9  ;;  %v2048_v61 = vsel %vm3727_vm2, %v3555_v47, %v2047_v31  ;;  %v1555_v37 = vld [vmem:[#allocation2 + $0x34] sm:$0x1] }
  0xc9   : > { %v3668_v53 = vld [vmem:[#allocation2 + $0x28] ss:$8 sps:$4 sm:$0xff]   ;;  %v1470_v63 = vmax.f32 %v1374_v60, %v1382_v35  ;;  %v3468_v52 = vrot.slane %v4211_v55, 9  ;;  %v4233_v7 = vld [vmem:[#allocation2 + $0x20] sm:$0xe]  ;;  %v3469_v11 = vrot.slane %v4222_v10, 9  ;;  %v654_v49 = vcombine.high %v4135_v9, %v4135_v9 }
  0xca   : > { %2049 = vst [vmem:[#allocation2 + $0x1c] sm:$0x1] %v2048_v61  ;;  %v3556_v19 = vpack.c.bf16 %v1462_v44, %v1462_v44  ;;  %v3448_v15 = vrot.slane %v4219_v17, 9  ;;  %2405 = vrot.lane.b32.xlu0 %v3668_v53, %s3687_s18  ;;  %v3449_v20 = vrot.slane %v4227_v32, 9  ;;  %v688_v14 = vcombine.high %v3997_v25, %v3997_v25  ;;  %v1558_v42 = vld [vmem:[#allocation2 + $0x3c] sm:$0x1] }
  0xcb   : > { %v2576_v33 = vld [vmem:[#allocation2 + $0xc] sm:$0x1]  ;;  %v3557_v0 = vpack.c.bf16 %v1470_v63, %v1470_v63  ;;  %v2053_v62 = vld [vmem:[#allocation2 + $0x24] sm:$0x1]  ;;  %v722_v28 = vcombine.high %v4017_v59, %v4017_v59  ;;  %v3430_v59 = vrot.slane %v4233_v7, 9  ;;  %v3305_v36 = vrot.slane %v620_v8, 9 }
  0xcc   : > { %v2280_v18 = vld [vmem:[#allocation2 + $0xc] sm:$0x1]  ;;  %v2578_v48 = vld [vmem:[#allocation2 + $0x14] sm:$0x1]  ;;  %v2609_v27 = vrot.slane %v2576_v33, 5  ;;  %v2054_v9 = vsel %vm3727_vm2, %v3556_v19, %v2053_v62  ;;  %v3313_v26 = vrot.slane %v654_v49, 9  ;;  %v790_v54 = vcombine.high %v4575_v5, %v4575_v5 }
  0xcd   : > { %v2318_v24 = vrot.slane %v2280_v18, 5  ;;  %v2872_v50 = vld [vmem:[#allocation2 + $0x14] sm:$0x1]  ;;  %v2613_v56 = vrot.slane %v2578_v48, 5  ;;  %v2059_v3 = vld [vmem:[#allocation2 + $0x2c] sm:$0x1]  ;;  %v1390_v31 = vmax.f32 %v620_v8, %v3305_v36 }
  0xce   : > { %v2282_v4 = vld [vmem:[#allocation2 + $0x14] sm:$0x1]  ;;  %v2610_v1 = vsel %vm4237_vm15, %v3446_v2, %v2609_v27  ;;  %v2905_v58 = vrot.slane %v2872_v50, 5  ;;  %v2278_v16 = vld [vmem:[#allocation2 + $0x4] sm:$0x1]  ;;  %v2060_v25 = vsel %vm3727_vm2, %v3557_v0, %v2059_v3  ;;  %v3321_v47 = vrot.slane %v688_v14, 9 }
  0xcf   : > { %v2322_v6 = vrot.slane %v2282_v4, 5  ;;  %v2614_v39 = vsel %vm4237_vm15, %v3447_v40, %v2613_v56  ;;  %2055 = vst [vmem:[#allocation2 + $0x24] sm:$0x1] %v2054_v9  ;;  %v2314_v2 = vrot.slane %v2278_v16, 5  ;;  %v2319_v30 = vsel %vm4237_vm15, %v3427_v57, %v2318_v24  ;;  %2061 = vst [vmem:[#allocation2 + $0x2c] sm:$0x1] %v2060_v25 }
  0xd0   : > { %v3454_v34 = vcombine.low %v2610_v1, %v2614_v39  ;;  %v4266_v21 = vld [vmem:[#allocation2 + $0x28] sm:$0xe]  ;;  %v3329_v40 = vrot.slane %v722_v28, 9  ;;  %v1556_v60 = vsel %vm4150_vm12, 0, %v1555_v37  ;;  %v2906_v57 = vsel %vm4237_vm15, %v3466_v46, %v2905_v58  ;;  %v4291_v0 = vld [vmem:[#allocation2 + $0x30] sm:$0xe] }
  0xd1   : > { %v2315_v35 = vsel %vm4237_vm15, %v3426_v41, %v2314_v2  ;;  %v2874_v44 = vld [vmem:[#allocation2 + $0x1c] sm:$0x1]  ;;  %v2323_v61 = vsel %vm4237_vm15, %v3428_v22, %v2322_v6  ;;  %v1398_v33 = vmax.f32 %v654_v49, %v3313_v26  ;;  %1557 = vst [vmem:[#allocation2 + $0x34] sm:$0x1] %v1556_v60  ;;  %v1406_v27 = vmax.f32 %v688_v14, %v3321_v47  ;;  %v4293_v49 = vld [vmem:[#allocation2 + $0x38] sm:$0xe] }
  0xd2   : > { %2651 = vrot.lane.b32.xlu0 %v3454_v34, %s3690_s20  ;;  %v2284_v53 = vld [vmem:[#allocation2 + $0x1c] sm:$0x1]  ;;  %v3434_v18 = vcombine.low %v2315_v35, %v2319_v30  ;;  %v2909_v19 = vrot.slane %v2874_v44, 5  ;;  %v1414_v24 = vmax.f32 %v722_v28, %v3329_v40  ;;  %v1559_v38 = vsel %vm4150_vm12, 0, %v1558_v42  ;;  %v4305_v5 = vld [vmem:[#allocation2 + $0x28] sm:$0xe] }
  0xd3   : > { %v2580_v63 = vld [vmem:[#allocation2 + $0x1c] sm:$0x1]  ;;  %v2326_v8 = vrot.slane %v2284_v53, 5  ;;  %v1478_v41 = vmax.f32 %v1390_v31, %v1398_v33  ;;  %v3431_v50 = vrot.slane %v4266_v21, 9  ;;  %1560 = vst [vmem:[#allocation2 + $0x3c] sm:$0x1] %v1559_v38  ;;  %v756_v56 = vcombine.high %v4042_v43, %v4042_v43 }
  0xd4   : > { %v2617_v48 = vrot.slane %v2580_v63, 5  ;;  %2356 = vrot.lane.b32.xlu1 %v3434_v18, %s3691_s21  ;;  %v2910_v46 = vsel %vm4237_vm15, %v3467_v45, %v2909_v19  ;;  %v1486_v28 = vmax.f32 %v1406_v27, %v1414_v24  ;;  %v1561_v43 = vld [vmem:[#allocation2 + $0x44] sm:$0x1]  ;;  %v3432_v25 = vrot.slane %v4291_v0, 9  ;;  %v4331_v21 = vld [vmem:[#allocation2 + $0x40] sm:$0xe] }
  0xd5   : > { %v2327_v22 = vsel %vm4237_vm15, %v3429_v13, %v2326_v8  ;;  %v3474_v4 = vcombine.low %v2906_v57, %v2910_v46  ;;  %v3558_v3 = vpack.c.bf16 %v1478_v41, %v1478_v41  ;;  %v3433_v2 = vrot.slane %v4293_v49, 9  ;;  %v2422_v47 = vld [vmem:[#allocation2 + $0x18] sm:$0xf]  ;;  %v2424_v10 = vld [vmem:[#allocation2 + $0x20] sm:$0xf] }
  0xd6   : > { %v3435_v29 = vcombine.low %v2323_v61, %v2327_v22  ;;  %v2876_v62 = vld [vmem:[#allocation2 + $0x24] sm:$0x1]  ;;  %v2878_v13 = vld [vmem:[#allocation2 + $0x2c] sm:$0x1]  ;;  %v2618_v58 = vsel %vm4237_vm15, %v3448_v15, %v2617_v48  ;;  %v3559_v36 = vpack.c.bf16 %v1486_v28, %v1486_v28  ;;  %v3450_v7 = vrot.slane %v4305_v5, 9 }
  0xd7   : > { %v2582_v14 = vld [vmem:[#allocation2 + $0x24] sm:$0x1]  ;;  %v2913_v1 = vrot.slane %v2876_v62, 5  ;;  %v2288_v9 = vld [vmem:[#allocation2 + $0x2c] sm:$0x1]  ;;  %2947 = vrot.lane.b32.xlu0 %v3474_v4, %s3692_s22  ;;  %v2917_v37 = vrot.slane %v2878_v13, 5 }
  0xd8   : > { %v2286_v45 = vld [vmem:[#allocation2 + $0x24] sm:$0x1]  ;;  %v2621_v6 = vrot.slane %v2582_v14, 5  ;;  %v2334_v16 = vrot.slane %v2288_v9, 5  ;;  %2358 = vrot.lane.b32.xlu1 %v3435_v29, %s3691_s21  ;;  %v2065_v34 = vld [vmem:[#allocation2 + $0x34] sm:$0x1] }
  0xd9   : > { %v2330_v39 = vrot.slane %v2286_v45, 5  ;;  %v2914_v17 = vsel %vm4237_vm15, %v3468_v52, %v2913_v1  ;;  %v2584_v30 = vld [vmem:[#allocation2 + $0x2c] sm:$0x1]  ;;  %v2918_v26 = vsel %vm4237_vm15, %v3469_v11, %v2917_v37  ;;  %v4327_v52 = vld [vmem:[#allocation2 + $0x30] sm:$0xe]  ;;  %v2066_v11 = vsel %vm3727_vm2, %v3558_v3, %v2065_v34 }
  0xda   : > { %v2622_v15 = vsel %vm4237_vm15, %v3449_v20, %v2621_v6  ;;  %v2335_v32 = vsel %vm4237_vm15, %v3431_v50, %v2334_v16  ;;  %v4329_v20 = vld [vmem:[#allocation2 + $0x38] sm:$0xe]  ;;  %v3475_v40 = vcombine.low %v2914_v17, %v2918_v26  ;;  %v2423_v60 = vld [vmem:[#allocation2 + $0x1c] sm:$0x1]  ;;  %2067 = vst [vmem:[#allocation2 + $0x34] sm:$0x1] %v2066_v11 }
  0xdb   : > { %v3455_v42 = vcombine.low %v2618_v58, %v2622_v15  ;;  %v2331_v55 = vsel %vm4237_vm15, %v3430_v59, %v2330_v39  ;;  %v1505_v59 = vld [vmem:[#allocation2] sm:$0x1]  ;;  %v2071_v35 = vld [vmem:[#allocation2 + $0x3c] sm:$0x1]  ;;  %v2625_v44 = vrot.slane %v2584_v30, 5  ;;  %v3337_v57 = vrot.slane %v756_v56, 9 }
  0xdc   : > { %v3436_v31 = vcombine.low %v2331_v55, %v2335_v32  ;;  %v3345_v53 = vrot.slane %v790_v54, 9  ;;  %v1562_v61 = vsel %vm4150_vm12, 0, %v1561_v43  ;;  %2949 = vrot.lane.b32.xlu0 %v3475_v40, %s3692_s22  ;;  %v2072_v63 = vsel %vm3727_vm2, %v3559_v36, %v2071_v35  ;;  %v2425_v8 = vld [vmem:[#allocation2 + $0x24] sm:$0x1]  ;;  %v2119_v14 = vld [vmem:[#allocation2 + $0x8] sm:$0xf] }
  0xdd   : > { %2653 = vrot.lane.b32.xlu1 %v3455_v42, %s3690_s20  ;;  %v3451_v33 = vrot.slane %v4327_v52, 9  ;;  %1563 = vst [vmem:[#allocation2 + $0x44] sm:$0x1] %v1562_v61  ;;  %v3452_v18 = vrot.slane %v4329_v20, 9  ;;  %v3453_v19 = vrot.slane %v4331_v21, 9  ;;  %v1422_v48 = vmax.f32 %v756_v56, %v3337_v57 }
  0xde   : > { %2073 = vst [vmem:[#allocation2 + $0x3c] sm:$0x1] %v2072_v63  ;;  %v1430_v27 = vmax.f32 %v790_v54, %v3345_v53  ;;  %vm2133_vm0 = vsmask.f32 3328  ;;  %vm2134_vm1 = vsmask.f32 7440  ;;  %v2626_v43 = vsel %vm4237_vm15, %v3450_v7, %v2625_v44 }
  0xdf   : > { %v2463_v24 = vshrl.u32 %v2422_v47, 16  ;;  %v2466_v41 = vshll.u32 %v2422_v47, 16  ;;  %v2472_v38 = vshll.u32 %v2423_v60, 16  ;;  %v2477_v46 = vshrl.u32 %v2424_v10, 16  ;;  %v2118_v22 = vld [vmem:[#allocation2 + $0x4] sm:$0x1]  ;;  %vm4352_vm3 = vmor %vm2133_vm0, %vm2134_vm1 }
  0xe0   : > { %v1494_v50 = vmax.f32 %v1422_v48, %v1430_v27  ;;  %v2480_v4 = vshll.u32 %v2424_v10, 16  ;;  %v2486_v29 = vshll.u32 %v2425_v8, 16  ;;  %v1506_v62 = vsel %vm3727_vm2, 0, %v1505_v59  ;;  %2360 = vrot.lane.b32.xlu0 %v3436_v31, %s3691_s21  ;;  %v2120_v39 = vld [vmem:[#allocation2 + $0xc] sm:$0x1] }
  0xe1   : > { %v2465_v45 = vrot.slane %v2463_v24, 4  ;;  %v2468_v28 = vrot.slane %v2466_v41, 5  ;;  %v2474_v56 = vrot.slane %v2472_v38, 5  ;;  %v2479_v54 = vrot.slane %v2477_v46, 4  ;;  %1507 = vst [vmem:[#allocation2] sm:$0x1] %v1506_v62 }
  0xe2   : > { %v3560_v13 = vpack.c.bf16 %v1494_v50, %v1494_v50  ;;  %v2482_v1 = vrot.slane %v2480_v4, 5  ;;  %v2488_v58 = vrot.slane %v2486_v29, 5  ;;  %v2146_v6 = vshll.u32 %v2118_v22, 16  ;;  %v2290_v9 = vld [vmem:[#allocation2 + $0x34] sm:$0x1] }
  0xe3   : > { %v2586_v3 = vld [vmem:[#allocation2 + $0x34] sm:$0x1]  ;;  %v2469_v37 = vor.u32 %v2468_v28, %v2465_v45  ;;  %v2151_v16 = vshrl.u32 %v2119_v14, 16  ;;  %v2154_v5 = vshll.u32 %v2119_v14, 16  ;;  %v2718_v17 = vld [vmem:[#allocation2 + $0x20] sm:$0xf] }
  0xe4   : > { %v2338_v15 = vrot.slane %v2290_v9, 5  ;;  %v2629_v36 = vrot.slane %v2586_v3, 5  ;;  %v2077_v34 = vld [vmem:[#allocation2 + $0x44] sm:$0x1]  ;;  %v2483_v26 = vor.u32 %v2482_v1, %v2479_v54  ;;  %v4356_v42 = vrot.slane %v2146_v6, 5 }
  0xe5   : > { %v2292_v55 = vld [vmem:[#allocation2 + $0x3c] sm:$0x1]  ;;  %v2078_v32 = vsel %vm3727_vm2, %v3560_v13, %v2077_v34  ;;  %v2470_v20 = vrot.slane %v2469_v37, 4  ;;  %v2153_v47 = vrot.slane %v2151_v16, 4  ;;  %v2156_v35 = vrot.slane %v2154_v5, 5 }
  0xe6   : > { %v2588_v52 = vld [vmem:[#allocation2 + $0x3c] sm:$0x1]  ;;  %v2339_v10 = vsel %vm4237_vm15, %v3432_v25, %v2338_v15  ;;  %v2342_v40 = vrot.slane %v2292_v55, 5  ;;  %v2630_v31 = vsel %vm4237_vm15, %v3451_v33, %v2629_v36  ;;  %2079 = vst [vmem:[#allocation2 + $0x44] sm:$0x1] %v2078_v32  ;;  %v2484_v59 = vrot.slane %v2483_v26, 4 }
  0xe7   : > { %v2633_v11 = vrot.slane %v2588_v52, 5  ;;  %v3456_v7 = vcombine.low %v2626_v43, %v2630_v31  ;;  %v2475_v60 = vsel %vm4352_vm3, %v2470_v20, %v2474_v56  ;;  %v2160_v57 = vshll.u32 %v2120_v39, 16  ;;  %v2719_v53 = vld [vmem:[#allocation2 + $0x24] sm:$0x1]  ;;  %v2720_v27 = vld [vmem:[#allocation2 + $0x28] sm:$0xf]  ;;  %v2402_v30 = vpop.permute.xlu0 %2401 }
  0xe8   : > { %v2343_v0 = vsel %vm4237_vm15, %v3433_v2, %v2342_v40  ;;  %v2117_v44 = vld [vmem:[#allocation2] sm:$0xf]  ;;  %v2759_v61 = vshrl.u32 %v2718_v17, 16  ;;  %v2489_v33 = vsel %vm4352_vm3, %v2484_v59, %v2488_v58  ;;  %v2721_v49 = vld [vmem:[#allocation2 + $0x2c] sm:$0x1]  ;;  %v2157_v2 = vor.u32 %v2156_v35, %v2153_v47 }
  0xe9   : > { %v2634_v25 = vsel %vm4237_vm15, %v3452_v18, %v2633_v11  ;;  %v3437_v63 = vcombine.low %v2339_v10, %v2343_v0  ;;  %2655 = vrot.lane.b32.xlu0 %v3456_v7, %s3690_s20  ;;  %v2137_v8 = vshrl.u32 %v2117_v44, 16  ;;  %v2140_v48 = vshll.u32 %v2117_v44, 16  ;;  %v2121_v18 = vld [vmem:[#allocation2 + $0x10] sm:$0xf]  ;;  %v2122_v28 = vld [vmem:[#allocation2 + $0x14] sm:$0x1] }
  0xea   : > { %v4377_v24 = vcombine.low %v2475_v60, %v2489_v33  ;;  %v2162_v41 = vrot.slane %v2160_v57, 5  ;;  %v2761_v38 = vrot.slane %v2759_v61, 4  ;;  %v2762_v50 = vshll.u32 %v2718_v17, 16  ;;  %v2123_v37 = vld [vmem:[#allocation2 + $0x18] sm:$0xf] }
  0xeb   : > { %2362 = vrot.lane.b32.xlu1 %v3437_v63, %s3691_s21  ;;  %v2139_v46 = vrot.slane %v2137_v8, 4  ;;  %v2142_v22 = vrot.slane %v2140_v48, 5  ;;  %v2768_v4 = vshll.u32 %v2719_v53, 16  ;;  %v2158_v29 = vrot.slane %v2157_v2, 4  ;;  %v2124_v34 = vld [vmem:[#allocation2 + $0x1c] sm:$0x1] }
  0xec   : > { %v2773_v62 = vshrl.u32 %v2720_v27, 16  ;;  %v2776_v14 = vshll.u32 %v2720_v27, 16  ;;  %v2782_v45 = vshll.u32 %v2721_v49, 16  ;;  %v2764_v13 = vrot.slane %v2762_v50, 5  ;;  %v2125_v10 = vld [vmem:[#allocation2 + $0x20] sm:$0xf] }
  0xed   : > { %v2590_v56 = vld [vmem:[#allocation2 + $0x44] sm:$0x1]  ;;  %v2143_v54 = vor.u32 %v2142_v22, %v2139_v46  ;;  %v2770_v1 = vrot.slane %v2768_v4, 5  ;;  %v2165_v58 = vshrl.u32 %v2121_v18, 16  ;;  %v2163_v9 = vsel %vm4352_vm3, %v2158_v29, %v2162_v41  ;;  %v2127_v0 = vld [vmem:[#allocation2 + $0x28] sm:$0xf] }
  0xee   : > { %v2637_v6 = vrot.slane %v2590_v56, 5  ;;  %v2775_v3 = vrot.slane %v2773_v62, 4  ;;  %v2778_v43 = vrot.slane %v2776_v14, 5  ;;  %v2765_v16 = vor.u32 %v2764_v13, %v2761_v38  ;;  %v2126_v21 = vld [vmem:[#allocation2 + $0x24] sm:$0x1] }
  0xef   : > { %v2144_v39 = vrot.slane %v2143_v54, 4  ;;  %v2784_v5 = vrot.slane %v2782_v45, 5  ;;  %v2167_v17 = vrot.slane %v2165_v58, 4  ;;  %v2168_v26 = vshll.u32 %v2121_v18, 16  ;;  %v2128_v44 = vld [vmem:[#allocation2 + $0x2c] sm:$0x1] }
  0xf0   : > { %v2638_v15 = vsel %vm4237_vm15, %v3453_v19, %v2637_v6  ;;  %v2779_v36 = vor.u32 %v2778_v43, %v2775_v3  ;;  %v2174_v55 = vshll.u32 %v2122_v28, 16  ;;  %v2766_v20 = vrot.slane %v2765_v16, 4  ;;  %v2418_v48 = vld [vmem:[#allocation2 + $0x8] sm:$0xf]  ;;  %v2420_v38 = vld [vmem:[#allocation2 + $0x10] sm:$0xf] }
  0xf1   : > { %v3457_v32 = vcombine.low %v2634_v25, %v2638_v15  ;;  %v2149_v52 = vsel %vm4352_vm3, %v2144_v39, %v4356_v42  ;;  %v2179_v47 = vshrl.u32 %v2123_v37, 16  ;;  %v2170_v11 = vrot.slane %v2168_v26, 5  ;;  %v2419_v4 = vld [vmem:[#allocation2 + $0xc] sm:$0x1]  ;;  %v2421_v13 = vld [vmem:[#allocation2 + $0x14] sm:$0x1] }
  0xf2   : > { %v3422_v40 = vcombine.low %v2149_v52, %v2163_v9  ;;  %v2780_v31 = vrot.slane %v2779_v36, 4  ;;  %v2176_v7 = vrot.slane %v2174_v55, 5  ;;  %v2771_v19 = vsel %vm4352_vm3, %v2766_v20, %v2770_v1  ;;  %v2131_v58 = vld [vmem:[#allocation2 + $0x38] sm:$0xf]  ;;  %v3674_v43 = vld [vmem:[%s4516_s1] sm:$0xff]  }
  0xf3   : > { %2657 = vrot.lane.b32.xlu1 %v3457_v32, %s3690_s20  ;;  %v2181_v60 = vrot.slane %v2179_v47, 4  ;;  %v2182_v59 = vshll.u32 %v2123_v37, 16  ;;  %v2188_v35 = vshll.u32 %v2124_v34, 16  ;;  %v2171_v25 = vor.u32 %v2170_v11, %v2167_v17  ;;  %v2129_v17 = vld [vmem:[#allocation2 + $0x30] sm:$0xf]  ;;  %3591 = vmatprep.subr.bf16.mxu0 %v3674_v43 }
  0xf4   : > { %2260 = vrot.lane.b32.xlu0 %v3422_v40, %s3693_s23  ;;  %v2785_v42 = vsel %vm4352_vm3, %v2780_v31, %v2784_v5  ;;  %v2193_v57 = vshrl.u32 %v2125_v10, 16  ;;  %v2196_v53 = vshll.u32 %v2125_v10, 16  ;;  %v2202_v8 = vshll.u32 %v2126_v21, 16  ;;  %v2130_v15 = vld [vmem:[#allocation2 + $0x34] sm:$0x1]  ;;  %3605 = vmatprep.subr.bf16.mxu1 %v3674_v43 }
  0xf5   : > { %v3463_v61 = vcombine.low %v2771_v19, %v2785_v42  ;;  %v2184_v63 = vrot.slane %v2182_v59, 5  ;;  %v2190_v33 = vrot.slane %v2188_v35, 5  ;;  %v2172_v27 = vrot.slane %v2171_v25, 4  ;;  %3592 = vmatpush3.bf16.msra.mxu0 %v3674_v43  ;;  %3608 = vmatpush3.bf16.msra.mxu1 %v3674_v43  ;;  %v2132_v35 = vld [vmem:[#allocation2 + $0x3c] sm:$0x1] }
  0xf6   : > { %v2195_v49 = vrot.slane %v2193_v57, 4  ;;  %v2198_v2 = vrot.slane %v2196_v53, 5  ;;  %v2207_v41 = vshrl.u32 %v2127_v0, 16  ;;  %v2204_v46 = vrot.slane %v2202_v8, 5  ;;  %v2715_v53 = vld [vmem:[#allocation2 + $0x14] sm:$0x1] }
  0xf7   : > { %2560 = vrot.lane.b32.xlu1 %v4377_v24, %s3694_s24  ;;  %v2185_v18 = vor.u32 %v2184_v63, %v2181_v60  ;;  %v2210_v22 = vshll.u32 %v2127_v0, 16  ;;  %v2216_v50 = vshll.u32 %v2128_v44, 16  ;;  %v2177_v29 = vsel %vm4352_vm3, %v2172_v27, %v2176_v7  ;;  %v2714_v7 = vld [vmem:[#allocation2 + $0x10] sm:$0xf]  ;;  %v2716_v0 = vld [vmem:[#allocation2 + $0x18] sm:$0xf] }
  0xf8   : > { %v2199_v62 = vor.u32 %v2198_v2, %v2195_v49  ;;  %v2209_v14 = vrot.slane %v2207_v41, 4  ;;  %v2435_v45 = vshrl.u32 %v2418_v48, 16  ;;  %v2438_v1 = vshll.u32 %v2418_v48, 16  ;;  %v2430_v41 = vld [vmem:[#allocation2 + $0x38] sm:$0xf] }
  0xf9   : > { %v2186_v28 = vrot.slane %v2185_v18, 4  ;;  %v2212_v56 = vrot.slane %v2210_v22, 5  ;;  %v2218_v54 = vrot.slane %v2216_v50, 5  ;;  %v2444_v24 = vshll.u32 %v2419_v4, 16 }
  0xfa   : > { %v2200_v6 = vrot.slane %v2199_v62, 4  ;;  %v2437_v9 = vrot.slane %v2435_v45, 4  ;;  %v2449_v3 = vshrl.u32 %v2420_v38, 16  ;;  %v2440_v16 = vrot.slane %v2438_v1, 5  ;;  %v2431_v45 = vld [vmem:[#allocation2 + $0x3c] sm:$0x1] }
  0xfb   : > { %2856 = vrot.lane.b32.xlu1 %v3463_v61, %s3695_s27  ;;  %v2191_v37 = vsel %vm4352_vm3, %v2186_v28, %v2190_v33  ;;  %v2213_v39 = vor.u32 %v2212_v56, %v2209_v14  ;;  %v2452_v5 = vshll.u32 %v2420_v38, 16  ;;  %v2446_v26 = vrot.slane %v2444_v24, 5  ;;  %v2432_v1 = vld [vmem:[#allocation2 + $0x40] sm:$0xf] }
  0xfc   : > { %v3423_v36 = vcombine.low %v2177_v29, %v2191_v37  ;;  %v2205_v34 = vsel %vm4352_vm3, %v2200_v6, %v2204_v46  ;;  %v2451_v55 = vrot.slane %v2449_v3, 4  ;;  %v2441_v52 = vor.u32 %v2440_v16, %v2437_v9  ;;  %v2717_v46 = vld [vmem:[#allocation2 + $0x1c] sm:$0x1] }
  0xfd   : > { %v2214_v32 = vrot.slane %v2213_v39, 4  ;;  %v2454_v20 = vrot.slane %v2452_v5, 5  ;;  %v2458_v47 = vshll.u32 %v2421_v13, 16  ;;  %v2221_v10 = vshrl.u32 %v2129_v17, 16  ;;  %v2426_v5 = vld [vmem:[#allocation2 + $0x28] sm:$0xf] }
  0xfe   : > { %2262 = vrot.lane.b32.xlu0 %v3423_v36, %s3693_s23  ;;  %v2224_v40 = vshll.u32 %v2129_v17, 16  ;;  %v2230_v31 = vshll.u32 %v2130_v15, 16  ;;  %v2235_v11 = vshrl.u32 %v2131_v58, 16  ;;  %v2442_v19 = vrot.slane %v2441_v52, 4  ;;  %v2433_v36 = vld [vmem:[#allocation2 + $0x44] sm:$0x1] }
  0xff   : > { %v2219_v21 = vsel %vm4352_vm3, %v2214_v32, %v2218_v54  ;;  %v2455_v60 = vor.u32 %v2454_v20, %v2451_v55  ;;  %v2460_v59 = vrot.slane %v2458_v47, 5  ;;  %v2223_v25 = vrot.slane %v2221_v10, 4  ;;  %v2427_v47 = vld [vmem:[#allocation2 + $0x2c] sm:$0x1] }
 0x100   : > { %v3424_v42 = vcombine.low %v2205_v34, %v2219_v21  ;;  %v2226_v44 = vrot.slane %v2224_v40, 5  ;;  %v2232_v57 = vrot.slane %v2230_v31, 5  ;;  %v2447_v61 = vsel %vm4352_vm3, %v2442_v19, %v2446_v26 }
 0x101   : > { %v2456_v63 = vrot.slane %v2455_v60, 4  ;;  %v2237_v33 = vrot.slane %v2235_v11, 4  ;;  %v2238_v8 = vshll.u32 %v2131_v58, 16  ;;  %v2244_v27 = vshll.u32 %v2132_v35, 16  ;;  %v3676_v58 = vld [vmem:[%s4516_s1 + $0x8] sm:$0xff]  }
 0x102   : > { %2264 = vrot.lane.b32.xlu1 %v3424_v42, %s3693_s23  ;;  %v2227_v48 = vor.u32 %v2226_v44, %v2223_v25  ;;  %v2731_v49 = vshrl.u32 %v2714_v7, 16  ;;  %v2734_v2 = vshll.u32 %v2714_v7, 16  ;;  %v2740_v22 = vshll.u32 %v2715_v53, 16  ;;  %3593 = vmatprep.subr.bf16.mxu0 %v3676_v58  ;;  %v2428_v7 = vld [vmem:[#allocation2 + $0x30] sm:$0xf] }
 0x103   : > { %v2461_v38 = vsel %vm4352_vm3, %v2456_v63, %v2460_v59  ;;  %v2240_v18 = vrot.slane %v2238_v8, 5  ;;  %v2745_v50 = vshrl.u32 %v2716_v0, 16  ;;  %v2246_v62 = vrot.slane %v2244_v27, 5  ;;  %3606 = vmatprep.subr.bf16.mxu1 %v3676_v58  ;;  %3594 = vmatpush3.bf16.msra.mxu0 %v3676_v58  ;;  %v1532_v44 = vld [vmem:[#allocation2 + $0x48] sm:$0x1] }
 0x104   : > { %v3442_v4 = vcombine.low %v2447_v61, %v2461_v38  ;;  %v2228_v29 = vrot.slane %v2227_v48, 4  ;;  %v2733_v14 = vrot.slane %v2731_v49, 4  ;;  %v2736_v56 = vrot.slane %v2734_v2, 5  ;;  %3609 = vmatpush3.bf16.msra.mxu1 %v3676_v58  ;;  %v2429_v61 = vld [vmem:[#allocation2 + $0x34] sm:$0x1] }
 0x105   : > { %v2241_v28 = vor.u32 %v2240_v18, %v2237_v33  ;;  %v2742_v54 = vrot.slane %v2740_v22, 5  ;;  %v2747_v13 = vrot.slane %v2745_v50, 4  ;;  %v2748_v9 = vshll.u32 %v2716_v0, 16  ;;  %v2722_v2 = vld [vmem:[#allocation2 + $0x30] sm:$0xf] }
 0x106   : > { %2558 = vrot.lane.b32.xlu0 %v3442_v4, %s3694_s24  ;;  %v2233_v6 = vsel %vm4352_vm3, %v2228_v29, %v2232_v57  ;;  %v2754_v24 = vshll.u32 %v2717_v46, 16  ;;  %v2519_v3 = vshrl.u32 %v2430_v41, 16  ;;  %v2737_v37 = vor.u32 %v2736_v56, %v2733_v14  ;;  %v2724_v50 = vld [vmem:[#allocation2 + $0x38] sm:$0xf] }
 0x107   : > { %v2242_v43 = vrot.slane %v2241_v28, 4  ;;  %v2522_v39 = vshll.u32 %v2430_v41, 16  ;;  %v2528_v16 = vshll.u32 %v2431_v45, 16  ;;  %v2750_v17 = vrot.slane %v2748_v9, 5  ;;  %v2723_v41 = vld [vmem:[#allocation2 + $0x34] sm:$0x1] }
 0x108   : > { %v2756_v15 = vrot.slane %v2754_v24, 5  ;;  %v2521_v34 = vrot.slane %v2519_v3, 4  ;;  %v2533_v26 = vshrl.u32 %v2432_v1, 16  ;;  %v2738_v32 = vrot.slane %v2737_v37, 4  ;;  %v2725_v9 = vld [vmem:[#allocation2 + $0x3c] sm:$0x1] }
 0x109   : > { %v2247_v55 = vsel %vm4352_vm3, %v2242_v43, %v2246_v62  ;;  %v2524_v52 = vrot.slane %v2522_v39, 5  ;;  %v2530_v20 = vrot.slane %v2528_v16, 5  ;;  %v2751_v40 = vor.u32 %v2750_v17, %v2747_v13  ;;  %v1564_v13 = vld [vmem:[#allocation2 + $0x4c] sm:$0x1]  ;;  %v2726_v39 = vld [vmem:[#allocation2 + $0x40] sm:$0xf] }
 0x10a   : > { %v3425_v10 = vcombine.low %v2233_v6, %v2247_v55  ;;  %v2535_v31 = vrot.slane %v2533_v26, 4  ;;  %v2536_v11 = vshll.u32 %v2432_v1, 16  ;;  %v2743_v21 = vsel %vm4352_vm3, %v2738_v32, %v2742_v54  ;;  %v2879_v32 = vld [vmem:[#allocation2 + $0x30] sm:$0xe] }
 0x10b   : > { %v2525_v19 = vor.u32 %v2524_v52, %v2521_v34  ;;  %v2542_v60 = vshll.u32 %v2433_v36, 16  ;;  %v2491_v59 = vshrl.u32 %v2426_v5, 16  ;;  %v2752_v35 = vrot.slane %v2751_v40, 4  ;;  %v2880_v40 = vld [vmem:[#allocation2 + $0x34] sm:$0x1] }
 0x10c   : > { %2266 = vrot.lane.b32.xlu1 %v3425_v10, %s3693_s23  ;;  %v2538_v0 = vrot.slane %v2536_v11, 5  ;;  %v2494_v42 = vshll.u32 %v2426_v5, 16  ;;  %v2500_v25 = vshll.u32 %v2427_v47, 16  ;;  %v2505_v33 = vshrl.u32 %v2428_v7, 16 }
 0x10d   : > { %v2526_v57 = vrot.slane %v2525_v19, 4  ;;  %v2544_v53 = vrot.slane %v2542_v60, 5  ;;  %v2493_v63 = vrot.slane %v2491_v59, 4  ;;  %v2757_v8 = vsel %vm4352_vm3, %v2752_v35, %v2756_v15  ;;  %v2727_v15 = vld [vmem:[#allocation2 + $0x44] sm:$0x1] }
 0x10e   : > { %v2539_v48 = vor.u32 %v2538_v0, %v2535_v31  ;;  %v2496_v27 = vrot.slane %v2494_v42, 5  ;;  %v2502_v49 = vrot.slane %v2500_v25, 5  ;;  %v3462_v38 = vcombine.low %v2743_v21, %v2757_v8  ;;  %v2881_v31 = vld [vmem:[#allocation2 + $0x38] sm:$0xe]  ;;  %v2882_v60 = vld [vmem:[#allocation2 + $0x3c] sm:$0x1] }
 0x10f   : > { %v2531_v18 = vsel %vm4352_vm3, %v2526_v57, %v2530_v20  ;;  %v2507_v46 = vrot.slane %v2505_v33, 4  ;;  %v2508_v22 = vshll.u32 %v2428_v7, 16  ;;  %v2514_v62 = vshll.u32 %v2429_v61, 16  ;;  %v3669_v35 = vld [vmem:[#allocation2 + $0x30] ss:$8 sps:$4 sm:$0xff]  }
 0x110   : > { %v2540_v4 = vrot.slane %v2539_v48, 4  ;;  %v2497_v29 = vor.u32 %v2496_v27, %v2493_v63  ;;  %v1533_v14 = vsel %vm3727_vm2, 0, %v1532_v44  ;;  %2854 = vrot.lane.b32.xlu0 %v3462_v38, %s3695_s27  ;;  %v2787_v28 = vshrl.u32 %v2722_v2, 16  ;;  %v2883_v25 = vld [vmem:[#allocation2 + $0x40] sm:$0xe] }
 0x111   : > { %v2510_v45 = vrot.slane %v2508_v22, 5  ;;  %1534 = vst [vmem:[#allocation2 + $0x48] sm:$0x1] %v1533_v14  ;;  %v2790_v56 = vshll.u32 %v2722_v2, 16  ;;  %v2796_v54 = vshll.u32 %v2723_v41, 16  ;;  %v2516_v6 = vrot.slane %v2514_v62, 5 }
 0x112   : > { %v2545_v1 = vsel %vm4352_vm3, %v2540_v4, %v2544_v53  ;;  %v2498_v58 = vrot.slane %v2497_v29, 4  ;;  %v2801_v24 = vshrl.u32 %v2724_v50, 16  ;;  %v2789_v37 = vrot.slane %v2787_v28, 4  ;;  %v2884_v61 = vld [vmem:[#allocation2 + $0x44] sm:$0x1] }
 0x113   : > { %v3445_v3 = vcombine.low %v2531_v18, %v2545_v1  ;;  %v2511_v43 = vor.u32 %v2510_v45, %v2507_v46  ;;  %v2792_v23 = vrot.slane %v2790_v56, 5  ;;  %v2804_v17 = vshll.u32 %v2724_v50, 16  ;;  %v2885_v63 = vld [vmem:[#allocation2 + $0x48] sm:$0xe]  ;;  %v3672_v2 = vld [vmem:[#allocation2 + $0x10] ss:$8 sps:$4 sm:$0xff]  }
 0x114   : > { %v2503_v16 = vsel %vm4352_vm3, %v2498_v58, %v2502_v49  ;;  %v2803_v5 = vrot.slane %v2801_v24, 4  ;;  %v2810_v26 = vshll.u32 %v2725_v9, 16  ;;  %v1565_v55 = vsel %vm4150_vm12, 0, %v1564_v13  ;;  %v3671_v49 = vld [vmem:[#allocation2] ss:$8 sps:$4 sm:$0xff]  }
 0x115   : > { %2564 = vrot.lane.b32.xlu1 %v3445_v3, %s3694_s24  ;;  %v2512_v36 = vrot.slane %v2511_v43, 4  ;;  %v2793_v34 = vor.u32 %v2792_v23, %v2789_v37  ;;  %v2798_v52 = vrot.slane %v2796_v54, 5  ;;  %v2806_v20 = vrot.slane %v2804_v17, 5  ;;  %1566 = vst [vmem:[#allocation2 + $0x4c] sm:$0x1] %v1565_v55 }
 0x116   : > { %v2815_v47 = vshrl.u32 %v2726_v39, 16  ;;  %v2818_v10 = vshll.u32 %v2726_v39, 16  ;;  %v2812_v21 = vrot.slane %v2810_v26, 5  ;;  %v2824_v19 = vshll.u32 %v2727_v15, 16  ;;  %v3673_v22 = vld [vmem:[#allocation2 + $0x20] ss:$8 sps:$4 sm:$0xff]  }
 0x117   : > { %v2517_v11 = vsel %vm4352_vm3, %v2512_v36, %v2516_v6  ;;  %v2794_v7 = vrot.slane %v2793_v34, 4  ;;  %v2807_v12 = vor.u32 %v2806_v20, %v2803_v5  ;;  %v3470_v53 = vrot.slane %v2879_v32, 9  ;;  %v3675_v14 = vld [vmem:[#allocation2 + $0x30] ss:$8 sps:$4 sm:$0xff]   ;;  %v2404_v32 = vpop.permute.xlu1 %2403 }
 0x118   : > { %v3444_v59 = vcombine.low %v2503_v16, %v2517_v11  ;;  %v3670_v0 = vld [vmem:[#allocation2 + $0x40] ss:$8 sps:$4 sm:$0xff]   ;;  %v2817_v44 = vrot.slane %v2815_v47, 4  ;;  %v2820_v57 = vrot.slane %v2818_v10, 5  ;;  %v2921_v38 = vrot.slane %v2880_v40, 5 }
 0x119   : > { %v2728_v42 = vld [vmem:[#allocation2 + $0x48] sm:$0xf]  ;;  %2703 = vrot.lane.b32.xlu1 %v3670_v0, %s3688_s19  ;;  %v2799_v33 = vsel %vm4352_vm3, %v2794_v7, %v2798_v52  ;;  %v2808_v8 = vrot.slane %v2807_v12, 4  ;;  %v3471_v18 = vrot.slane %v2881_v31, 9  ;;  %v2925_v46 = vrot.slane %v2882_v60, 5  ;;  %v2698_v52 = vpop.permute.xlu0 %2697 }
 0x11a   : > { %2562 = vrot.lane.b32.xlu0 %v3444_v59, %s3694_s24  ;;  %v2829_v48 = vshrl.u32 %v2728_v42, 16  ;;  %v2832_v27 = vshll.u32 %v2728_v42, 16  ;;  %v2821_v41 = vor.u32 %v2820_v57, %v2817_v44  ;;  %v2826_v4 = vrot.slane %v2824_v19, 5  ;;  %v3677_v16 = vld [vmem:[%s4516_s1 + $0x10] ss:$0 sps:$4 sm:$0x33]  }
 0x11b   : > { %v2813_v50 = vsel %vm4352_vm3, %v2808_v8, %v2812_v21  ;;  %v3472_v13 = vrot.slane %v2883_v25, 9  ;;  %v2929_v6 = vrot.slane %v2884_v61, 5  ;;  %v3473_v9 = vrot.slane %v2885_v63, 9  ;;  %v2700_v20 = vpop.permute.xlu1 %2699 }
 0x11c   : > { %v2831_v29 = vrot.slane %v2829_v48, 4  ;;  %v2834_v62 = vrot.slane %v2832_v27, 5  ;;  %v3464_v45 = vcombine.low %v2799_v33, %v2813_v50  ;;  %v2729_v28 = vld [vmem:[#allocation2 + $0x4c] sm:$0x1]  ;;  %v2822_v56 = vrot.slane %v2821_v41, 4 }
 0x11d   : > { %v2886_v54 = vld [vmem:[#allocation2 + $0x4c] sm:$0x1]  ;;  %v2838_v58 = vshll.u32 %v2729_v28, 16  ;;  %v2922_v24 = vsel %vm4237_vm15, %v3470_v53, %v2921_v38  ;;  %v2926_v3 = vsel %vm4237_vm15, %v3471_v18, %v2925_v46  ;;  %vm2112_vm2 = vcmask 31744  }
 0x11e   : > { %2701 = vrot.lane.b32.xlu0 %v3669_v35, %s3688_s19  ;;  %v2835_v1 = vor.u32 %v2834_v62, %v2831_v29  ;;  %v2933_v43 = vrot.slane %v2886_v54, 5  ;;  %v2827_v37 = vsel %vm4352_vm3, %v2822_v56, %v2826_v4  ;;  %2113 = vst.msk [vmem:[#allocation3] sm:$0xff] %vm2112_vm2, %v3671_v49  ;;  %2114 = vst.msk [vmem:[#allocation3 + $0x8] sm:$0xff] %vm2112_vm2, %v3672_v2  ;;  %vm3001_vm4 = vcmask 1041408  }
 0x11f   : > { %v2840_v39 = vrot.slane %v2838_v58, 5  ;;  %2115 = vst.msk [vmem:[#allocation3 + $0x10] sm:$0xff] %vm2112_vm2, %v3673_v22  ;;  %2116 = vst.msk [vmem:[#allocation3 + $0x18] sm:$0xff] %vm2112_vm2, %v3675_v14  ;;  %v3476_v17 = vcombine.low %v2922_v24, %v2926_v3  ;;  %v2930_v15 = vsel %vm4237_vm15, %v3472_v13, %v2929_v6  ;;  %3611 = vmatprep.subr.msk.bf16.mxu0 %vm3001_vm4, %v3677_v16  ;;  %v3003_v26 = vsel %vm3001_vm4, %v3677_v16, 0 }
 0x120   : > { %v2836_v23 = vrot.slane %v2835_v1, 4  ;;  %v2934_v36 = vsel %vm4237_vm15, %v3473_v9, %v2933_v43  ;;  %3612 = vmatprep.subr.msk.bf16.mxu1 %vm3001_vm4, %v3677_v16  ;;  %3596 = vmatpush3.bf16.msra.mxu0 %v3003_v26  ;;  %vm2272_vm5 = vcmask 64544   ;;  %vm2368_vm6 = vcmask 97344  }
 0x121   : > { %v3477_v55 = vcombine.low %v2930_v15, %v2934_v36  ;;  %3610 = vmatpush3.bf16.msra.mxu1 %v3003_v26  ;;  %vm2413_vm7 = vcmask 130144   ;;  %vm2570_vm8 = vcmask 162944   ;;  %vm2663_vm9 = vcmask 195744  }
 0x122   : > { %2858 = vrot.lane.b32.xlu0 %v3464_v45, %s3695_s27  ;;  %v2841_v5 = vsel %vm4352_vm3, %v2836_v23, %v2840_v39  ;;  %vm2709_vm10 = vcmask 228544   ;;  %vm2866_vm11 = vcmask 261344   ;;  %vm2959_vm12 = vcmask 294144  }
 0x123   : > { %v3465_v34 = vcombine.low %v2827_v37, %v2841_v5  ;;  %vm2988_vm13 = vcmask 293888  }
 0x125   : > { %2860 = vrot.lane.b32.xlu1 %v3465_v34, %s3695_s27  ;;  %v2408_v47 = vpop.permute.xlu1 %2407 }
 0x126   : > { %2951 = vrot.lane.b32.xlu0 %v3476_v17, %s3692_s22 }
 0x129   : > { %2953 = vrot.lane.b32.xlu1 %v3477_v55, %s3692_s22 }
 0x13c   : > { %v2406_v51 = vpop.permute.xlu0 %2405 }
 0x144   : > { %v2652_v10 = vpop.permute.xlu0 %2651 }
 0x146   : > { %v2357_v40 = vpop.permute.xlu1 %2356 }
 0x149   : > { %v2948_v31 = vpop.permute.xlu0 %2947 }
 0x14a   : > { %v2359_v11 = vpop.permute.xlu1 %2358 }
 0x14e   : > { %v2950_v7 = vpop.permute.xlu0 %2949 }
 0x14f   : > { %v2654_v21 = vpop.permute.xlu1 %2653 }
 0x152   : > { %v2361_v19 = vpop.permute.xlu0 %2360 }
 0x15b   : > { %v2656_v59 = vpop.permute.xlu0 %2655 }
 0x15d   : > { %v2363_v60 = vpop.permute.xlu1 %2362 }
 0x165   : > { %v2658_v35 = vpop.permute.xlu1 %2657 }
 0x166   : > { %v2261_v0 = vpop.permute.xlu0 %2260 }
 0x167   : > { %2273 = vst.msk [vmem:[#allocation3] sm:$0xff] %vm2272_vm5, %v2261_v0 }
 0x168   : > { %2369 = vst.msk [vmem:[#allocation3] sm:$0xff] %vm2368_vm6, %v2357_v40 }
 0x169   : > { %v2561_v12 = vpop.permute.xlu1 %2560  ;;  %2414 = vst.msk [vmem:[#allocation3] sm:$0xff] %vm2413_vm7, %v2402_v30 }
 0x16d   : > { %v2857_v42 = vpop.permute.xlu1 %2856 }
 0x170   : > { %v2263_v25 = vpop.permute.xlu0 %2262 }
 0x171   : > { %2274 = vst.msk [vmem:[#allocation3 + $0x8] sm:$0xff] %vm2272_vm5, %v2263_v25 }
 0x172   : > { %2370 = vst.msk [vmem:[#allocation3 + $0x8] sm:$0xff] %vm2368_vm6, %v2359_v11 }
 0x173   : > { %2415 = vst.msk [vmem:[#allocation3 + $0x8] sm:$0xff] %vm2413_vm7, %v2404_v32 }
 0x174   : > { %v2265_v44 = vpop.permute.xlu1 %2264  ;;  %2572 = vst.msk [vmem:[#allocation3 + $0x8] sm:$0xff] %vm2570_vm8, %v2561_v12 }
 0x175   : > { %2275 = vst.msk [vmem:[#allocation3 + $0x10] sm:$0xff] %vm2272_vm5, %v2265_v44 }
 0x176   : > { %2665 = vst.msk [vmem:[#allocation3 + $0x8] sm:$0xff] %vm2663_vm9, %v2654_v21 }
 0x177   : > { %2371 = vst.msk [vmem:[#allocation3 + $0x10] sm:$0xff] %vm2368_vm6, %v2361_v19 }
 0x178   : > { %2711 = vst.msk [vmem:[#allocation3 + $0x8] sm:$0xff] %vm2709_vm10, %v2700_v20  ;;  %v2559_v57 = vpop.permute.xlu0 %2558 }
 0x179   : > { %2416 = vst.msk [vmem:[#allocation3 + $0x10] sm:$0xff] %vm2413_vm7, %v2406_v51 }
 0x17a   : > { %2868 = vst.msk [vmem:[#allocation3 + $0x8] sm:$0xff] %vm2866_vm11, %v2857_v42 }
 0x17b   : > { %2961 = vst.msk [vmem:[#allocation3 + $0x8] sm:$0xff] %vm2959_vm12, %v2950_v7 }
 0x17c   : > { %2571 = vst.msk [vmem:[#allocation3] sm:$0xff] %vm2570_vm8, %v2559_v57 }
 0x17d   : > { %2664 = vst.msk [vmem:[#allocation3] sm:$0xff] %vm2663_vm9, %v2652_v10 }
 0x17e   : > { %2710 = vst.msk [vmem:[#allocation3] sm:$0xff] %vm2709_vm10, %v2698_v52  ;;  %v2267_v53 = vpop.permute.xlu1 %2266 }
 0x17f   : > { %2276 = vst.msk [vmem:[#allocation3 + $0x18] sm:$0xff] %vm2272_vm5, %v2267_v53 }
 0x180   : > { %2372 = vst.msk [vmem:[#allocation3 + $0x18] sm:$0xff] %vm2368_vm6, %v2363_v60 }
 0x181   : > { %2417 = vst.msk [vmem:[#allocation3 + $0x18] sm:$0xff] %vm2413_vm7, %v2408_v47 }
 0x182   : > { %v2855_v61 = vpop.permute.xlu0 %2854  ;;  %v2965_v27 = vld [vmem:[#allocation3 + $0x8] sm:$0xff] }
 0x183   : > { %2867 = vst.msk [vmem:[#allocation3] sm:$0xff] %vm2866_vm11, %v2855_v61 }
 0x184   : > { %2960 = vst.msk [vmem:[#allocation3] sm:$0xff] %vm2959_vm12, %v2948_v31 }
 0x187   : > { %v2565_v63 = vpop.permute.xlu1 %2564 }
 0x188   : > { %2574 = vst.msk [vmem:[#allocation3 + $0x18] sm:$0xff] %vm2570_vm8, %v2565_v63 }
 0x189   : > { %2667 = vst.msk [vmem:[#allocation3 + $0x18] sm:$0xff] %vm2663_vm9, %v2658_v35 }
 0x18b   : > { %v2704_v8 = vpop.permute.xlu1 %2703  ;;  %v2964_v48 = vld [vmem:[#allocation3] sm:$0xff] }
 0x18c   : > { %v2563_v33 = vpop.permute.xlu0 %2562  ;;  %2713 = vst.msk [vmem:[#allocation3 + $0x18] sm:$0xff] %vm2709_vm10, %v2704_v8  ;;  %3597 = vmatprep.mubr.msk.bf16.mxu0 %vm2988_vm13, %v2964_v48 }
 0x18d   : > { %2573 = vst.msk [vmem:[#allocation3 + $0x10] sm:$0xff] %vm2570_vm8, %v2563_v33  ;;  %3598 = vmatmul.mubr.msk.bf16.vlgmr.msra.gmra.mrb[0].mxu0 %vm2988_vm13, %v2965_v27 }
 0x18e   : > { %2666 = vst.msk [vmem:[#allocation3 + $0x10] sm:$0xff] %vm2663_vm9, %v2656_v59 }
 0x190   : > { %v2702_v49 = vpop.permute.xlu0 %2701 }
 0x191   : > { %2712 = vst.msk [vmem:[#allocation3 + $0x10] sm:$0xff] %vm2709_vm10, %v2702_v49 }
 0x194   : > { %v2859_v2 = vpop.permute.xlu0 %2858 }
 0x195   : > { %2869 = vst.msk [vmem:[#allocation3 + $0x10] sm:$0xff] %vm2866_vm11, %v2859_v2 }
 0x197   : > { %v2861_v41 = vpop.permute.xlu1 %2860 }
 0x198   : > { %2870 = vst.msk [vmem:[#allocation3 + $0x18] sm:$0xff] %vm2866_vm11, %v2861_v41  ;;  %v2952_v38 = vpop.permute.xlu0 %2951 }
 0x199   : > { %2962 = vst.msk [vmem:[#allocation3 + $0x10] sm:$0xff] %vm2959_vm12, %v2952_v38 }
 0x19b   : > { %v2954_v18 = vpop.permute.xlu1 %2953 }
 0x19c   : > { %2963 = vst.msk [vmem:[#allocation3 + $0x18] sm:$0xff] %vm2959_vm12, %v2954_v18 }
 0x1a0   : > { %v2966_v46 = vld [vmem:[#allocation3 + $0x10] sm:$0xff] }
 0x1a1   : > { %3601 = vmatprep.mubr.msk.bf16.mxu1 %vm2988_vm13, %v2966_v46 }
 0x1a3   : > { %v2967_v22 = vld [vmem:[#allocation3 + $0x18] sm:$0xff] }
 0x1a4   : > { %3602 = vmatmul.mubr.msk.bf16.vlgmr.msra.gmra.mrb[0].mxu1 %vm2988_vm13, %v2967_v22 }
 0x260   : > { %v3599_v50 = vpop.f32.mrb[0].mxu0 }
 0x261   : > { %v3039_v4 = vpop.f32.mrb[1].mxu0  ;;  %v3102_v13 = vmul.f32 %v3599_v50, %v3599_v50 }
 0x262   : > { %v3600_v29 = vpop.f32.mrb[2].mxu0  ;;  %v3100_v45 = vmul.f32 %v3039_v4, %v3039_v4 }
 0x263   : > { %v3569_v62 = vpack.c.bf16 %v3600_v29, %v3599_v50  ;;  %v3042_v14 = vpop.f32.mrb[3].mxu0  ;;  %v3103_v6 = vmul.f32 %v3600_v29, %v3600_v29 }
 0x264   : > { %v3564_v28 = vpack.c.bf16 %v3042_v14, %v3039_v4  ;;  %v3086_v56 = vadd.f32 %v3042_v14, %v3039_v4  ;;  %v3101_v54 = vmul.f32 %v3042_v14, %v3042_v14 }
 0x265   : > { %3581 = vst [vmem:[%s177_s8 + $0x8] sm:$0xff] %v3569_v62  }
 0x266   : > { %3565 = vst [vmem:[%s177_s8] sm:$0xff] %v3564_v28   ;;  %v3087_v1 = vadd.f32 %v3599_v50, %v3086_v56  ;;  %v3108_v58 = vadd.f32 %v3101_v54, %v3100_v45 }
 0x268   : > { %v3109_v9 = vadd.f32 %v3108_v58, %v3102_v13  ;;  %v3088_v24 = vadd.f32 %v3600_v29, %v3087_v1 }
 0x26a   : > { %v3110_v3 = vadd.f32 %v3109_v9, %v3103_v6 }
 0x277   : > { %v3603_v43 = vpop.f32.mrb[0].mxu1 }
 0x278   : > { %v3055_v37 = vpop.f32.mrb[1].mxu1  ;;  %v3106_v55 = vmul.f32 %v3603_v43, %v3603_v43 }
 0x279   : > { %v3089_v23 = vadd.f32 %v3088_v24, %v3055_v37  ;;  %v3104_v39 = vmul.f32 %v3055_v37, %v3055_v37  ;;  %v3604_v16 = vpop.f32.mrb[2].mxu1 }
 0x27a   : > { %v3579_v5 = vpack.c.bf16 %v3604_v16, %v3603_v43  ;;  %v3058_v17 = vpop.f32.mrb[3].mxu1  ;;  %v3107_v52 = vmul.f32 %v3604_v16, %v3604_v16 }
 0x27b   : > { %v3111_v15 = vadd.f32 %v3110_v3, %v3104_v39  ;;  %v3574_v36 = vpack.c.bf16 %v3058_v17, %v3055_v37  ;;  %v3090_v34 = vadd.f32 %v3089_v23, %v3058_v17  ;;  %v3105_v26 = vmul.f32 %v3058_v17, %v3058_v17 }
 0x27c   : > { %3583 = vst [vmem:[%s177_s8 + $0x18] sm:$0xff] %v3579_v5  }
 0x27d   : > { %3582 = vst [vmem:[%s177_s8 + $0x10] sm:$0xff] %v3574_v36   ;;  %v3091_v30 = vadd.f32 %v3603_v43, %v3090_v34  ;;  %v3112_v32 = vadd.f32 %v3111_v15, %v3105_v26 }
 0x27f   : > { %v3092_v20 = vadd.f32 %v3604_v16, %v3091_v30  ;;  %v3113_v51 = vadd.f32 %v3112_v32, %v3106_v55 }
 0x281   : > { %v3093_v47 = vrot.slane %v3092_v20, 4  ;;  %v3114_v10 = vadd.f32 %v3113_v51, %v3107_v52 }
 0x283   : > { %v3094_v40 = vadd.f32 %v3093_v47, %v3092_v20  ;;  %v3115_v31 = vrot.slane %v3114_v10, 4 }
 0x285   : > { %v3095_v11 = vrot.slane %v3094_v40, 2  ;;  %v3116_v7 = vadd.f32 %v3115_v31, %v3114_v10 }
 0x287   : > { %v3096_v21 = vadd.f32 %v3095_v11, %v3094_v40  ;;  %v3117_v19 = vrot.slane %v3116_v7, 2 }
 0x289   : > { %v3097_v60 = vrot.slane %v3096_v21, 1  ;;  %v3118_v59 = vadd.f32 %v3117_v19, %v3116_v7 }
 0x28b   : > { %v3098_v35 = vadd.f32 %v3097_v60, %v3096_v21  ;;  %v3119_v0 = vrot.slane %v3118_v59, 1 }
 0x28d   : > { %3099 = vst [vmem:[%s181_s14] sm:$0x1] %v3098_v35  ;;  %v3120_v12 = vadd.f32 %v3119_v0, %v3118_v59 }
 0x28f   : > { %3121 = vst [vmem:[%s181_s14 + $0x1] sm:$0x1] %v3120_v12 }
 0x290 PF: > { %s14_s12 = sadd.s32 1, %s3684_s12  }
 0x291   : > { %p11_p4 = scmp.ge.s32.totalorder %s14_s12, 4  }
 0x293   :  { %13 = sbr.rel (!%p11_p4) target bundleno = 1 (0x1), region = 73 }

// kernel: down_forward.4
= control target key start
LH: loop header
LB: loop body
LE: loop exit
PB: predicated region body
PF: predicated region fallthrough
CT: control target
= control target key end

     0   :  { %s2960_s18 = smov 0   ;;  %s3533_s0 = inlined_call_operand.vmem [shape: bf16[2,8,8,128], index: 0, kind: input, shape index: {}]   ;;  %s3534_s1 = inlined_call_operand.vmem [shape: f32[1,128], index: 1, kind: input, shape index: {}]   ;;  %s3535_s2 = inlined_call_operand.vmem [shape: f32[1,128], index: 2, kind: input, shape index: {}]   ;;  %s3536_s3 = inlined_call_operand.vmem [shape: bf16[1152,128], index: 3, kind: input, shape index: {}]   ;;  %s3537_s4 = inlined_call_operand.vmem [shape: bf16[2,8,8,128], index: 4, kind: output, shape index: {0}]   ;;  %s3538_s5 = inlined_call_operand.vmem [shape: f32[2,2,128], index: 5, kind: output, shape index: {1}]  }
   0x1 LB: > { %s2410_s19 = sadd.s32 4294967295, %s2927_s18   ;;  %p2414_p0 = scmp.ge.s32.totalorder %s2927_s18, 1  ;;  %s2927_s18 = sphi %s2960_s18, %s16_s18  }
   0x2   : > { %p190_p1 = scmp.lt.s32.totalorder %s2927_s18, 3 }
   0x4   : > { %p191_p2 = pnand %p2414_p0, %p190_p1 }
   0x5   : > { %v2837_v0 = vld [vmem:[%s3536_s3 + $0xc0] sm:$0xff] (!%p191_p2)   ;;  %v2839_v2 = vld [vmem:[%s3536_s3 + $0xc8] sm:$0xff] (!%p191_p2)   ;;  %v2843_v6 = vld [vmem:[%s3536_s3 + $0xd0] sm:$0xff] (!%p191_p2)   ;;  %v2929_v7 = vmov (!%p191_p2), 0   ;;  %p222_p3 = scmp.lt.s32.totalorder (!%p191_p2), %s2410_s19, 1  ;;  %vm296_vm0 = vcmask (!%p191_p2), 1040384  }
   0x6   : > { %194 = sbr.rel (%p191_p2) target bundleno = 403 (0x193), region = 36  ;;  %v2838_v1 = vld [vmem:[%s3536_s3 + $0x80] sm:$0xff] (!%p191_p2)   ;;  %2656 = vmatprep.subr.bf16.mxu1 (!%p191_p2), %v2837_v0  ;;  %v2840_v3 = vld [vmem:[%s3536_s3 + $0x88] sm:$0xff] (!%p191_p2)   ;;  %291 = vst [vmem:[#allocation2] sm:$0xf] (!%p191_p2), %v2929_v7  ;;  %v2844_v8 = vld [vmem:[%s3536_s3 + $0x90] sm:$0xff] (!%p191_p2)  }
   0x7   : > { %2657 = vmatpush3.bf16.msra.mxu1 (!%p191_p2), %v2838_v1  ;;  %v2841_v4 = vld [vmem:[%s3536_s3 + $0x40] sm:$0xff] (!%p191_p2)   ;;  %292 = vst [vmem:[#allocation2 + $0x4] sm:$0x1] (!%p191_p2), %v2929_v7  ;;  %294 = vst [vmem:[#allocation2 + $0x48] sm:$0xf] (!%p191_p2), %v2929_v7  ;;  %v2845_v9 = vld [vmem:[%s3536_s3 + $0x48] sm:$0xff] (!%p191_p2)  }
   0x8   : > { %2658 = vmatprep.subr.bf16.mxu1 (!%p191_p2), %v2839_v2  ;;  %v2842_v5 = vld [vmem:[%s3536_s3] sm:$0xff] (!%p191_p2)   ;;  %2616 = vmatprep.subr.bf16.mxu0 (!%p191_p2), %v2841_v4  ;;  %295 = vst [vmem:[#allocation2 + $0x4c] sm:$0x1] (!%p191_p2), %v2929_v7  ;;  %v2846_v10 = vld [vmem:[%s3536_s3 + $0x8] sm:$0xff] (!%p191_p2)   ;;  %v2847_v11 = vld [vmem:[%s3536_s3 + $0xd8] sm:$0xff] (!%p191_p2)   ;;  %vm474_vm5 = vcmask (!%p191_p2), 1043456  }
   0x9   : > { %2617 = vmatpush3.bf16.msra.mxu0 (!%p191_p2), %v2842_v5  ;;  %v2848_v12 = vld [vmem:[%s3536_s3 + $0x98] sm:$0xff] (!%p191_p2)   ;;  %v2849_v13 = vld [vmem:[%s3536_s3 + $0x50] sm:$0xff] (!%p191_p2)   ;;  %v2851_v15 = vld [vmem:[%s3536_s3 + $0xe0] sm:$0xff] (!%p191_p2)   ;;  %vm297_vm1 = vsmask.f32 (!%p191_p2), 256  ;;  %vm743_vm7 = vcmask (!%p191_p2), 1042432  }
   0xa   : > { %2618 = vmatprep.subr.bf16.mxu0 (!%p191_p2), %v2845_v9  ;;  %v2850_v14 = vld [vmem:[%s3536_s3 + $0x10] sm:$0xff] (!%p191_p2)   ;;  %v2852_v16 = vld [vmem:[%s3536_s3 + $0xa0] sm:$0xff] (!%p191_p2)   ;;  %v2853_v17 = vld [vmem:[%s3536_s3 + $0x58] sm:$0xff] (!%p191_p2)   ;;  %vm329_vm3 = vsmask.f32 (!%p191_p2), 7938  ;;  %vm744_vm8 = vcmask (!%p191_p2), 1046532  }
   0xb   : > { %2659 = vmatpush3.bf16.msra.mxu1 (!%p191_p2), %v2840_v3  ;;  %v2854_v18 = vld [vmem:[%s3536_s3 + $0x18] sm:$0xff] (!%p191_p2)   ;;  %v2855_v19 = vld [vmem:[%s3536_s3 + $0xe8] sm:$0xff] (!%p191_p2)   ;;  %v2857_v21 = vld [vmem:[%s3536_s3 + $0x60] sm:$0xff] (!%p191_p2)   ;;  %vm576_vm9 = vsmask.f32 (!%p191_p2), 3328 }
   0xc   : > { %2660 = vmatprep.subr.bf16.mxu1 (!%p191_p2), %v2843_v6  ;;  %v2856_v20 = vld [vmem:[%s3536_s3 + $0xa8] sm:$0xff] (!%p191_p2)   ;;  %v2858_v22 = vld [vmem:[%s3536_s3 + $0x20] sm:$0xff] (!%p191_p2)   ;;  %v2859_v23 = vld [vmem:[%s3536_s3 + $0xf0] sm:$0xff] (!%p191_p2)   ;;  %vm577_vm11 = vsmask.f32 (!%p191_p2), 7440 }
   0xd   : > { %2619 = vmatpush3.bf16.msra.mxu0 %v2846_v10  ;;  %s3550_s19 = smov (!%p222_p3, %s2410_s19), 1  ;;  %v2860_v24 = vld [vmem:[%s3536_s3 + $0xb0] sm:$0xff]   ;;  %v2861_v25 = vld [vmem:[%s3536_s3 + $0x68] sm:$0xff]   ;;  %v2863_v27 = vld [vmem:[%s3536_s3 + $0xf8] sm:$0xff]  }
   0xe   : > { %2620 = vmatprep.subr.bf16.mxu0 %v2849_v13  ;;  %s2564_s24 = sshll.u32 %s3550_s19, 5  ;;  %v2862_v26 = vld [vmem:[%s3536_s3 + $0x28] sm:$0xff]   ;;  %v2864_v28 = vld [vmem:[%s3536_s3 + $0xb8] sm:$0xff]   ;;  %v2865_v29 = vld [vmem:[%s3536_s3 + $0x70] sm:$0xff]  }
   0xf   : > { %2661 = vmatpush3.bf16.msra.mxu1 %v2844_v8  ;;  %s3064_s8 = scalar_lea.vmem %s3533_s0, %s2564_s24  ;;  %v2866_v30 = vld [vmem:[%s3536_s3 + $0x30] sm:$0xff]   ;;  %v3076_v32 = vld [vmem:[%s3534_s1] ss:$0 sm:$0xff]  ;;  %v302_v36 = vld [vmem:[#allocation2 + $0x8] sm:$0x1]  ;;  %s231_s17 = scalar_lea.vmem %s3537_s4, %s2564_s24 }
  0x10   : > { %2662 = vmatprep.subr.bf16.mxu1 %v2847_v11  ;;  %v2575_v31 = vld [vmem:[%s3064_s8] sm:$0xff]   ;;  %v305_v37 = vld [vmem:[#allocation2 + $0x10] sm:$0x1]  ;;  %vm3084_vm2 = vmand %vm296_vm0, %vm297_vm1  ;;  %s2419_s24 = sshll.u32 %s3550_s19, 1 }
  0x11   : > { %2621 = vmatpush3.bf16.msra.mxu0 %v2850_v14  ;;  %v3081_v33 = vld [vmem:[%s3535_s2] ss:$0 sm:$0xff]  ;;  %v2576_v34 = vunpack.c.l.bf16 %v2575_v31  ;;  %v2577_v35 = vunpack.c.h.bf16 %v2575_v31  ;;  %v331_v39 = vld [vmem:[#allocation2 + $0x4] sm:$0x1]  ;;  %v334_v40 = vld [vmem:[#allocation2 + $0xc] sm:$0x1]  ;;  %s235_s22 = scalar_lea.vmem %s3538_s5, %s2419_s24 }
  0x12   : > { %2622 = vmatprep.subr.bf16.mxu0 %v2853_v17  ;;  %v303_v43 = vsel %vm3084_vm2, 0, %v302_v36  ;;  %v306_v44 = vsel %vm3084_vm2, 0, %v305_v37  ;;  %vm3096_vm4 = vmand %vm296_vm0, %vm329_vm3  ;;  %v2868_v48 = vld [vmem:[%s3536_s3 + $0x1c0] sm:$0xff]   ;;  %v2870_v51 = vld [vmem:[%s3536_s3 + $0x78] sm:$0xff]  }
  0x13   : > { %2663 = vmatpush3.bf16.msra.mxu1 %v2848_v12  ;;  %v260_v41 = vmul.f32 %v2576_v34, %v3076_v32  ;;  %v261_v42 = vmul.f32 %v2577_v35, %v3076_v32  ;;  %304 = vst [vmem:[#allocation2 + $0x8] sm:$0x1] %v303_v43  ;;  %307 = vst [vmem:[#allocation2 + $0x10] sm:$0x1] %v306_v44  ;;  %v332_v46 = vsel %vm3096_vm4, 0, %v331_v39  ;;  %v335_v47 = vsel %vm3096_vm4, 0, %v334_v40 }
  0x14   : > { %2664 = vmatprep.subr.bf16.mxu1 %v2851_v15  ;;  %333 = vst [vmem:[#allocation2 + $0x4] sm:$0x1] %v332_v46  ;;  %336 = vst [vmem:[#allocation2 + $0xc] sm:$0x1] %v335_v47  ;;  %v2871_v54 = vld [vmem:[%s3536_s3 + $0x38] sm:$0xff]   ;;  %v2874_v58 = vld [vmem:[%s3536_s3 + $0x140] sm:$0xff]  }
  0x15   : > { %2623 = vmatpush3.bf16.msra.mxu0 %v2854_v18  ;;  %v275_v49 = vadd.f32 %v3081_v33, %v260_v41  ;;  %v276_v50 = vadd.f32 %v3081_v33, %v261_v42  ;;  %v299_v57 = vld [vmem:[#allocation2] sm:$0x1]  ;;  %v711_v0 = vld [vmem:[#allocation2] sm:$0xe]  ;;  %vm3121_vm6 = vmand %vm474_vm5, %vm329_vm3 }
  0x16   : > { %2624 = vmatprep.subr.bf16.mxu0 %v2857_v21  ;;  %v300_v5 = vsel %vm3084_vm2, 0, %v299_v57  ;;  %v2610_v7 = vld [vmem:[%s3064_s8 + $0x8] sm:$0xff]   ;;  %v2438_v11 = vrot.slane %v711_v0, 9  ;;  %v308_v12 = vld [vmem:[#allocation2 + $0x18] sm:$0x1]  ;;  %vm3149_vm10 = vmor %vm743_vm7, %vm744_vm8 }
  0x17   : > { %2665 = vmatpush3.bf16.msra.mxu1 %v2852_v16  ;;  %v283_v52 = vmax.f32 %v275_v49, 0.0  ;;  %v284_v53 = vmax.f32 %v276_v50, 0.0  ;;  %301 = vst [vmem:[#allocation2] sm:$0x1] %v300_v5  ;;  %v2580_v14 = vunpack.c.l.bf16 %v2610_v7  ;;  %v2581_v15 = vunpack.c.h.bf16 %v2610_v7  ;;  %v311_v16 = vld [vmem:[#allocation2 + $0x20] sm:$0x1]  ;;  %vm3163_vm12 = vmor %vm576_vm9, %vm577_vm11 }
  0x18   : > { %2666 = vmatprep.subr.bf16.mxu1 %v2855_v19  ;;  %v337_v21 = vld [vmem:[#allocation2 + $0x14] sm:$0x1] }
  0x19   : > { %2625 = vmatpush3.bf16.msra.mxu0 %v2858_v22  ;;  %v2566_v55 = vpack.c.bf16 %v283_v52, %v283_v52  ;;  %v2567_v56 = vpack.c.bf16 %v284_v53, %v284_v53  ;;  %v262_v22 = vmul.f32 %v2580_v14, %v3076_v32 }
  0x1a   : > { %2626 = vmatprep.subr.bf16.mxu0 %v2861_v25  ;;  %v476_v63 = vld [vmem:[#allocation2 + $0x8] sm:$0xf]  ;;  %v482_v4 = vld [vmem:[#allocation2 + $0x10] sm:$0xf]  ;;  %v338_v25 = vsel %vm3096_vm4, 0, %v337_v21 }
  0x1b   : > { %2667 = vmatpush3.bf16.msra.mxu1 %v2856_v20  ;;  %v394_v59 = vshrl.u32 %v2566_v55, 16  ;;  %v397_v60 = vshll.u32 %v2566_v55, 16  ;;  %v402_v61 = vshrl.u32 %v2567_v56, 16  ;;  %v405_v62 = vshll.u32 %v2567_v56, 16  ;;  %v479_v6 = vld [vmem:[#allocation2 + $0xc] sm:$0x1] }
  0x1c   : > { %2668 = vmatprep.subr.bf16.mxu1 %v2859_v23  ;;  %v712_v13 = vld [vmem:[#allocation2 + $0x4] sm:$0x1]  ;;  %v309_v20 = vsel %vm3084_vm2, 0, %v308_v12  ;;  %v263_v23 = vmul.f32 %v2581_v15, %v3076_v32  ;;  %339 = vst [vmem:[#allocation2 + $0x14] sm:$0x1] %v338_v25 }
  0x1d   : > { %2627 = vmatpush3.bf16.msra.mxu0 %v2862_v26  ;;  %v396_v1 = vrot.slane %v394_v59, 7  ;;  %v3118_v2 = vrot.slane %v402_v61, 7  ;;  %310 = vst [vmem:[#allocation2 + $0x18] sm:$0x1] %v309_v20  ;;  %v340_v26 = vld [vmem:[#allocation2 + $0x1c] sm:$0x1] }
  0x1e   : > { %2628 = vmatprep.subr.bf16.mxu0 %v2865_v29  ;;  %v277_v29 = vadd.f32 %v3081_v33, %v262_v22  ;;  %v560_v31 = vld [vmem:[#allocation2] sm:$0xf]  ;;  %v561_v34 = vld [vmem:[#allocation2 + $0x4] sm:$0x1] }
  0x1f   : > { %2669 = vmatpush3.bf16.msra.mxu1 %v2860_v24  ;;  %v399_v8 = vor.u32 %v397_v60, %v396_v1  ;;  %v400_v9 = vrot.slane %v396_v1, 4  ;;  %v407_v10 = vor.u32 %v405_v62, %v3118_v2  ;;  %v312_v24 = vsel %vm3084_vm2, 0, %v311_v16  ;;  %v2611_v16 = vld [vmem:[%s3064_s8 + $0x10] sm:$0xff]  }
  0x20   : > { %2670 = vmatprep.subr.bf16.mxu1 %v2863_v27  ;;  %v748_v27 = vrot.slane %v712_v13, 5  ;;  %313 = vst [vmem:[#allocation2 + $0x20] sm:$0x1] %v312_v24  ;;  %v580_v35 = vshrl.u32 %v560_v31, 16  ;;  %v583_v36 = vshll.u32 %v560_v31, 16  ;;  %v285_v37 = vmax.f32 %v277_v29, 0.0 }
  0x21   : > { %2629 = vmatpush3.bf16.msra.mxu0 %v2866_v30  ;;  %v477_v17 = vsel %vm3121_vm6, %v399_v8, %v476_v63  ;;  %v483_v18 = vsel %vm3121_vm6, %v407_v10, %v482_v4  ;;  %v480_v19 = vsel %vm3084_vm2, %v400_v9, %v479_v6  ;;  %v278_v30 = vadd.f32 %v3081_v33, %v263_v23  ;;  %v2869_v63 = vld [vmem:[%s3536_s3 + $0x180] sm:$0xff]   ;;  %v2872_v6 = vld [vmem:[%s3536_s3 + $0x1c8] sm:$0xff]  }
  0x22   : > { %2630 = vmatprep.subr.bf16.mxu0 %v2870_v51  ;;  %478 = vst [vmem:[#allocation2 + $0x8] sm:$0xf] %v477_v17  ;;  %484 = vst [vmem:[#allocation2 + $0x10] sm:$0xf] %v483_v18  ;;  %v582_v41 = vrot.slane %v580_v35, 4  ;;  %v585_v42 = vrot.slane %v583_v36, 5  ;;  %v2568_v46 = vpack.c.bf16 %v285_v37, %v285_v37  ;;  %v749_v49 = vsel %vm3149_vm10, %v2438_v11, %v748_v27 }
  0x23   : > { %2671 = vmatpush3.bf16.msra.mxu1 %v2864_v28  ;;  %481 = vst [vmem:[#allocation2 + $0xc] sm:$0x1] %v480_v19  ;;  %v341_v28 = vsel %vm3096_vm4, 0, %v340_v26  ;;  %v286_v39 = vmax.f32 %v278_v30, 0.0  ;;  %v589_v43 = vshll.u32 %v561_v34, 16  ;;  %v2873_v10 = vld [vmem:[%s3536_s3 + $0x188] sm:$0xff]   ;;  %v2584_v20 = vunpack.c.l.bf16 %v2611_v16 }
  0x24   : > { %2736 = vmatprep.subr.bf16.mxu1 %v2868_v48  ;;  %342 = vst [vmem:[#allocation2 + $0x1c] sm:$0x1] %v341_v28  ;;  %v586_v51 = vor.u32 %v585_v42, %v582_v41  ;;  %v413_v8 = vshll.u32 %v2568_v46, 16  ;;  %v485_v9 = vld [vmem:[#allocation2 + $0x14] sm:$0x1]  ;;  %v2585_v21 = vunpack.c.h.bf16 %v2611_v16  ;;  %v2877_v30 = vld [vmem:[%s3536_s3 + $0x100] sm:$0xff]  }
  0x25   : > { %2631 = vmatpush3.bf16.msra.mxu0 %v2871_v54  ;;  %v2569_v52 = vpack.c.bf16 %v286_v39, %v286_v39  ;;  %v591_v60 = vrot.slane %v589_v43, 5  ;;  %v488_v15 = vld [vmem:[#allocation2 + $0x18] sm:$0xf]  ;;  %v2878_v27 = vld [vmem:[%s3536_s3 + $0x1d0] sm:$0xff]   ;;  %v264_v35 = vmul.f32 %v2584_v20, %v3076_v32 }
  0x26   : > { %2696 = vmatprep.subr.bf16.mxu0 %v2874_v58  ;;  %v408_v58 = vrot.slane %v3118_v2, 4  ;;  %v587_v59 = vrot.slane %v586_v51, 4  ;;  %v410_v2 = vshrl.u32 %v2568_v46, 16  ;;  %v2879_v42 = vld [vmem:[%s3536_s3 + $0x190] sm:$0xff]   ;;  %v2880_v46 = vld [vmem:[%s3536_s3 + $0x148] sm:$0xff]   ;;  %v2882_v51 = vld [vmem:[%s3536_s3 + $0x1d8] sm:$0xff]  }
  0x27   : > { %v418_v13 = vshrl.u32 %v2569_v52, 16  ;;  %v421_v14 = vshll.u32 %v2569_v52, 16  ;;  %v494_v29 = vld [vmem:[#allocation2 + $0x20] sm:$0xf]  ;;  %v265_v52 = vmul.f32 %v2585_v21, %v3076_v32 }
  0x28   : > { %v412_v12 = vrot.slane %v410_v2, 7  ;;  %v592_v17 = vsel %vm3163_vm12, %v587_v59, %v591_v60  ;;  %v486_v18 = vsel %vm3084_vm2, %v408_v58, %v485_v9  ;;  %v343_v58 = vld [vmem:[#allocation2 + $0x24] sm:$0x1]  ;;  %v346_v59 = vld [vmem:[#allocation2 + $0x2c] sm:$0x1]  ;;  %v2883_v60 = vld [vmem:[%s3536_s3 + $0x198] sm:$0xff]  }
  0x29   : > { %v2867_v44 = vld [vmem:[#allocation2 + $0x8] ss:$8 sps:$4 sm:$0xff]   ;;  %v3178_v26 = vrot.slane %v418_v13, 7  ;;  %487 = vst [vmem:[#allocation2 + $0x14] sm:$0x1] %v486_v18  ;;  %v2890_v18 = vld [vmem:[%s3536_s3 + $0x158] sm:$0xff]  }
  0x2a   : > { %v713_v47 = vld [vmem:[#allocation2 + $0x8] sm:$0xe]  ;;  %v714_v48 = vld [vmem:[#allocation2 + $0xc] sm:$0x1]  ;;  %2044 = vmatprep.mubr.bf16.mxu1 %v2867_v44  ;;  %v415_v24 = vor.u32 %v413_v8, %v412_v12  ;;  %v416_v25 = vrot.slane %v412_v12, 4  ;;  %v2887_v13 = vld [vmem:[%s3536_s3 + $0x110] sm:$0xff]  }
  0x2b   : > { %v562_v50 = vld [vmem:[#allocation2 + $0x8] sm:$0xf]  ;;  %v2439_v53 = vrot.slane %v713_v47, 9  ;;  %v752_v54 = vrot.slane %v714_v48, 5  ;;  %v563_v55 = vld [vmem:[#allocation2 + $0xc] sm:$0x1]  ;;  %v423_v37 = vor.u32 %v421_v14, %v3178_v26 }
  0x2c   : > { %v594_v56 = vshrl.u32 %v562_v50, 16  ;;  %v597_v57 = vshll.u32 %v562_v50, 16  ;;  %v603_v61 = vshll.u32 %v563_v55, 16  ;;  %v491_v19 = vld [vmem:[#allocation2 + $0x1c] sm:$0x1]  ;;  %v489_v39 = vsel %vm3121_vm6, %v415_v24, %v488_v15  ;;  %v2881_v55 = vld [vmem:[%s3536_s3 + $0x108] sm:$0xff]  }
  0x2d   : > { %v753_v62 = vsel %vm3149_vm10, %v2439_v53, %v752_v54  ;;  %v2875_v23 = vld [vmem:[#allocation2] ss:$8 sps:$4 sm:$0xff]   ;;  %v564_v28 = vld [vmem:[#allocation2 + $0x10] sm:$0xf]  ;;  %490 = vst [vmem:[#allocation2 + $0x18] sm:$0xf] %v489_v39  ;;  %v492_v44 = vsel %vm3084_vm2, %v416_v25, %v491_v19  ;;  %v495_v50 = vsel %vm3121_vm6, %v423_v37, %v494_v29  ;;  %v279_v53 = vadd.f32 %v3081_v33, %v264_v35 }
  0x2e   : > { %v596_v1 = vrot.slane %v594_v56, 4  ;;  %v599_v4 = vrot.slane %v597_v57, 5  ;;  %v2446_v5 = vcombine.low %v749_v49, %v753_v62  ;;  %v605_v7 = vrot.slane %v603_v61, 5  ;;  %v3192_v41 = vld [vmem:[#allocation2 + $0x10] sm:$0xe]  ;;  %v2891_v39 = vld [vmem:[%s3536_s3 + $0x118] sm:$0xff]  }
  0x2f   : > { %v608_v31 = vshrl.u32 %v564_v28, 16  ;;  %v611_v34 = vshll.u32 %v564_v28, 16  ;;  %v314_v48 = vld [vmem:[#allocation2 + $0x28] sm:$0x1]  ;;  %v317_v49 = vld [vmem:[#allocation2 + $0x30] sm:$0x1]  ;;  %v280_v62 = vadd.f32 %v3081_v33, %v265_v52 }
  0x30   : > { %v600_v11 = vor.u32 %v599_v4, %v596_v1  ;;  %2045 = vmatmul.mubr.bf16.vlgmr.msra.gmra.mrb[0].mxu1 %v2446_v5  ;;  %493 = vst [vmem:[#allocation2 + $0x1c] sm:$0x1] %v492_v44  ;;  %v315_v54 = vsel %vm3084_vm2, 0, %v314_v48  ;;  %496 = vst [vmem:[#allocation2 + $0x20] sm:$0xf] %v495_v50  ;;  %v318_v57 = vsel %vm3084_vm2, 0, %v317_v49 }
  0x31   : > { %2737 = vmatpush3.bf16.msra.mxu1 %v2869_v63  ;;  %v610_v47 = vrot.slane %v608_v31, 4  ;;  %v613_v56 = vrot.slane %v611_v34, 5  ;;  %316 = vst [vmem:[#allocation2 + $0x28] sm:$0x1] %v315_v54  ;;  %v2884_v61 = vld [vmem:[%s3536_s3 + $0x150] sm:$0xff]   ;;  %v287_v63 = vmax.f32 %v279_v53, 0.0 }
  0x32   : > { %v601_v22 = vrot.slane %v600_v11, 4  ;;  %2738 = vmatprep.subr.bf16.mxu1 %v2872_v6  ;;  %319 = vst [vmem:[#allocation2 + $0x30] sm:$0x1] %v318_v57  ;;  %v344_v1 = vsel %vm3096_vm4, 0, %v343_v58  ;;  %v347_v4 = vsel %vm3096_vm4, 0, %v346_v59  ;;  %v2440_v5 = vrot.slane %v3192_v41, 9 }
  0x33   : > { %v716_v2 = vld [vmem:[#allocation2 + $0x14] sm:$0x1]  ;;  %345 = vst [vmem:[#allocation2 + $0x24] sm:$0x1] %v344_v1  ;;  %348 = vst [vmem:[#allocation2 + $0x2c] sm:$0x1] %v347_v4  ;;  %v614_v12 = vor.u32 %v613_v56, %v610_v47  ;;  %v2570_v16 = vpack.c.bf16 %v287_v63, %v287_v63 }
  0x34   : > { %v606_v36 = vsel %vm3163_vm12, %v601_v22, %v605_v7  ;;  %v565_v6 = vld [vmem:[#allocation2 + $0x14] sm:$0x1]  ;;  %v2888_v7 = vld [vmem:[%s3536_s3 + $0x1e0] sm:$0xff]   ;;  %v424_v8 = vrot.slane %v3178_v26, 4  ;;  %v756_v9 = vrot.slane %v716_v2, 5  ;;  %v288_v11 = vmax.f32 %v280_v62, 0.0 }
  0x35   : > { %v2434_v43 = vcombine.low %v592_v17, %v606_v36  ;;  %2739 = vmatpush3.bf16.msra.mxu1 %v2873_v10  ;;  %v617_v10 = vshll.u32 %v565_v6, 16  ;;  %v717_v14 = vld [vmem:[#allocation2 + $0x18] sm:$0xe]  ;;  %v2889_v17 = vld [vmem:[%s3536_s3 + $0x1a0] sm:$0xff]   ;;  %v615_v28 = vrot.slane %v614_v12, 4  ;;  %v426_v36 = vshrl.u32 %v2570_v16, 16 }
  0x36   : > { %2740 = vmatprep.subr.bf16.mxu1 %v2878_v27  ;;  %v566_v15 = vld [vmem:[#allocation2 + $0x18] sm:$0xf]  ;;  %v2441_v20 = vrot.slane %v717_v14, 9  ;;  %v2571_v22 = vpack.c.bf16 %v288_v11, %v288_v11  ;;  %v757_v25 = vsel %vm3149_vm10, %v2440_v5, %v756_v9  ;;  %v429_v37 = vshll.u32 %v2570_v16, 16  ;;  %v2893_v41 = vld [vmem:[%s3536_s3 + $0x1a8] sm:$0xff]   ;;  %v2894_v49 = vld [vmem:[%s3536_s3 + $0x160] sm:$0xff]  }
  0x37   : > { %1979 = vmatprep.mubr.bf16.mxu0 %v2434_v43  ;;  %v718_v19 = vld [vmem:[#allocation2 + $0x1c] sm:$0x1]  ;;  %v2876_v24 = vld [vmem:[#allocation2 + $0x18] ss:$8 sps:$4 sm:$0xff]   ;;  %v622_v27 = vshrl.u32 %v566_v15, 16  ;;  %v619_v29 = vrot.slane %v617_v10, 5 }
  0x38   : > { %1980 = vmatmul.mubr.bf16.vlgmr.msra.gmra.mrb[0].mxu0 %v2875_v23  ;;  %v567_v21 = vld [vmem:[#allocation2 + $0x1c] sm:$0x1]  ;;  %v2892_v23 = vld [vmem:[%s3536_s3 + $0x1e8] sm:$0xff]   ;;  %v760_v26 = vrot.slane %v718_v19, 5  ;;  %2052 = vmatprep.mubr.bf16.mxu1 %v2876_v24  ;;  %v434_v47 = vshrl.u32 %v2571_v22, 16  ;;  %v428_v50 = vrot.slane %v426_v36, 7 }
  0x39   : > { %2697 = vmatpush3.bf16.msra.mxu0 %v2877_v30  ;;  %2741 = vmatpush3.bf16.msra.mxu1 %v2879_v42  ;;  %v625_v30 = vshll.u32 %v566_v15, 16  ;;  %v631_v31 = vshll.u32 %v567_v21, 16  ;;  %v624_v35 = vrot.slane %v622_v27, 4  ;;  %v2612_v42 = vld [vmem:[%s3064_s8 + $0x18] sm:$0xff]   ;;  %v500_v48 = vld [vmem:[#allocation2 + $0x28] sm:$0xf]  ;;  %v620_v62 = vsel %vm3163_vm12, %v615_v28, %v619_v29 }
  0x3a   : > { %2698 = vmatprep.subr.bf16.mxu0 %v2880_v46  ;;  %2742 = vmatprep.subr.bf16.mxu1 %v2882_v51  ;;  %v761_v34 = vsel %vm3149_vm10, %v2441_v20, %v760_v26  ;;  %v437_v51 = vshll.u32 %v2571_v22, 16  ;;  %v506_v52 = vld [vmem:[#allocation2 + $0x30] sm:$0xf]  ;;  %v497_v53 = vld [vmem:[#allocation2 + $0x24] sm:$0x1]  ;;  %v2589_v56 = vunpack.c.h.bf16 %v2612_v42  ;;  %v3258_v58 = vrot.slane %v434_v47, 7 }
  0x3b   : > { %v2447_v43 = vcombine.low %v757_v25, %v761_v34  ;;  %v627_v44 = vrot.slane %v625_v30, 5  ;;  %v633_v46 = vrot.slane %v631_v31, 5  ;;  %v503_v54 = vld [vmem:[#allocation2 + $0x2c] sm:$0x1]  ;;  %v498_v59 = vsel %vm3084_vm2, %v424_v8, %v497_v53  ;;  %v2897_v2 = vld [vmem:[%s3536_s3 + $0x120] sm:$0xff]   ;;  %v2899_v21 = vld [vmem:[%s3536_s3 + $0x1b0] sm:$0xff]  }
  0x3c   : > { %v431_v63 = vor.u32 %v429_v37, %v428_v50  ;;  %v432_v1 = vrot.slane %v428_v50, 4  ;;  %499 = vst [vmem:[#allocation2 + $0x24] sm:$0x1] %v498_v59  ;;  %v2885_v6 = vld [vmem:[#allocation2 + $0x10] ss:$8 sps:$4 sm:$0xff]   ;;  %v267_v9 = vmul.f32 %v2589_v56, %v3076_v32  ;;  %v2900_v26 = vld [vmem:[%s3536_s3 + $0x168] sm:$0xff]  }
  0x3d   : > { %2699 = vmatpush3.bf16.msra.mxu0 %v2881_v55  ;;  %2743 = vmatpush3.bf16.msra.mxu1 %v2883_v60  ;;  %v2588_v55 = vunpack.c.l.bf16 %v2612_v42  ;;  %v628_v57 = vor.u32 %v627_v44, %v624_v35  ;;  %v3262_v60 = vld [vmem:[#allocation2 + $0x20] sm:$0xe]  ;;  %v320_v20 = vld [vmem:[#allocation2 + $0x38] sm:$0x1]  ;;  %v323_v25 = vld [vmem:[#allocation2 + $0x40] sm:$0x1] }
  0x3e   : > { %2700 = vmatprep.subr.bf16.mxu0 %v2884_v61  ;;  %2744 = vmatprep.subr.bf16.mxu1 %v2888_v7  ;;  %v2898_v61 = vld [vmem:[%s3536_s3 + $0x1f0] sm:$0xff]   ;;  %v439_v7 = vor.u32 %v437_v51, %v3258_v58  ;;  %v2442_v8 = vrot.slane %v3262_v60, 9  ;;  %v501_v10 = vsel %vm3121_vm6, %v431_v63, %v500_v48  ;;  %v504_v11 = vsel %vm3084_vm2, %v432_v1, %v503_v54  ;;  %v568_v12 = vld [vmem:[#allocation2 + $0x20] sm:$0xf]  ;;  %v352_v36 = vld [vmem:[#allocation2 + $0x3c] sm:$0x1] }
  0x3f   : > { %2053 = vmatmul.mubr.bf16.gmra.mrb[4].mxu1 %v2447_v43  ;;  %v266_v4 = vmul.f32 %v2588_v55, %v3076_v32  ;;  %v629_v5 = vrot.slane %v628_v57, 4  ;;  %502 = vst [vmem:[#allocation2 + $0x28] sm:$0xf] %v501_v10  ;;  %505 = vst [vmem:[#allocation2 + $0x2c] sm:$0x1] %v504_v11  ;;  %v636_v32 = vshrl.u32 %v568_v12, 16 }
  0x40   : > { %v507_v15 = vsel %vm3121_vm6, %v439_v7, %v506_v52  ;;  %v639_v16 = vshll.u32 %v568_v12, 16  ;;  %v321_v24 = vsel %vm3084_vm2, 0, %v320_v20  ;;  %v349_v31 = vld [vmem:[#allocation2 + $0x34] sm:$0x1]  ;;  %v2901_v37 = vld [vmem:[%s3536_s3 + $0x128] sm:$0xff]   ;;  %v353_v43 = vsel %vm3096_vm4, 0, %v352_v36 }
  0x41   : > { %2701 = vmatpush3.bf16.msra.mxu0 %v2887_v13  ;;  %2745 = vmatpush3.bf16.msra.mxu1 %v2889_v17  ;;  %v281_v13 = vadd.f32 %v3081_v33, %v266_v4  ;;  %v634_v14 = vsel %vm3163_vm12, %v629_v5, %v633_v46  ;;  %508 = vst [vmem:[#allocation2 + $0x30] sm:$0xf] %v507_v15  ;;  %v638_v22 = vrot.slane %v636_v32, 4  ;;  %322 = vst [vmem:[#allocation2 + $0x38] sm:$0x1] %v321_v24 }
  0x42   : > { %2702 = vmatprep.subr.bf16.mxu0 %v2890_v18  ;;  %2746 = vmatprep.subr.bf16.mxu1 %v2892_v23  ;;  %v2435_v17 = vcombine.low %v620_v62, %v634_v14  ;;  %v282_v18 = vadd.f32 %v3081_v33, %v267_v9  ;;  %v641_v23 = vrot.slane %v639_v16, 5  ;;  %v324_v33 = vsel %vm3084_vm2, 0, %v323_v25  ;;  %354 = vst [vmem:[#allocation2 + $0x3c] sm:$0x1] %v353_v43  ;;  %v2902_v62 = vld [vmem:[%s3536_s3 + $0x1f8] sm:$0xff]   ;;  %v2904_v14 = vld [vmem:[%s3536_s3 + $0x170] sm:$0xff]  }
  0x43   : > { %v289_v19 = vmax.f32 %v281_v13, 0.0  ;;  %v720_v29 = vld [vmem:[#allocation2 + $0x24] sm:$0x1]  ;;  %325 = vst [vmem:[#allocation2 + $0x40] sm:$0x1] %v324_v33  ;;  %v350_v42 = vsel %vm3096_vm4, 0, %v349_v31 }
  0x44   : > { %1987 = vmatprep.mubr.bf16.mxu0 %v2435_v17  ;;  %v290_v27 = vmax.f32 %v282_v18, 0.0  ;;  %v569_v30 = vld [vmem:[#allocation2 + $0x24] sm:$0x1]  ;;  %v764_v34 = vrot.slane %v720_v29, 5  ;;  %v642_v47 = vor.u32 %v641_v23, %v638_v22  ;;  %351 = vst [vmem:[#allocation2 + $0x34] sm:$0x1] %v350_v42 }
  0x45   : > { %2703 = vmatpush3.bf16.msra.mxu0 %v2891_v39  ;;  %2747 = vmatpush3.bf16.msra.mxu1 %v2893_v41  ;;  %v2572_v28 = vpack.c.bf16 %v289_v19, %v289_v19  ;;  %v645_v39 = vshll.u32 %v569_v30, 16  ;;  %v440_v53 = vrot.slane %v3258_v58, 4  ;;  %v2903_v58 = vld [vmem:[%s3536_s3 + $0x1b8] sm:$0xff]  }
  0x46   : > { %2704 = vmatprep.subr.bf16.mxu0 %v2894_v49  ;;  %2748 = vmatprep.subr.bf16.mxu1 %v2898_v61  ;;  %v721_v44 = vld [vmem:[#allocation2 + $0x28] sm:$0xe]  ;;  %v722_v46 = vld [vmem:[#allocation2 + $0x2c] sm:$0x1]  ;;  %v765_v49 = vsel %vm3149_vm10, %v2442_v8, %v764_v34  ;;  %v2573_v52 = vpack.c.bf16 %v290_v27, %v290_v27  ;;  %v643_v1 = vrot.slane %v642_v47, 4 }
  0x47   : > { %1988 = vmatmul.mubr.bf16.gmra.mrb[4].mxu0 %v2885_v6  ;;  %v442_v35 = vshrl.u32 %v2572_v28, 16  ;;  %v445_v41 = vshll.u32 %v2572_v28, 16  ;;  %v2443_v50 = vrot.slane %v721_v44, 9  ;;  %v768_v51 = vrot.slane %v722_v46, 5  ;;  %v570_v54 = vld [vmem:[#allocation2 + $0x28] sm:$0xf] }
  0x48   : > { %v2886_v48 = vld [vmem:[#allocation2 + $0x28] ss:$8 sps:$4 sm:$0xff]   ;;  %v571_v55 = vld [vmem:[#allocation2 + $0x2c] sm:$0x1]  ;;  %v650_v59 = vshrl.u32 %v570_v54, 16  ;;  %v653_v60 = vshll.u32 %v570_v54, 16 }
  0x49   : > { %2705 = vmatpush3.bf16.msra.mxu0 %v2897_v2  ;;  %2749 = vmatpush3.bf16.msra.mxu1 %v2899_v21  ;;  %v444_v56 = vrot.slane %v442_v35, 7  ;;  %v769_v57 = vsel %vm3149_vm10, %v2443_v50, %v768_v51  ;;  %v659_v61 = vshll.u32 %v571_v55, 16  ;;  %v512_v5 = vld [vmem:[#allocation2 + $0x38] sm:$0xf]  ;;  %v647_v6 = vrot.slane %v645_v39, 5 }
  0x4a   : > { %2706 = vmatprep.subr.bf16.mxu0 %v2900_v26  ;;  %2060 = vmatprep.mubr.bf16.mxu1 %v2886_v48  ;;  %v2448_v63 = vcombine.low %v765_v49, %v769_v57  ;;  %v652_v7 = vrot.slane %v650_v59, 4  ;;  %v655_v8 = vrot.slane %v653_v60, 5  ;;  %v450_v9 = vshrl.u32 %v2573_v52, 16  ;;  %v518_v12 = vld [vmem:[#allocation2 + $0x40] sm:$0xf]  ;;  %v2906_v49 = vld [vmem:[%s3536_s3 + $0x130] sm:$0xff]  }
  0x4b   : > { %v447_v4 = vor.u32 %v445_v41, %v444_v56  ;;  %v448_v2 = vrot.slane %v444_v56, 4  ;;  %2750 = vmatprep.subr.bf16.mxu1 %v2902_v62  ;;  %v453_v10 = vshll.u32 %v2573_v52, 16  ;;  %v723_v13 = vld [vmem:[#allocation2 + $0x30] sm:$0xe]  ;;  %v661_v32 = vrot.slane %v659_v61, 5 }
  0x4c   : > { %2061 = vmatmul.mubr.bf16.gmra.mrb[8].mxu1 %v2448_v63  ;;  %v656_v15 = vor.u32 %v655_v8, %v652_v7  ;;  %v3319_v16 = vrot.slane %v450_v9, 7  ;;  %v509_v17 = vld [vmem:[#allocation2 + $0x34] sm:$0x1]  ;;  %v515_v18 = vld [vmem:[#allocation2 + $0x3c] sm:$0x1]  ;;  %v648_v21 = vsel %vm3163_vm12, %v643_v1, %v647_v6  ;;  %v2444_v25 = vrot.slane %v723_v13, 9 }
  0x4d   : > { %2707 = vmatpush3.bf16.msra.mxu0 %v2901_v37  ;;  %v513_v11 = vsel %vm3121_vm6, %v447_v4, %v512_v5  ;;  %2751 = vmatpush3.bf16.msra.mxu1 %v2903_v58  ;;  %v510_v19 = vsel %vm3084_vm2, %v440_v53, %v509_v17  ;;  %v516_v20 = vsel %vm3084_vm2, %v448_v2, %v515_v18  ;;  %v2895_v23 = vld [vmem:[#allocation2 + $0x20] ss:$8 sps:$4 sm:$0xff]   ;;  %v572_v33 = vld [vmem:[#allocation2 + $0x30] sm:$0xf]  ;;  %v1104_v1 = vld [vmem:[#allocation2 + $0x14] sm:$0x1] }
  0x4e   : > { %514 = vst [vmem:[#allocation2 + $0x38] sm:$0xf] %v513_v11  ;;  %2708 = vmatprep.subr.bf16.mxu0 %v2904_v14  ;;  %v657_v22 = vrot.slane %v656_v15, 4  ;;  %v455_v24 = vor.u32 %v453_v10, %v3319_v16  ;;  %511 = vst [vmem:[#allocation2 + $0x34] sm:$0x1] %v510_v19  ;;  %v664_v29 = vshrl.u32 %v572_v33, 16 }
  0x4f   : > { %517 = vst [vmem:[#allocation2 + $0x3c] sm:$0x1] %v516_v20  ;;  %v667_v30 = vshll.u32 %v572_v33, 16  ;;  %v3338_v53 = vld [vmem:[%s3536_s3 + $0x200] sm:$0xff]   ;;  %v1103_v63 = vld [vmem:[#allocation2 + $0x10] sm:$0xf] }
  0x50   : > { %v662_v26 = vsel %vm3163_vm12, %v657_v22, %v661_v32  ;;  %v519_v27 = vsel %vm3121_vm6, %v455_v24, %v518_v12  ;;  %v666_v36 = vrot.slane %v664_v29, 4  ;;  %2812 = vmatprep.subr.bf16.mxu1 %v3338_v53  ;;  %v1105_v4 = vld [vmem:[#allocation2 + $0x18] sm:$0xf]  ;;  %v1106_v2 = vld [vmem:[#allocation2 + $0x1c] sm:$0x1]  ;;  %v1120_v5 = vshrl.u32 %v1103_v63, 16 }
  0x51   : > { %v2436_v28 = vcombine.low %v648_v21, %v662_v26  ;;  %520 = vst [vmem:[#allocation2 + $0x40] sm:$0xf] %v519_v27  ;;  %v669_v37 = vrot.slane %v667_v30, 5  ;;  %2709 = vmatpush3.bf16.msra.mxu0 %v2906_v49  ;;  %v1123_v58 = vshll.u32 %v1103_v63, 16  ;;  %v1129_v7 = vshll.u32 %v1104_v1, 16  ;;  %v2909_v10 = vld [vmem:[%s3536_s3 + $0x178] sm:$0xff]  }
  0x52   : > { %v1134_v8 = vshrl.u32 %v1105_v4, 16  ;;  %v1137_v9 = vshll.u32 %v1105_v4, 16  ;;  %v1122_v11 = vrot.slane %v1120_v5, 4  ;;  %v1143_v13 = vshll.u32 %v1106_v2, 16  ;;  %v2910_v14 = vld [vmem:[%s3536_s3 + $0x138] sm:$0xff]   ;;  %2710 = vmatprep.subr.bf16.mxu0 %v2909_v10  ;;  %v3374_v10 = vld [vmem:[%s3536_s3 + $0x210] sm:$0xff]  }
  0x53   : > { %1995 = vmatprep.mubr.bf16.mxu0 %v2436_v28  ;;  %v670_v47 = vor.u32 %v669_v37, %v666_v36  ;;  %v1125_v12 = vrot.slane %v1123_v58, 5  ;;  %v1131_v21 = vrot.slane %v1129_v7, 5  ;;  %v2907_v33 = vld [vmem:[#allocation2 + $0x10] ss:$8 sps:$4 sm:$0xff]   ;;  %v982_v28 = vld [vmem:[#allocation2 + $0x8] sm:$0xe] }
  0x54   : > { %1996 = vmatmul.mubr.bf16.gmra.mrb[8].mxu0 %v2895_v23  ;;  %v1136_v18 = vrot.slane %v1134_v8, 4  ;;  %v1139_v19 = vrot.slane %v1137_v9, 5  ;;  %v1145_v22 = vrot.slane %v1143_v13, 5  ;;  %v983_v30 = vld [vmem:[#allocation2 + $0xc] sm:$0x1]  ;;  %v2458_v36 = vrot.slane %v982_v28, 9 }
  0x55   : > { %v725_v31 = vld [vmem:[#allocation2 + $0x38] sm:$0xe]  ;;  %v724_v41 = vld [vmem:[#allocation2 + $0x34] sm:$0x1]  ;;  %v671_v57 = vrot.slane %v670_v47, 4  ;;  %v1126_v20 = vor.u32 %v1125_v12, %v1122_v11  ;;  %2711 = vmatpush3.bf16.msra.mxu0 %v2910_v14  ;;  %v1016_v37 = vrot.slane %v983_v30, 5 }
  0x56   : > { %v574_v34 = vld [vmem:[#allocation2 + $0x38] sm:$0xf]  ;;  %v2445_v35 = vrot.slane %v725_v31, 9  ;;  %v726_v42 = vld [vmem:[#allocation2 + $0x3c] sm:$0x1]  ;;  %v772_v44 = vrot.slane %v724_v41, 5  ;;  %v1140_v24 = vor.u32 %v1139_v19, %v1136_v18  ;;  %2788 = vmatprep.subr.bf16.mxu0 %v3338_v53 }
  0x57   : > { %v678_v39 = vshrl.u32 %v574_v34, 16  ;;  %v573_v43 = vld [vmem:[#allocation2 + $0x34] sm:$0x1]  ;;  %v776_v46 = vrot.slane %v726_v42, 5  ;;  %v575_v3 = vld [vmem:[#allocation2 + $0x3c] sm:$0x1] }
  0x58   : > { %v673_v48 = vshll.u32 %v573_v43, 16  ;;  %v681_v51 = vshll.u32 %v574_v34, 16  ;;  %v687_v52 = vshll.u32 %v575_v3, 16  ;;  %v2896_v54 = vld [vmem:[#allocation2 + $0x38] ss:$8 sps:$4 sm:$0xff]   ;;  %v773_v55 = vsel %vm3149_vm10, %v2444_v25, %v772_v44  ;;  %v3363_v47 = vld [vmem:[%s3536_s3 + $0x208] sm:$0xff]  }
  0x59   : > { %v680_v50 = vrot.slane %v678_v39, 4  ;;  %v777_v56 = vsel %vm3149_vm10, %v2445_v35, %v776_v46  ;;  %2068 = vmatprep.mubr.bf16.mxu1 %v2896_v54  ;;  %v2905_v17 = vld [vmem:[#allocation2 + $0x30] ss:$8 sps:$4 sm:$0xff]   ;;  %v1127_v26 = vrot.slane %v1126_v20, 4  ;;  %v1141_v27 = vrot.slane %v1140_v24, 4 }
  0x5a   : > { %v675_v59 = vrot.slane %v673_v48, 5  ;;  %v2449_v60 = vcombine.low %v773_v55, %v777_v56  ;;  %v683_v61 = vrot.slane %v681_v51, 5  ;;  %v689_v62 = vrot.slane %v687_v52, 5  ;;  %v984_v31 = vld [vmem:[#allocation2 + $0x10] sm:$0xe]  ;;  %v3379_v19 = vld [vmem:[%s3536_s3 + $0x218] sm:$0xff]  }
  0x5b   : > { %v1132_v29 = vsel %vm3163_vm12, %v1127_v26, %v1131_v21  ;;  %v985_v34 = vld [vmem:[#allocation2 + $0x14] sm:$0x1]  ;;  %v1146_v35 = vsel %vm3163_vm12, %v1141_v27, %v1145_v22  ;;  %v2459_v39 = vrot.slane %v984_v31, 9  ;;  %v834_v41 = vld [vmem:[#allocation2 + $0x8] sm:$0xf]  ;;  %v1017_v48 = vsel %vm3149_vm10, %v2458_v36, %v1016_v37 }
  0x5c   : > { %2069 = vmatmul.mubr.bf16.gmra.mrb[12].mxu1 %v2449_v60  ;;  %v684_v6 = vor.u32 %v683_v61, %v680_v50  ;;  %v676_v15 = vsel %vm3163_vm12, %v671_v57, %v675_v59  ;;  %v2474_v42 = vcombine.low %v1132_v29, %v1146_v35  ;;  %v1020_v43 = vrot.slane %v985_v34, 5  ;;  %v835_v44 = vld [vmem:[#allocation2 + $0xc] sm:$0x1]  ;;  %v836_v46 = vld [vmem:[#allocation2 + $0x10] sm:$0xf] }
  0x5d   : > { %v851_v3 = vshrl.u32 %v834_v41, 16  ;;  %v837_v49 = vld [vmem:[#allocation2 + $0x14] sm:$0x1]  ;;  %v854_v50 = vshll.u32 %v834_v41, 16  ;;  %v860_v51 = vshll.u32 %v835_v44, 16  ;;  %v865_v52 = vshrl.u32 %v836_v46, 16 }
  0x5e   : > { %v685_v32 = vrot.slane %v684_v6, 4  ;;  %2174 = vmatprep.mubr.bf16.mxu1 %v2474_v42  ;;  %v1021_v54 = vsel %vm3149_vm10, %v2459_v39, %v1020_v43  ;;  %v868_v56 = vshll.u32 %v836_v46, 16  ;;  %v874_v57 = vshll.u32 %v837_v49, 16  ;;  %v1107_v59 = vld [vmem:[#allocation2 + $0x20] sm:$0xf] }
  0x5f   : > { %v853_v55 = vrot.slane %v851_v3, 4  ;;  %v2466_v60 = vcombine.low %v1017_v48, %v1021_v54  ;;  %v856_v61 = vrot.slane %v854_v50, 5  ;;  %v867_v63 = vrot.slane %v865_v52, 4  ;;  %v1108_v1 = vld [vmem:[#allocation2 + $0x24] sm:$0x1] }
  0x60   : > { %v690_v23 = vsel %vm3163_vm12, %v685_v32, %v689_v62  ;;  %v862_v62 = vrot.slane %v860_v51, 5  ;;  %v870_v4 = vrot.slane %v868_v56, 5  ;;  %v876_v2 = vrot.slane %v874_v57, 5  ;;  %v1109_v5 = vld [vmem:[#allocation2 + $0x28] sm:$0xf]  ;;  %v3396_v50 = vld [vmem:[%s3536_s3 + $0x220] sm:$0xff]  }
  0x61   : > { %v2437_v25 = vcombine.low %v676_v15, %v690_v23  ;;  %v1110_v58 = vld [vmem:[#allocation2 + $0x2c] sm:$0x1]  ;;  %v857_v6 = vor.u32 %v856_v61, %v853_v55  ;;  %v1148_v7 = vshrl.u32 %v1107_v59, 16  ;;  %v1151_v8 = vshll.u32 %v1107_v59, 16  ;;  %v987_v28 = vld [vmem:[#allocation2 + $0x1c] sm:$0x1] }
  0x62   : > { %v1157_v9 = vshll.u32 %v1108_v1, 16  ;;  %v871_v11 = vor.u32 %v870_v4, %v867_v63  ;;  %v1162_v12 = vshrl.u32 %v1109_v5, 16  ;;  %v1165_v13 = vshll.u32 %v1109_v5, 16  ;;  %v988_v29 = vld [vmem:[#allocation2 + $0x20] sm:$0xe]  ;;  %v3407_v4 = vld [vmem:[%s3536_s3 + $0x228] sm:$0xff]  }
  0x63   : > { %2003 = vmatprep.mubr.bf16.mxu0 %v2437_v25  ;;  %v1171_v14 = vshll.u32 %v1110_v58, 16  ;;  %v858_v15 = vrot.slane %v857_v6, 4  ;;  %v1150_v32 = vrot.slane %v1148_v7, 4  ;;  %v989_v34 = vld [vmem:[#allocation2 + $0x24] sm:$0x1]  ;;  %v1024_v36 = vrot.slane %v987_v28, 5 }
  0x64   : > { %2004 = vmatmul.mubr.bf16.gmra.mrb[12].mxu0 %v2905_v17  ;;  %2175 = vmatmul.mubr.bf16.vlgmr.msra.gmra.mrb[16].mxu1 %v2907_v33  ;;  %v1153_v17 = vrot.slane %v1151_v8, 5  ;;  %v1159_v18 = vrot.slane %v1157_v9, 5  ;;  %v872_v20 = vrot.slane %v871_v11, 4  ;;  %v1164_v21 = vrot.slane %v1162_v12, 4  ;;  %v986_v33 = vld [vmem:[#allocation2 + $0x18] sm:$0xe] }
  0x65   : > { %2820 = vmatpush3.bf16.msra.mxu1 %v3338_v53  ;;  %2109 = vmatprep.mubr.bf16.mxu0 %v2466_v60  ;;  %v1167_v22 = vrot.slane %v1165_v13, 5  ;;  %v1173_v23 = vrot.slane %v1171_v14, 5  ;;  %v863_v24 = vsel %vm3163_vm12, %v858_v15, %v862_v62  ;;  %v2460_v35 = vrot.slane %v986_v33, 9  ;;  %v2912_v39 = vld [vmem:[#allocation2 + $0x20] ss:$8 sps:$4 sm:$0xff]  }
  0x66   : > { %2813 = vmatprep.subr.bf16.mxu1 %v3363_v47  ;;  %v1154_v25 = vor.u32 %v1153_v17, %v1150_v32  ;;  %v877_v26 = vsel %vm3163_vm12, %v872_v20, %v876_v2  ;;  %v2461_v41 = vrot.slane %v988_v29, 9  ;;  %v1028_v42 = vrot.slane %v989_v34, 5  ;;  %v838_v43 = vld [vmem:[#allocation2 + $0x18] sm:$0xf]  ;;  %v839_v3 = vld [vmem:[#allocation2 + $0x1c] sm:$0x1] }
  0x67   : > { %v1168_v27 = vor.u32 %v1167_v22, %v1164_v21  ;;  %v2454_v30 = vcombine.low %v863_v24, %v877_v26  ;;  %v1025_v46 = vsel %vm3149_vm10, %v2460_v35, %v1024_v36  ;;  %v840_v48 = vld [vmem:[#allocation2 + $0x20] sm:$0xf]  ;;  %v841_v49 = vld [vmem:[#allocation2 + $0x24] sm:$0x1]  ;;  %v879_v54 = vshrl.u32 %v838_v43, 16 }
  0x68   : > { %v1155_v31 = vrot.slane %v1154_v25, 4  ;;  %v1029_v52 = vsel %vm3149_vm10, %v2461_v41, %v1028_v42  ;;  %v882_v55 = vshll.u32 %v838_v43, 16  ;;  %v1111_v56 = vld [vmem:[#allocation2 + $0x30] sm:$0xf]  ;;  %v1112_v57 = vld [vmem:[#allocation2 + $0x34] sm:$0x1] }
  0x69   : > { %2821 = vmatpush3.bf16.msra.mxu1 %v3363_v47  ;;  %v1169_v37 = vrot.slane %v1168_v27, 4  ;;  %v2467_v60 = vcombine.low %v1025_v46, %v1029_v52  ;;  %v888_v61 = vshll.u32 %v839_v3, 16  ;;  %v893_v62 = vshrl.u32 %v840_v48, 16  ;;  %v1113_v63 = vld [vmem:[#allocation2 + $0x38] sm:$0xf] }
  0x6a   : > { %2814 = vmatprep.subr.bf16.mxu1 %v3374_v10  ;;  %v1160_v44 = vsel %vm3163_vm12, %v1155_v31, %v1159_v18  ;;  %v1114_v1 = vld [vmem:[#allocation2 + $0x3c] sm:$0x1]  ;;  %v884_v2 = vrot.slane %v882_v55, 5  ;;  %v896_v5 = vshll.u32 %v840_v48, 16  ;;  %v902_v58 = vshll.u32 %v841_v49, 16 }
  0x6b   : > { %v1174_v51 = vsel %vm3163_vm12, %v1169_v37, %v1173_v23  ;;  %v890_v6 = vrot.slane %v888_v61, 5  ;;  %v895_v7 = vrot.slane %v893_v62, 4  ;;  %v1176_v8 = vshrl.u32 %v1111_v56, 16  ;;  %v990_v29 = vld [vmem:[#allocation2 + $0x28] sm:$0xe] }
  0x6c   : > { %2110 = vmatmul.mubr.bf16.vlgmr.msra.gmra.mrb[16].mxu0 %v2454_v30  ;;  %v2475_v59 = vcombine.low %v1160_v44, %v1174_v51  ;;  %v1179_v9 = vshll.u32 %v1111_v56, 16  ;;  %v898_v12 = vrot.slane %v896_v5, 5  ;;  %v904_v13 = vrot.slane %v902_v58, 5  ;;  %v991_v30 = vld [vmem:[#allocation2 + $0x2c] sm:$0x1] }
  0x6d   : > { %2822 = vmatpush3.bf16.msra.mxu1 %v3374_v10  ;;  %2789 = vmatpush3.bf16.msra.mxu0 %v3338_v53  ;;  %v881_v53 = vrot.slane %v879_v54, 4  ;;  %v1185_v14 = vshll.u32 %v1112_v57, 16  ;;  %v1178_v15 = vrot.slane %v1176_v8, 4  ;;  %v1190_v17 = vshrl.u32 %v1113_v63, 16  ;;  %v992_v35 = vld [vmem:[#allocation2 + $0x30] sm:$0xe] }
  0x6e   : > { %2815 = vmatprep.subr.bf16.mxu1 %v3379_v19  ;;  %2790 = vmatprep.subr.bf16.mxu0 %v3363_v47  ;;  %v1181_v32 = vrot.slane %v1179_v9, 5  ;;  %v1193_v18 = vshll.u32 %v1113_v63, 16  ;;  %v899_v21 = vor.u32 %v898_v12, %v895_v7  ;;  %v1199_v23 = vshll.u32 %v1114_v1, 16  ;;  %v993_v36 = vld [vmem:[#allocation2 + $0x34] sm:$0x1] }
  0x6f   : > { %2182 = vmatprep.mubr.bf16.mxu1 %v2475_v59  ;;  %2117 = vmatprep.mubr.bf16.mxu0 %v2467_v60  ;;  %v885_v11 = vor.u32 %v884_v2, %v881_v53  ;;  %v1187_v22 = vrot.slane %v1185_v14, 5  ;;  %v1192_v25 = vrot.slane %v1190_v17, 4  ;;  %v2462_v37 = vrot.slane %v990_v29, 9  ;;  %v842_v44 = vld [vmem:[#allocation2 + $0x28] sm:$0xf] }
  0x70   : > { %2183 = vmatmul.mubr.bf16.gmra.mrb[20].mxu1 %v2912_v39  ;;  %v1182_v24 = vor.u32 %v1181_v32, %v1178_v15  ;;  %v1195_v26 = vrot.slane %v1193_v18, 5  ;;  %v900_v33 = vrot.slane %v899_v21, 4  ;;  %v1201_v28 = vrot.slane %v1199_v23, 5  ;;  %v2915_v49 = vld [vmem:[#allocation2 + $0x30] ss:$8 sps:$4 sm:$0xff]  }
  0x71   : > { %2823 = vmatpush3.bf16.msra.mxu1 %v3379_v19  ;;  %2791 = vmatpush3.bf16.msra.mxu0 %v3363_v47  ;;  %v886_v20 = vrot.slane %v885_v11, 4  ;;  %v3417_v47 = vld [vmem:[%s3536_s3 + $0x230] sm:$0xff]   ;;  %v1032_v41 = vrot.slane %v991_v30, 5  ;;  %v2463_v42 = vrot.slane %v992_v35, 9  ;;  %v1036_v43 = vrot.slane %v993_v36, 5 }
  0x72   : > { %2792 = vmatprep.subr.bf16.mxu0 %v3374_v10  ;;  %2816 = vmatprep.subr.bf16.mxu1 %v3396_v50  ;;  %v1183_v31 = vrot.slane %v1182_v24, 4  ;;  %v1196_v34 = vor.u32 %v1195_v26, %v1192_v25  ;;  %v905_v39 = vsel %vm3163_vm12, %v900_v33, %v904_v13  ;;  %v843_v51 = vld [vmem:[#allocation2 + $0x2c] sm:$0x1]  ;;  %v844_v52 = vld [vmem:[#allocation2 + $0x30] sm:$0xf]  ;;  %v907_v54 = vshrl.u32 %v842_v44, 16 }
  0x73   : > { %v891_v27 = vsel %vm3163_vm12, %v886_v20, %v890_v6  ;;  %v1033_v55 = vsel %vm3149_vm10, %v2462_v37, %v1032_v41  ;;  %v1037_v56 = vsel %vm3149_vm10, %v2463_v42, %v1036_v43  ;;  %v845_v57 = vld [vmem:[#allocation2 + $0x34] sm:$0x1]  ;;  %v910_v59 = vshll.u32 %v842_v44, 16  ;;  %v326_v61 = vld [vmem:[#allocation2 + $0x48] sm:$0x1] }
  0x74   : > { %v2455_v46 = vcombine.low %v891_v27, %v905_v39  ;;  %v1188_v3 = vsel %vm3163_vm12, %v1183_v31, %v1187_v22  ;;  %v1197_v48 = vrot.slane %v1196_v34, 4  ;;  %v916_v60 = vshll.u32 %v843_v51, 16  ;;  %v358_v2 = vld [vmem:[#allocation2 + $0x4c] sm:$0x1]  ;;  %v1115_v8 = vld [vmem:[#allocation2 + $0x40] sm:$0xf] }
  0x75   : > { %2824 = vmatpush3.bf16.msra.mxu1 %v3396_v50  ;;  %2793 = vmatpush3.bf16.msra.mxu0 %v3374_v10  ;;  %v3430_v10 = vld [vmem:[%s3536_s3 + $0x238] sm:$0xff]   ;;  %v2468_v63 = vcombine.low %v1033_v55, %v1037_v56  ;;  %v909_v1 = vrot.slane %v907_v54, 4  ;;  %v921_v53 = vshrl.u32 %v844_v52, 16  ;;  %v912_v58 = vrot.slane %v910_v59, 5  ;;  %v3459_v27 = vld [vmem:[#allocation2 + $0x40] sm:$0xe] }
  0x76   : > { %2817 = vmatprep.subr.bf16.mxu1 %v3407_v4  ;;  %2794 = vmatprep.subr.bf16.mxu0 %v3379_v19  ;;  %v1202_v62 = vsel %vm3163_vm12, %v1197_v48, %v1201_v28  ;;  %v918_v6 = vrot.slane %v916_v60, 5  ;;  %v924_v7 = vshll.u32 %v844_v52, 16  ;;  %v930_v11 = vshll.u32 %v845_v57, 16  ;;  %v3454_v24 = vld [vmem:[#allocation2 + $0x38] sm:$0xe] }
  0x77   : > { %2118 = vmatmul.mubr.bf16.gmra.mrb[20].mxu0 %v2455_v46  ;;  %v2476_v5 = vcombine.low %v1188_v3, %v1202_v62  ;;  %v923_v9 = vrot.slane %v921_v53, 4  ;;  %v327_v12 = vsel %vm3084_vm2, 0, %v326_v61  ;;  %v913_v14 = vor.u32 %v912_v58, %v909_v1  ;;  %v3457_v26 = vld [vmem:[#allocation2 + $0x3c] sm:$0x1]  ;;  %v846_v30 = vld [vmem:[#allocation2 + $0x38] sm:$0xf] }
  0x78   : > { %2125 = vmatprep.mubr.bf16.mxu0 %v2468_v63  ;;  %v926_v15 = vrot.slane %v924_v7, 5  ;;  %328 = vst [vmem:[#allocation2 + $0x48] sm:$0x1] %v327_v12  ;;  %v359_v32 = vsel %vm3096_vm4, 0, %v358_v2  ;;  %v1204_v17 = vshrl.u32 %v1115_v8, 16  ;;  %v932_v18 = vrot.slane %v930_v11, 5 }
  0x79   : > { %2825 = vmatpush3.bf16.msra.mxu1 %v3407_v4  ;;  %2795 = vmatpush3.bf16.msra.mxu0 %v3379_v19  ;;  %v355_v19 = vld [vmem:[#allocation2 + $0x44] sm:$0x1]  ;;  %360 = vst [vmem:[#allocation2 + $0x4c] sm:$0x1] %v359_v32  ;;  %v1207_v20 = vshll.u32 %v1115_v8, 16  ;;  %v914_v21 = vrot.slane %v913_v14, 4 }
  0x7a   : > { %2818 = vmatprep.subr.bf16.mxu1 %v3417_v47  ;;  %2796 = vmatprep.subr.bf16.mxu0 %v3396_v50  ;;  %v356_v13 = vsel %vm3096_vm4, 0, %v355_v19  ;;  %v927_v22 = vor.u32 %v926_v15, %v923_v9  ;;  %v1206_v23 = vrot.slane %v1204_v17, 4  ;;  %v456_v25 = vrot.slane %v3319_v16, 4  ;;  %v847_v16 = vld [vmem:[#allocation2 + $0x3c] sm:$0x1] }
  0x7b   : > { %2190 = vmatprep.mubr.bf16.mxu1 %v2476_v5  ;;  %357 = vst [vmem:[#allocation2 + $0x44] sm:$0x1] %v356_v13  ;;  %v1209_v45 = vrot.slane %v1207_v20, 5  ;;  %v2464_v28 = vrot.slane %v3454_v24, 9  ;;  %v1040_v29 = vrot.slane %v3457_v26, 5  ;;  %v935_v35 = vshrl.u32 %v846_v30, 16 }
  0x7c   : > { %2191 = vmatmul.mubr.bf16.gmra.mrb[24].mxu1 %v2915_v49  ;;  %v928_v33 = vrot.slane %v927_v22, 4  ;;  %v848_v34 = vld [vmem:[#allocation2 + $0x40] sm:$0xf]  ;;  %v938_v36 = vshll.u32 %v846_v30, 16  ;;  %v944_v39 = vshll.u32 %v847_v16, 16  ;;  %v2465_v3 = vrot.slane %v3459_v27, 9 }
  0x7d   : > { %2826 = vmatpush3.bf16.msra.mxu1 %v3417_v47  ;;  %2797 = vmatpush3.bf16.msra.mxu0 %v3396_v50  ;;  %v919_v50 = vsel %vm3163_vm12, %v914_v21, %v918_v6  ;;  %v1210_v31 = vor.u32 %v1209_v45, %v1206_v23  ;;  %v949_v41 = vshrl.u32 %v848_v34, 16  ;;  %v1259_v42 = vld [vmem:[#allocation2 + $0x30] sm:$0xe]  ;;  %v1260_v43 = vld [vmem:[#allocation2 + $0x34] sm:$0x1]  ;;  %v937_v48 = vrot.slane %v935_v35, 4 }
  0x7e   : > { %2819 = vmatprep.subr.bf16.mxu1 %v3430_v10  ;;  %2798 = vmatprep.subr.bf16.mxu0 %v3407_v4  ;;  %v933_v37 = vsel %vm3163_vm12, %v928_v33, %v932_v18  ;;  %v940_v57 = vrot.slane %v938_v36, 5  ;;  %v3475_v59 = vrot.slane %v944_v39, 5  ;;  %v952_v38 = vshll.u32 %v848_v34, 16  ;;  %v1261_v63 = vld [vmem:[#allocation2 + $0x38] sm:$0xe] }
  0x7f   : > { %v1117_v46 = vld [vmem:[#allocation2 + $0x48] sm:$0xf]  ;;  %v3473_v55 = vrot.slane %v1210_v31, 4  ;;  %v951_v62 = vrot.slane %v949_v41, 4  ;;  %v1262_v53 = vld [vmem:[#allocation2 + $0x3c] sm:$0x1] }
  0x80   : > { %v1118_v51 = vld [vmem:[#allocation2 + $0x4c] sm:$0x1]  ;;  %v1218_v52 = vshrl.u32 %v1117_v46, 16  ;;  %v1221_v54 = vshll.u32 %v1117_v46, 16  ;;  %v941_v1 = vor.u32 %v940_v57, %v937_v48  ;;  %v2482_v19 = vrot.slane %v1259_v42, 9 }
  0x81   : > { %2827 = vmatpush3.bf16.msra.mxu1 %v3430_v10  ;;  %2799 = vmatpush3.bf16.msra.mxu0 %v3407_v4  ;;  %v2456_v4 = vcombine.low %v919_v50, %v933_v37  ;;  %v1227_v56 = vshll.u32 %v1118_v51, 16  ;;  %v1301_v2 = vrot.slane %v1260_v43, 5  ;;  %v954_v58 = vrot.slane %v952_v38, 5  ;;  %v3478_v7 = vld [vmem:[#allocation2 + $0x40] sm:$0xe] }
  0x82   : > { %2800 = vmatprep.subr.bf16.mxu0 %v3417_v47  ;;  %v521_v44 = vld [vmem:[#allocation2 + $0x44] sm:$0x1]  ;;  %v1220_v60 = vrot.slane %v1218_v52, 4  ;;  %v1223_v61 = vrot.slane %v1221_v54, 5  ;;  %v1305_v6 = vrot.slane %v1262_v53, 5  ;;  %v942_v11 = vrot.slane %v941_v1, 4 }
  0x83   : > { %v522_v49 = vsel %vm3084_vm2, %v456_v25, %v521_v44  ;;  %2126 = vmatmul.mubr.bf16.gmra.mrb[24].mxu0 %v2456_v4  ;;  %v3480_v8 = vld [vmem:[#allocation2 + $0x48] sm:$0xe]  ;;  %v1229_v9 = vrot.slane %v1227_v56, 5  ;;  %v1266_v12 = vld [vmem:[#allocation2 + $0x4c] sm:$0x1]  ;;  %v2484_v13 = vrot.slane %v3478_v7, 9  ;;  %v955_v32 = vor.u32 %v954_v58, %v951_v62 }
  0x84   : > { %523 = vst [vmem:[#allocation2 + $0x44] sm:$0x1] %v522_v49  ;;  %v1224_v5 = vor.u32 %v1223_v61, %v1220_v60  ;;  %v2485_v14 = vrot.slane %v3480_v8, 9  ;;  %v1313_v17 = vrot.slane %v1266_v12, 5  ;;  %v1251_v18 = vld [vmem:[#allocation2 + $0x10] sm:$0xe]  ;;  %v1302_v30 = vsel %vm3149_vm10, %v2482_v19, %v1301_v2 }
  0x85   : > { %2801 = vmatpush3.bf16.msra.mxu0 %v3417_v47  ;;  %v2483_v47 = vrot.slane %v1261_v63, 9  ;;  %v1252_v20 = vld [vmem:[#allocation2 + $0x14] sm:$0x1]  ;;  %v1253_v21 = vld [vmem:[#allocation2 + $0x18] sm:$0xe]  ;;  %v2478_v23 = vrot.slane %v1251_v18, 9  ;;  %v947_v26 = vsel %vm3163_vm12, %v942_v11, %v3475_v59 }
  0x86   : > { %2802 = vmatprep.subr.bf16.mxu0 %v3430_v10  ;;  %v1225_v15 = vrot.slane %v1224_v5, 4  ;;  %v1254_v22 = vld [vmem:[#allocation2 + $0x1c] sm:$0x1]  ;;  %v1285_v25 = vrot.slane %v1252_v20, 5  ;;  %v956_v35 = vrot.slane %v955_v32, 4  ;;  %v1314_v53 = vsel %vm3149_vm10, %v2485_v14, %v1313_v17 }
  0x87   : > { %v1306_v31 = vsel %vm3149_vm10, %v2483_v47, %v1305_v6  ;;  %v1255_v39 = vld [vmem:[#allocation2 + $0x20] sm:$0xe]  ;;  %v1256_v44 = vld [vmem:[#allocation2 + $0x24] sm:$0x1]  ;;  %v1257_v46 = vld [vmem:[#allocation2 + $0x28] sm:$0xe] }
  0x88   : > { %v1286_v24 = vsel %vm3149_vm10, %v2478_v23, %v1285_v25  ;;  %v1230_v42 = vsel %vm3163_vm12, %v1225_v15, %v1229_v9  ;;  %v2488_v49 = vcombine.low %v1302_v30, %v1306_v31  ;;  %v1258_v54 = vld [vmem:[#allocation2 + $0x2c] sm:$0x1]  ;;  %v2918_v57 = vld [vmem:[#allocation2 + $0x40] ss:$8 sps:$4 sm:$0xff]   ;;  %v1293_v62 = vrot.slane %v1256_v44, 5 }
  0x89   : > { %2803 = vmatpush3.bf16.msra.mxu0 %v3430_v10  ;;  %v1041_v10 = vsel %vm3149_vm10, %v2464_v28, %v1040_v29  ;;  %v2479_v28 = vrot.slane %v1253_v21, 9  ;;  %v1289_v29 = vrot.slane %v1254_v22, 5  ;;  %v2481_v38 = vrot.slane %v1257_v46, 9 }
  0x8a   : > { %v1297_v63 = vrot.slane %v1258_v54, 5 }
  0x8b   : > { %v1116_v45 = vld [vmem:[#allocation2 + $0x44] sm:$0x1]  ;;  %v1290_v52 = vsel %vm3149_vm10, %v2479_v28, %v1289_v29 }
  0x8c   : > { %v997_v50 = vld [vmem:[#allocation2 + $0x44] sm:$0x1]  ;;  %v1213_v16 = vshll.u32 %v1116_v45, 16  ;;  %v2486_v59 = vcombine.low %v1286_v24, %v1290_v52 }
  0x8d   : > { %v849_v33 = vld [vmem:[#allocation2 + $0x44] sm:$0x1]  ;;  %v1044_v34 = vrot.slane %v997_v50, 5 }
  0x8e   : > { %v958_v36 = vshll.u32 %v849_v33, 16  ;;  %v1264_v37 = vld [vmem:[#allocation2 + $0x44] sm:$0x1]  ;;  %v1215_v41 = vrot.slane %v1213_v16, 5 }
  0x8f   : > { %v1045_v43 = vsel %vm3149_vm10, %v2465_v3, %v1044_v34  ;;  %v1309_v51 = vrot.slane %v1264_v37, 5  ;;  %v2480_v3 = vrot.slane %v1255_v39, 9 }
  0x90   : > { %v960_v4 = vrot.slane %v958_v36, 5  ;;  %v2469_v48 = vcombine.low %v1041_v10, %v1045_v43  ;;  %v1216_v56 = vsel %vm3163_vm12, %v3473_v55, %v1215_v41  ;;  %v1298_v55 = vsel %vm3149_vm10, %v2481_v38, %v1297_v63 }
  0x91   : > { %v2477_v60 = vcombine.low %v1216_v56, %v1230_v42  ;;  %v1294_v1 = vsel %vm3149_vm10, %v2480_v3, %v1293_v62  ;;  %v1310_v0 = vsel %vm3149_vm10, %v2484_v13, %v1309_v51 }
  0x92   : > { %v961_v27 = vsel %vm3163_vm12, %v956_v35, %v960_v4  ;;  %2133 = vmatprep.mubr.bf16.mxu0 %v2469_v48  ;;  %v2487_v19 = vcombine.low %v1294_v1, %v1298_v55  ;;  %v2489_v2 = vcombine.low %v1310_v0, %v1314_v53 }
  0x93   : > { %v2457_v61 = vcombine.low %v947_v26, %v961_v27  ;;  %2198 = vmatprep.mubr.bf16.mxu1 %v2477_v60 }
  0x94   : > { %2199 = vmatmul.mubr.bf16.gmra.mrb[28].mxu1 %v2918_v57 }
  0x95   : > { %2134 = vmatmul.mubr.bf16.gmra.mrb[28].mxu0 %v2457_v61  ;;  %2808 = vmatprep.mubr.bf16.mxu1 %v2488_v49 }
  0x96   : > { %2804 = vmatprep.mubr.bf16.mxu0 %v2486_v59 }
  0x9c   : > { %2809 = vmatmul.mubr.bf16.vlgmr.msra.gmra.mrb[32].mxu1 %v2489_v2 }
  0x9d   : > { %2805 = vmatmul.mubr.bf16.vlgmr.msra.gmra.mrb[32].mxu0 %v2487_v19 }
 0x103   : > { %v2672_v47 = vpop.f32.mrb[0].mxu1 }
 0x104   : > { %v2673_v5 = vpop.f32.mrb[1].mxu1 }
 0x105   : > { %v2674_v58 = vadd.f32 %v2673_v5, %v2672_v47  ;;  %v2675_v6 = vpop.f32.mrb[2].mxu1 }
 0x106   : > { %v2676_v7 = vpop.f32.mrb[3].mxu1 }
 0x107   : > { %v2677_v8 = vadd.f32 %v2676_v7, %v2675_v6 }
 0x10b   : > { %v2632_v9 = vpop.f32.mrb[0].mxu0 }
 0x10c   : > { %v2633_v11 = vpop.f32.mrb[1].mxu0 }
 0x10d   : > { %v2634_v12 = vadd.f32 %v2633_v11, %v2632_v9  ;;  %v2635_v15 = vpop.f32.mrb[2].mxu0 }
 0x10e   : > { %v2636_v32 = vpop.f32.mrb[3].mxu0 }
 0x10f   : > { %v2047_v18 = vadd.f32 %v2674_v58, %v2634_v12  ;;  %v2637_v13 = vadd.f32 %v2636_v32, %v2635_v15 }
 0x111   : > { %v2050_v20 = vadd.f32 %v2677_v8, %v2637_v13 }
 0x112   : > { %v2678_v40 = vpop.f32.mrb[4].mxu1 }
 0x113   : > { %v2679_v14 = vpop.f32.mrb[5].mxu1 }
 0x114   : > { %v2680_v17 = vadd.f32 %v2679_v14, %v2678_v40  ;;  %v2681_v21 = vpop.f32.mrb[6].mxu1 }
 0x115   : > { %v2682_v22 = vpop.f32.mrb[7].mxu1 }
 0x116   : > { %v2683_v23 = vadd.f32 %v2682_v22, %v2681_v21 }
 0x11a   : > { %v2638_v25 = vpop.f32.mrb[4].mxu0 }
 0x11b   : > { %v2639_v45 = vpop.f32.mrb[5].mxu0 }
 0x11c   : > { %v2640_v50 = vadd.f32 %v2639_v45, %v2638_v25  ;;  %v2641_v10 = vpop.f32.mrb[6].mxu0 }
 0x11d   : > { %v2642_v33 = vpop.f32.mrb[7].mxu0 }
 0x11e   : > { %v2055_v30 = vadd.f32 %v2680_v17, %v2640_v50  ;;  %v2643_v31 = vadd.f32 %v2642_v33, %v2641_v10 }
 0x11f   : > { %v2684_v34 = vpop.f32.mrb[8].mxu1 }
 0x120   : > { %v2058_v16 = vadd.f32 %v2683_v23, %v2643_v31  ;;  %v2685_v35 = vpop.f32.mrb[9].mxu1 }
 0x121   : > { %v2686_v36 = vadd.f32 %v2685_v35, %v2684_v34  ;;  %v2687_v37 = vpop.f32.mrb[10].mxu1 }
 0x122   : > { %v2688_v26 = vpop.f32.mrb[11].mxu1 }
 0x123   : > { %v2689_v24 = vadd.f32 %v2688_v26, %v2687_v37 }
 0x127   : > { %v2644_v28 = vpop.f32.mrb[8].mxu0 }
 0x128   : > { %v2645_v29 = vpop.f32.mrb[9].mxu0 }
 0x129   : > { %v2646_v39 = vadd.f32 %v2645_v29, %v2644_v28  ;;  %v2647_v41 = vpop.f32.mrb[10].mxu0 }
 0x12a   : > { %v2648_v42 = vpop.f32.mrb[11].mxu0 }
 0x12b   : > { %v2063_v43 = vadd.f32 %v2686_v36, %v2646_v39  ;;  %v2649_v4 = vadd.f32 %v2648_v42, %v2647_v41 }
 0x12d   : > { %v2066_v44 = vadd.f32 %v2689_v24, %v2649_v4 }
 0x12f   : > { %v2690_v46 = vpop.f32.mrb[12].mxu1 }
 0x130   : > { %v2691_v48 = vpop.f32.mrb[13].mxu1 }
 0x131   : > { %v2692_v49 = vadd.f32 %v2691_v48, %v2690_v46  ;;  %v2693_v51 = vpop.f32.mrb[14].mxu1 }
 0x132   : > { %v2694_v52 = vpop.f32.mrb[15].mxu1 }
 0x133   : > { %v2695_v54 = vadd.f32 %v2694_v52, %v2693_v51 }
 0x137   : > { %v2650_v56 = vpop.f32.mrb[12].mxu0  ;;  %v2752_v62 = vpop.f32.mrb[16].mxu1 }
 0x138   : > { %v2651_v57 = vpop.f32.mrb[13].mxu0  ;;  %v2753_v38 = vpop.f32.mrb[17].mxu1 }
 0x139   : > { %v2652_v27 = vadd.f32 %v2651_v57, %v2650_v56  ;;  %v2653_v59 = vpop.f32.mrb[14].mxu0  ;;  %v2754_v1 = vadd.f32 %v2753_v38, %v2752_v62  ;;  %v2755_v55 = vpop.f32.mrb[18].mxu1 }
 0x13a   : > { %v2654_v3 = vpop.f32.mrb[15].mxu0  ;;  %v2756_v0 = vpop.f32.mrb[19].mxu1 }
 0x13b   : > { %v2071_v60 = vadd.f32 %v2692_v49, %v2652_v27  ;;  %v2655_v61 = vadd.f32 %v2654_v3, %v2653_v59  ;;  %v2757_v53 = vadd.f32 %v2756_v0, %v2755_v55 }
 0x13d   : > { %v2074_v63 = vadd.f32 %v2695_v54, %v2655_v61 }
 0x13f   : > { %v2712_v19 = vpop.f32.mrb[16].mxu0 }
 0x140   : > { %v2713_v2 = vpop.f32.mrb[17].mxu0 }
 0x141   : > { %v2714_v47 = vadd.f32 %v2713_v2, %v2712_v19  ;;  %v2715_v5 = vpop.f32.mrb[18].mxu0 }
 0x142   : > { %v2716_v58 = vpop.f32.mrb[19].mxu0 }
 0x143   : > { %v2112_v6 = vadd.f32 %v2714_v47, %v2047_v18  ;;  %v2717_v7 = vadd.f32 %v2716_v58, %v2715_v5  ;;  %v2758_v8 = vpop.f32.mrb[20].mxu1 }
 0x144   : > { %v2759_v11 = vpop.f32.mrb[21].mxu1 }
 0x145   : > { %v2115_v9 = vadd.f32 %v2717_v7, %v2050_v20  ;;  %v2177_v12 = vadd.f32 %v2754_v1, %v2112_v6  ;;  %v2760_v15 = vadd.f32 %v2759_v11, %v2758_v8  ;;  %v2761_v32 = vpop.f32.mrb[22].mxu1 }
 0x146   : > { %v2762_v13 = vpop.f32.mrb[23].mxu1 }
 0x147   : > { %v2180_v40 = vadd.f32 %v2757_v53, %v2115_v9  ;;  %v2763_v14 = vadd.f32 %v2762_v13, %v2761_v32 }
 0x14a   : > { %v2718_v17 = vpop.f32.mrb[20].mxu0 }
 0x14b   : > { %v2719_v21 = vpop.f32.mrb[21].mxu0 }
 0x14c   : > { %v2720_v22 = vadd.f32 %v2719_v21, %v2718_v17  ;;  %v2721_v23 = vpop.f32.mrb[22].mxu0 }
 0x14d   : > { %v2722_v25 = vpop.f32.mrb[23].mxu0 }
 0x14e   : > { %v2120_v45 = vadd.f32 %v2720_v22, %v2055_v30  ;;  %v2723_v50 = vadd.f32 %v2722_v25, %v2721_v23 }
 0x14f   : > { %v2764_v10 = vpop.f32.mrb[24].mxu1 }
 0x150   : > { %v2765_v33 = vpop.f32.mrb[25].mxu1  ;;  %v2123_v18 = vadd.f32 %v2723_v50, %v2058_v16  ;;  %v2185_v20 = vadd.f32 %v2760_v15, %v2120_v45 }
 0x151   : > { %v2766_v31 = vadd.f32 %v2765_v33, %v2764_v10  ;;  %v2767_v34 = vpop.f32.mrb[26].mxu1 }
 0x152   : > { %v2768_v35 = vpop.f32.mrb[27].mxu1  ;;  %v2188_v37 = vadd.f32 %v2763_v14, %v2123_v18 }
 0x153   : > { %v2769_v36 = vadd.f32 %v2768_v35, %v2767_v34 }
 0x156   : > { %v2724_v26 = vpop.f32.mrb[24].mxu0 }
 0x157   : > { %v2725_v24 = vpop.f32.mrb[25].mxu0 }
 0x158   : > { %v2726_v28 = vadd.f32 %v2725_v24, %v2724_v26  ;;  %v2727_v29 = vpop.f32.mrb[26].mxu0 }
 0x159   : > { %v2728_v39 = vpop.f32.mrb[27].mxu0 }
 0x15a   : > { %v2128_v41 = vadd.f32 %v2726_v28, %v2063_v43  ;;  %v2729_v42 = vadd.f32 %v2728_v39, %v2727_v29 }
 0x15c   : > { %v2131_v4 = vadd.f32 %v2729_v42, %v2066_v44  ;;  %v2193_v46 = vadd.f32 %v2766_v31, %v2128_v41 }
 0x15e   : > { %v2196_v30 = vadd.f32 %v2769_v36, %v2131_v4 }
 0x167   : > { %v2770_v49 = vpop.f32.mrb[28].mxu1 }
 0x168   : > { %v2730_v48 = vpop.f32.mrb[28].mxu0  ;;  %v2771_v16 = vpop.f32.mrb[29].mxu1 }
 0x169   : > { %v2731_v51 = vpop.f32.mrb[29].mxu0  ;;  %v2772_v56 = vadd.f32 %v2771_v16, %v2770_v49  ;;  %v2773_v57 = vpop.f32.mrb[30].mxu1 }
 0x16a   : > { %v2732_v52 = vadd.f32 %v2731_v51, %v2730_v48  ;;  %v2733_v54 = vpop.f32.mrb[30].mxu0  ;;  %v2774_v59 = vpop.f32.mrb[31].mxu1 }
 0x16b   : > { %v2734_v27 = vpop.f32.mrb[31].mxu0  ;;  %v2775_v62 = vadd.f32 %v2774_v59, %v2773_v57 }
 0x16c   : > { %v2136_v3 = vadd.f32 %v2732_v52, %v2071_v60  ;;  %v2735_v61 = vadd.f32 %v2734_v27, %v2733_v54 }
 0x16e   : > { %v2201_v38 = vadd.f32 %v2772_v56, %v2136_v3  ;;  %v2139_v1 = vadd.f32 %v2735_v61, %v2074_v63 }
 0x16f   : > { %v2810_v44 = vpop.f32.mrb[32].mxu1 }
 0x170   : > { %v2204_v43 = vadd.f32 %v2775_v62, %v2139_v1  ;;  %v2806_v55 = vpop.f32.mrb[32].mxu0  ;;  %v2266_v19 = vadd.f32 %v2810_v44, %v2201_v38  ;;  %v2257_v2 = vpop.f32.mrb[33].mxu1 }
 0x171   : > { %v2250_v0 = vadd.f32 %v2806_v55, %v2185_v20  ;;  %v2241_v53 = vpop.f32.mrb[33].mxu0  ;;  %v2258_v58 = vadd.f32 %v2257_v2, %v2193_v46  ;;  %v2811_v6 = vpop.f32.mrb[34].mxu1 }
 0x172   : > { %v2242_v47 = vadd.f32 %v2241_v53, %v2177_v12  ;;  %v2807_v5 = vpop.f32.mrb[34].mxu0  ;;  %v2269_v9 = vadd.f32 %v2811_v6, %v2204_v43  ;;  %v2260_v60 = vpop.f32.mrb[35].mxu1  ;;  %v2308_v36 = vmul.f32 %v2266_v19, %v2266_v19 }
 0x173   : > { %v2253_v7 = vadd.f32 %v2807_v5, %v2188_v37  ;;  %v2244_v8 = vpop.f32.mrb[35].mxu0  ;;  %v2261_v15 = vadd.f32 %v2260_v60, %v2196_v30  ;;  %v2304_v23 = vmul.f32 %v2250_v0, %v2250_v0  ;;  %v2306_v33 = vmul.f32 %v2258_v58, %v2258_v58 }
 0x174   : > { %v2245_v11 = vadd.f32 %v2244_v8, %v2180_v40  ;;  %v2608_v63 = vpack.c.bf16 %v2269_v9, %v2266_v19  ;;  %v2302_v12 = vmul.f32 %v2242_v47, %v2242_v47  ;;  %v2309_v24 = vmul.f32 %v2269_v9, %v2269_v9 }
 0x175   : > { %v2598_v32 = vpack.c.bf16 %v2253_v7, %v2250_v0  ;;  %v2603_v17 = vpack.c.bf16 %v2261_v15, %v2258_v58  ;;  %v2305_v45 = vmul.f32 %v2253_v7, %v2253_v7  ;;  %v2307_v34 = vmul.f32 %v2261_v15, %v2261_v15 }
 0x176   : > { %v2593_v13 = vpack.c.bf16 %v2245_v11, %v2242_v47  ;;  %v2288_v14 = vadd.f32 %v2245_v11, %v2242_v47  ;;  %v2303_v21 = vmul.f32 %v2245_v11, %v2245_v11  ;;  %2615 = vst [vmem:[%s231_s17 + $0x18] sm:$0xff] %v2608_v63  }
 0x177   : > { %2613 = vst [vmem:[%s231_s17 + $0x8] sm:$0xff] %v2598_v32   ;;  %2614 = vst [vmem:[%s231_s17 + $0x10] sm:$0xff] %v2603_v17  }
 0x178   : > { %2594 = vst [vmem:[%s231_s17] sm:$0xff] %v2593_v13   ;;  %v2289_v22 = vadd.f32 %v2288_v14, %v2250_v0  ;;  %v2310_v40 = vadd.f32 %v2303_v21, %v2302_v12 }
 0x17a   : > { %v2290_v25 = vadd.f32 %v2289_v22, %v2253_v7  ;;  %v2311_v50 = vadd.f32 %v2310_v40, %v2304_v23 }
 0x17c   : > { %v2291_v10 = vadd.f32 %v2290_v25, %v2258_v58  ;;  %v2312_v18 = vadd.f32 %v2311_v50, %v2305_v45 }
 0x17e   : > { %v2292_v31 = vadd.f32 %v2291_v10, %v2261_v15  ;;  %v2313_v20 = vadd.f32 %v2312_v18, %v2306_v33 }
 0x180   : > { %v2293_v35 = vadd.f32 %v2292_v31, %v2266_v19  ;;  %v2314_v37 = vadd.f32 %v2313_v20, %v2307_v34 }
 0x182   : > { %v2294_v26 = vadd.f32 %v2293_v35, %v2269_v9  ;;  %v2315_v28 = vadd.f32 %v2314_v37, %v2308_v36 }
 0x184   : > { %v2295_v29 = vrot.slane %v2294_v26, 4  ;;  %v2316_v39 = vadd.f32 %v2315_v28, %v2309_v24 }
 0x186   : > { %v2296_v41 = vadd.f32 %v2295_v29, %v2294_v26  ;;  %v2317_v42 = vrot.slane %v2316_v39, 4 }
 0x188   : > { %v2297_v4 = vrot.slane %v2296_v41, 2  ;;  %v2318_v46 = vadd.f32 %v2317_v42, %v2316_v39 }
 0x18a   : > { %v2298_v30 = vadd.f32 %v2297_v4, %v2296_v41  ;;  %v2319_v48 = vrot.slane %v2318_v46, 2 }
 0x18c   : > { %v2299_v49 = vrot.slane %v2298_v30, 1  ;;  %v2320_v51 = vadd.f32 %v2319_v48, %v2318_v46 }
 0x18e   : > { %v2300_v16 = vadd.f32 %v2299_v49, %v2298_v30  ;;  %v2321_v52 = vrot.slane %v2320_v51, 1 }
 0x190   : > { %2301 = vst [vmem:[%s235_s22] sm:$0x1] %v2300_v16  ;;  %v2322_v54 = vadd.f32 %v2321_v52, %v2320_v51 }
 0x192   : > { %2323 = vst [vmem:[%s235_s22 + $0x1] sm:$0x1] %v2322_v54 }
 0x193 PF: > { %s16_s18 = sadd.s32 1, %s2927_s18  }
 0x194   : > { %p13_p4 = scmp.ge.s32.totalorder %s16_s18, 4  }
 0x196   :  { %15 = sbr.rel (!%p13_p4) target bundleno = 1 (0x1), region = 81 }

</bundles_post_ra>
